<compile_context>
chip_gen: v7x
topology: tpu7x:2x2x1
jax: 0.10.0
libtpu: 0.0.40
codegen_flags: <defaults>
</compile_context>

<pallas_src>
import jax
import jax.numpy as jnp
from jax.experimental import pallas as pl
from jax.experimental.pallas import tpu as pltpu

LANE = 128
SUBLANE = 8


def _round_up(x, m):
    return (x + m - 1) // m * m


def _pick_time_chunk(t, max_chunk=16):
    """Largest divisor of t that is <= max_chunk (falls back to 1)."""
    for c in range(min(t, max_chunk), 0, -1):
        if t % c == 0:
            return c
    return 1


def bigru_kernel(xf_ref, xb_ref, whf_ref, whb_ref, bhnf_ref, bhnb_ref,
                 h_out_ref, hf_ref, hb_ref):
    """One grid step = TC time steps for BOTH directions.

    xf_ref : (TC, Bp, 3Hp)  precomputed x@Wi (+ folded biases), forward time order
    xb_ref : (TC, Bp, 3Hp)  same for backward weights; chunk picked in reverse order,
                             steps traversed in reverse inside the body
    wh*_ref: (Hp, 3Hp)      fused recurrent weights, gate g in lanes [g*Hp, g*Hp+H)
    bhn*_ref: (1, Hp)       recurrent bias of the n gate (must stay inside r*(...))
    h_out_ref: (Bp, 2Hp)    lane-dense final hidden (fwd in [0:Hp], bwd in [Hp:2Hp])
    hf_ref/hb_ref: (Bp, Hp) VMEM scratch carrying hidden state across grid steps
    """
    c = pl.program_id(0)
    tc = xf_ref.shape[0]
    hp = hf_ref.shape[-1]

    @pl.when(c == 0)
    def _():
        hf_ref[...] = jnp.zeros_like(hf_ref)
        hb_ref[...] = jnp.zeros_like(hb_ref)

    def gru_cell(xp, h, wh_ref, bhn_ref):
        # one fused (Bp,Hp)@(Hp,3Hp) matmul per step per direction
        hh = jnp.dot(h, wh_ref[...], preferred_element_type=jnp.float32)
        r = jax.nn.sigmoid(xp[:, 0:hp] + hh[:, 0:hp])
        z = jax.nn.sigmoid(xp[:, hp:2 * hp] + hh[:, hp:2 * hp])
        n = jnp.tanh(xp[:, 2 * hp:3 * hp] + r * (hh[:, 2 * hp:3 * hp] + bhn_ref[...]))
        return (1.0 - z) * n + z * h

    def body(i, carry):
        hf, hb = carry
        hf = gru_cell(xf_ref[i], hf, whf_ref, bhnf_ref)
        hb = gru_cell(xb_ref[tc - 1 - i], hb, whb_ref, bhnb_ref)
        return hf, hb

    hf, hb = jax.lax.fori_loop(0, tc, body, (hf_ref[...], hb_ref[...]), unroll=True)
    hf_ref[...] = hf
    hb_ref[...] = hb

    @pl.when(c == pl.num_programs(0) - 1)
    def _():
        h_out_ref[:, 0:hp] = hf_ref[...]
        h_out_ref[:, hp:2 * hp] = hb_ref[...]


def bigru_final_hidden(xproj_f, xproj_b, wh_f, wh_b, bhn_f, bhn_b):
    """xproj_*: (T, Bp, 3Hp) f32 -> (Bp, 2Hp) f32 lane-dense final hidden state."""
    t, bp, three_hp = xproj_f.shape
    hp = three_hp // 3
    tc = _pick_time_chunk(t)
    nc = t // tc

    grid_spec = pltpu.PrefetchScalarGridSpec(
        num_scalar_prefetch=0,
        grid=(nc,),
        in_specs=[
            pl.BlockSpec((tc, bp, 3 * hp), lambda c: (c, 0, 0)),                # fwd chunk
            pl.BlockSpec((tc, bp, 3 * hp), lambda c, _nc=nc: (_nc - 1 - c, 0, 0)),  # bwd chunk
            pl.BlockSpec((hp, 3 * hp), lambda c: (0, 0)),
            pl.BlockSpec((hp, 3 * hp), lambda c: (0, 0)),
            pl.BlockSpec((1, hp), lambda c: (0, 0)),
            pl.BlockSpec((1, hp), lambda c: (0, 0)),
        ],
        out_specs=pl.BlockSpec((bp, 2 * hp), lambda c: (0, 0)),
        scratch_shapes=[pltpu.VMEM((bp, hp), jnp.float32),
                        pltpu.VMEM((bp, hp), jnp.float32)],
    )

    return pl.pallas_call(
        bigru_kernel,
        out_shape=jax.ShapeDtypeStruct((bp, 2 * hp), jnp.float32),
        grid_spec=grid_spec,
        compiler_params=pltpu.CompilerParams(
            dimension_semantics=("arbitrary",),
            vmem_limit_bytes=32 * 1024 * 1024,
        ),
    )(xproj_f, xproj_b, wh_f, wh_b, bhn_f, bhn_b)


def init_params(key, num_embeddings, embedding_dim, hidden_size, padding_idx):
    """Raw, PyTorch-like parameters (gate order r, z, n; weights stored as (3, in, H))."""
    keys = jax.random.split(key, 9)
    emb = jax.random.normal(keys[0], (num_embeddings, embedding_dim), jnp.float32)
    emb = emb.at[padding_idx].set(0.0)
    k = 1.0 / float(hidden_size) ** 0.5

    def u(kk, shape):
        return jax.random.uniform(kk, shape, jnp.float32, -k, k)

    return {
        "embedding": emb,
        "wi_f": u(keys[1], (3, embedding_dim, hidden_size)),
        "wh_f": u(keys[2], (3, hidden_size, hidden_size)),
        "bi_f": u(keys[3], (3, 1, hidden_size)),
        "bh_f": u(keys[4], (3, 1, hidden_size)),
        "wi_b": u(keys[5], (3, embedding_dim, hidden_size)),
        "wh_b": u(keys[6], (3, hidden_size, hidden_size)),
        "bi_b": u(keys[7], (3, 1, hidden_size)),
        "bh_b": u(keys[8], (3, 1, hidden_size)),
    }


def prepare_kernel_params(params):
    """Build fused / lane-padded kernel layouts from the raw parameters."""
    e = params["wi_f"].shape[1]
    h = params["wh_f"].shape[-1]
    hp = _round_up(h, LANE)

    def fuse_dir(wi, wh, bi, bh):
        wi_fused = jnp.zeros((e, 3 * hp), jnp.float32)
        wh_fused = jnp.zeros((hp, 3 * hp), jnp.float32)
        b_fused = jnp.zeros((1, 3 * hp), jnp.float32)
        for g in range(3):
            wi_fused = wi_fused.at[:, g * hp:g * hp + h].set(wi[g])
            wh_fused = wh_fused.at[:h, g * hp:g * hp + h].set(wh[g])
        # fold recurrent biases for r and z into the hoisted projection;
        # bh[2] (n gate) must stay inside r*(...) and is applied in-kernel
        b_fused = b_fused.at[:, 0 * hp:0 * hp + h].set(bi[0] + bh[0])
        b_fused = b_fused.at[:, 1 * hp:1 * hp + h].set(bi[1] + bh[1])
        b_fused = b_fused.at[:, 2 * hp:2 * hp + h].set(bi[2])
        bhn = jnp.zeros((1, hp), jnp.float32).at[:, :h].set(bh[2])
        return wi_fused, wh_fused, b_fused, bhn

    wi_f, wh_f, b_f, bhn_f = fuse_dir(params["wi_f"], params["wh_f"],
                                      params["bi_f"], params["bh_f"])
    wi_b, wh_b, b_b, bhn_b = fuse_dir(params["wi_b"], params["wh_b"],
                                      params["bi_b"], params["bh_b"])
    out = dict(params)
    out.update(
        wi_fused_f=wi_f, wh_fused_f=wh_f, b_fused_f=b_f, bhn_f=bhn_f,
        wi_fused_b=wi_b, wh_fused_b=wh_b, b_fused_b=b_b, bhn_b=bhn_b,
    )
    return out


def encoder_forward(x_ids, params):
    """Mirrors Encoder.forward: embedding -> permute -> biGRU -> transform_hidden_state -> dropout."""
    h = params["wh_f"].shape[-1]
    hp = params["wh_fused_f"].shape[0]

    emb = params["embedding"][x_ids]           # (B, S, E) embedding gather (glue)
    b, s, e = emb.shape
    x_seq = jnp.transpose(emb, (1, 0, 2))      # (S, B, E)  == x.permute(1, 0, 2)

    # Hoisted input projection: one big (S*B, E) @ (E, 3Hp) GEMM per direction,
    # input (+ r/z recurrent) biases folded in.  h-independent, so off the serial path.
    prec = jax.lax.Precision.HIGHEST
    x_flat = x_seq.reshape(s * b, e)
    xproj_f = (jnp.dot(x_flat, params["wi_fused_f"], precision=prec)
               + params["b_fused_f"]).reshape(s, b, 3 * hp)
    xproj_b = (jnp.dot(x_flat, params["wi_fused_b"], precision=prec)
               + params["b_fused_b"]).reshape(s, b, 3 * hp)

    bp = _round_up(b, SUBLANE)
    pad = ((0, 0), (0, bp - b), (0, 0))
    xproj_f = jnp.pad(xproj_f, pad)
    xproj_b = jnp.pad(xproj_b, pad)

    h_cat = bigru_final_hidden(
        xproj_f, xproj_b,
        params["wh_fused_f"], params["wh_fused_b"],
        params["bhn_f"], params["bhn_b"])      # (Bp, 2Hp)

    # transform_hidden_state: (2, B, H) -> (B, 2H) -> (1, B, 2H); the kernel already
    # wrote fwd|bwd lane-dense, so this is just an un-pad slice + reshape.
    h_t = jnp.concatenate([h_cat[:b, 0:h], h_cat[:b, hp:hp + h]], axis=-1)
    h_t = h_t.reshape(1, b, 2 * h)
    # TODO(synk): nn.Dropout(p=0.4) is stochastic in training mode; identity here (eval mode).
    output = h_t
    hidden = h_t
    return output, hidden


def _gru_dir_ref(xs, wi, wh, bi, bh):
    """Pure-JAX reference for one GRU direction (xs already in processing order)."""
    b, h = xs.shape[1], wh.shape[-1]
    hstate = jnp.zeros((b, h), jnp.float32)
    prec = jax.lax.Precision.HIGHEST
    for t in range(xs.shape[0]):
        x = xs[t]
        r = jax.nn.sigmoid(jnp.dot(x, wi[0], precision=prec) + bi[0]
                           + jnp.dot(hstate, wh[0], precision=prec) + bh[0])
        z = jax.nn.sigmoid(jnp.dot(x, wi[1], precision=prec) + bi[1]
                           + jnp.dot(hstate, wh[1], precision=prec) + bh[1])
        n = jnp.tanh(jnp.dot(x, wi[2], precision=prec) + bi[2]
                     + r * (jnp.dot(hstate, wh[2], precision=prec) + bh[2]))
        hstate = (1.0 - z) * n + z * hstate
    return hstate


if __name__ == "__main__":
    # Small, module-consistent shapes.
    NUM_EMB, EMB_DIM, HIDDEN, PAD_IDX = 64, 32, 32, 2
    BATCH, SEQ = 2, 8

    key = jax.random.PRNGKey(0)
    pkey, xkey = jax.random.split(key)
    raw_params = init_params(pkey, NUM_EMB, EMB_DIM, HIDDEN, PAD_IDX)
    params = prepare_kernel_params(raw_params)
    x_ids = jax.random.randint(xkey, (BATCH, SEQ), 0, NUM_EMB, dtype=jnp.int32)

    fwd = jax.jit(encoder_forward)
    output, hidden = fwd(x_ids, params)
    jax.block_until_ready((output, hidden))

    # Correctness check against a pure-JAX reference of the biGRU final hidden.
    emb = raw_params["embedding"][x_ids]
    xs = jnp.transpose(emb, (1, 0, 2))
    hf = _gru_dir_ref(xs, raw_params["wi_f"], raw_params["wh_f"],
                      raw_params["bi_f"], raw_params["bh_f"])
    hb = _gru_dir_ref(xs[::-1], raw_params["wi_b"], raw_params["wh_b"],
                      raw_params["bi_b"], raw_params["bh_b"])
    h_ref = jnp.concatenate([hf, hb], axis=-1)[None]    # (1, B, 2H)

    assert output.shape == (1, BATCH, 2 * HIDDEN)
    assert hidden.shape == (1, BATCH, 2 * HIDDEN)
    assert jnp.allclose(hidden, h_ref, atol=1e-3, rtol=1e-3), "mismatch vs reference"
    assert jnp.allclose(output, hidden), "output and hidden must be identical"

    print("KERNEL_OK")
</pallas_src>

<mosaic_0001>
module attributes {stable_mosaic.version = 11 : i64} {
  func.func @bigru_kernel(%arg0: i32, %arg1: memref<8x8x384xf32, #tpu.memory_space<vmem>>, %arg2: memref<8x8x384xf32, #tpu.memory_space<vmem>>, %arg3: memref<128x384xf32, #tpu.memory_space<vmem>>, %arg4: memref<128x384xf32, #tpu.memory_space<vmem>>, %arg5: memref<1x128xf32, #tpu.memory_space<vmem>>, %arg6: memref<1x128xf32, #tpu.memory_space<vmem>>, %arg7: memref<8x256xf32, #tpu.memory_space<vmem>>, %arg8: memref<8x128xf32, #tpu.memory_space<vmem>>, %arg9: memref<8x128xf32, #tpu.memory_space<vmem>>) attributes {dimension_semantics = [#tpu.dimension_semantics<arbitrary>], iteration_bounds = array<i64: 1>, scalar_prefetch = 0 : i64, scratch_operands = 2 : i64, tpu.core_type = #tpu.core_type<tc>, window_params = [{transform_indices = @transform_0, window_bounds = array<i64: 8, 8, 384>}, {transform_indices = @transform_1, window_bounds = array<i64: 8, 8, 384>}, {pipeline_mode = #tpu.pipeline_mode<synchronous>, transform_indices = @transform_2, window_bounds = array<i64: 128, 384>}, {pipeline_mode = #tpu.pipeline_mode<synchronous>, transform_indices = @transform_3, window_bounds = array<i64: 128, 384>}, {pipeline_mode = #tpu.pipeline_mode<synchronous>, transform_indices = @transform_4, window_bounds = array<i64: 1, 128>}, {pipeline_mode = #tpu.pipeline_mode<synchronous>, transform_indices = @transform_5, window_bounds = array<i64: 1, 128>}, {pipeline_mode = #tpu.pipeline_mode<synchronous>, transform_indices = @transform_6, window_bounds = array<i64: 8, 256>}]} {
    %c0_i32 = arith.constant 0 : i32
    %0 = arith.cmpi eq, %arg0, %c0_i32 : i32
    %1 = arith.extui %0 : i1 to i32
    %c0_i32_0 = arith.constant 0 : i32
    %2 = arith.cmpi ne, %1, %c0_i32_0 : i32
    scf.if %2 {
      %cst_178 = arith.constant 0.000000e+00 : f32
      %562 = vector.broadcast %cst_178 : f32 to vector<8x128xf32>
      %c0_179 = arith.constant 0 : index
      %c0_180 = arith.constant 0 : index
      %563 = vector.load %arg8[%c0_179, %c0_180] : memref<8x128xf32, #tpu.memory_space<vmem>>, vector<8x128xf32>
      tpu.vector_store %arg8[%c0_179, %c0_180], %562 {strides = array<i32>} : memref<8x128xf32, #tpu.memory_space<vmem>>, vector<8x128xf32>,
      %cst_181 = arith.constant 0.000000e+00 : f32
      %564 = vector.broadcast %cst_181 : f32 to vector<8x128xf32>
      %c0_182 = arith.constant 0 : index
      %c0_183 = arith.constant 0 : index
      %565 = vector.load %arg9[%c0_182, %c0_183] : memref<8x128xf32, #tpu.memory_space<vmem>>, vector<8x128xf32>
      tpu.vector_store %arg9[%c0_182, %c0_183], %564 {strides = array<i32>} : memref<8x128xf32, #tpu.memory_space<vmem>>, vector<8x128xf32>,
    } else {
    }
    %c0 = arith.constant 0 : index
    %c0_1 = arith.constant 0 : index
    %3 = vector.load %arg8[%c0, %c0_1] : memref<8x128xf32, #tpu.memory_space<vmem>>, vector<8x128xf32>
    %c0_2 = arith.constant 0 : index
    %c0_3 = arith.constant 0 : index
    %4 = vector.load %arg9[%c0_2, %c0_3] : memref<8x128xf32, #tpu.memory_space<vmem>>, vector<8x128xf32>
    %c0_i32_4 = arith.constant 0 : i32
    %5 = arith.index_cast %c0_i32_4 : i32 to index
    %c0_5 = arith.constant 0 : index
    %c0_6 = arith.constant 0 : index
    %6 = vector.load %arg1[%5, %c0_5, %c0_6] : memref<8x8x384xf32, #tpu.memory_space<vmem>>, vector<1x8x384xf32>
    %7 = vector.shape_cast %6 : vector<1x8x384xf32> to vector<8x384xf32>
    %c0_7 = arith.constant 0 : index
    %c0_8 = arith.constant 0 : index
    %8 = vector.load %arg3[%c0_7, %c0_8] : memref<128x384xf32, #tpu.memory_space<vmem>>, vector<128x384xf32>
    %cst = arith.constant dense<0.000000e+00> : vector<8x384xf32>
    %9 = tpu.matmul %3, %8, %cst {dimension_numbers = #tpu.dot_dimension_numbers<[1], [0], [0], [1], [0, 0, 1, 1], [], []>} : vector<8x128xf32>, vector<128x384xf32>, vector<8x384xf32> -> vector<8x384xf32>
    %10 = vector.extract_strided_slice %7 {offsets = [0, 0], sizes = [8, 128], strides = [1, 1]} : vector<8x384xf32> to vector<8x128xf32>
    %11 = vector.extract_strided_slice %9 {offsets = [0, 0], sizes = [8, 128], strides = [1, 1]} : vector<8x384xf32> to vector<8x128xf32>
    %12 = arith.addf %10, %11 : vector<8x128xf32>
    %13 = arith.negf %12 : vector<8x128xf32>
    %14 = math.exp %13 : vector<8x128xf32>
    %cst_9 = arith.constant 1.000000e+00 : f32
    %15 = vector.broadcast %cst_9 : f32 to vector<8x128xf32>
    %16 = arith.addf %15, %14 : vector<8x128xf32>
    %17 = arith.divf %15, %16 : vector<8x128xf32>
    %18 = vector.extract_strided_slice %7 {offsets = [0, 128], sizes = [8, 128], strides = [1, 1]} : vector<8x384xf32> to vector<8x128xf32>
    %19 = vector.extract_strided_slice %9 {offsets = [0, 128], sizes = [8, 128], strides = [1, 1]} : vector<8x384xf32> to vector<8x128xf32>
    %20 = arith.addf %18, %19 : vector<8x128xf32>
    %21 = arith.negf %20 : vector<8x128xf32>
    %22 = math.exp %21 : vector<8x128xf32>
    %cst_10 = arith.constant 1.000000e+00 : f32
    %23 = vector.broadcast %cst_10 : f32 to vector<8x128xf32>
    %24 = arith.addf %23, %22 : vector<8x128xf32>
    %25 = arith.divf %23, %24 : vector<8x128xf32>
    %26 = vector.extract_strided_slice %7 {offsets = [0, 256], sizes = [8, 128], strides = [1, 1]} : vector<8x384xf32> to vector<8x128xf32>
    %27 = vector.extract_strided_slice %9 {offsets = [0, 256], sizes = [8, 128], strides = [1, 1]} : vector<8x384xf32> to vector<8x128xf32>
    %c0_11 = arith.constant 0 : index
    %c0_12 = arith.constant 0 : index
    %28 = vector.load %arg5[%c0_11, %c0_12] : memref<1x128xf32, #tpu.memory_space<vmem>>, vector<1x128xf32>
    %29 = vector.broadcast %28 : vector<1x128xf32> to vector<8x128xf32>
    %30 = arith.addf %27, %29 : vector<8x128xf32>
    %31 = arith.mulf %17, %30 : vector<8x128xf32>
    %32 = arith.addf %26, %31 : vector<8x128xf32>
    %33 = math.tanh %32 : vector<8x128xf32>
    %cst_13 = arith.constant 1.000000e+00 : f32
    %34 = vector.broadcast %cst_13 : f32 to vector<8x128xf32>
    %35 = arith.subf %34, %25 : vector<8x128xf32>
    %36 = arith.mulf %35, %33 : vector<8x128xf32>
    %37 = arith.mulf %25, %3 : vector<8x128xf32>
    %38 = arith.addf %36, %37 : vector<8x128xf32>
    %c7_i32 = arith.constant 7 : i32
    %39 = arith.subi %c7_i32, %c0_i32_4 : i32
    %40 = arith.index_cast %39 : i32 to index
    %c0_14 = arith.constant 0 : index
    %c0_15 = arith.constant 0 : index
    %41 = vector.load %arg2[%40, %c0_14, %c0_15] : memref<8x8x384xf32, #tpu.memory_space<vmem>>, vector<1x8x384xf32>
    %42 = vector.shape_cast %41 : vector<1x8x384xf32> to vector<8x384xf32>
    %c0_16 = arith.constant 0 : index
    %c0_17 = arith.constant 0 : index
    %43 = vector.load %arg4[%c0_16, %c0_17] : memref<128x384xf32, #tpu.memory_space<vmem>>, vector<128x384xf32>
    %cst_18 = arith.constant dense<0.000000e+00> : vector<8x384xf32>
    %44 = tpu.matmul %4, %43, %cst_18 {dimension_numbers = #tpu.dot_dimension_numbers<[1], [0], [0], [1], [0, 0, 1, 1], [], []>} : vector<8x128xf32>, vector<128x384xf32>, vector<8x384xf32> -> vector<8x384xf32>
    %45 = vector.extract_strided_slice %42 {offsets = [0, 0], sizes = [8, 128], strides = [1, 1]} : vector<8x384xf32> to vector<8x128xf32>
    %46 = vector.extract_strided_slice %44 {offsets = [0, 0], sizes = [8, 128], strides = [1, 1]} : vector<8x384xf32> to vector<8x128xf32>
    %47 = arith.addf %45, %46 : vector<8x128xf32>
    %48 = arith.negf %47 : vector<8x128xf32>
    %49 = math.exp %48 : vector<8x128xf32>
    %cst_19 = arith.constant 1.000000e+00 : f32
    %50 = vector.broadcast %cst_19 : f32 to vector<8x128xf32>
    %51 = arith.addf %50, %49 : vector<8x128xf32>
    %52 = arith.divf %50, %51 : vector<8x128xf32>
    %53 = vector.extract_strided_slice %42 {offsets = [0, 128], sizes = [8, 128], strides = [1, 1]} : vector<8x384xf32> to vector<8x128xf32>
    %54 = vector.extract_strided_slice %44 {offsets = [0, 128], sizes = [8, 128], strides = [1, 1]} : vector<8x384xf32> to vector<8x128xf32>
    %55 = arith.addf %53, %54 : vector<8x128xf32>
    %56 = arith.negf %55 : vector<8x128xf32>
    %57 = math.exp %56 : vector<8x128xf32>
    %cst_20 = arith.constant 1.000000e+00 : f32
    %58 = vector.broadcast %cst_20 : f32 to vector<8x128xf32>
    %59 = arith.addf %58, %57 : vector<8x128xf32>
    %60 = arith.divf %58, %59 : vector<8x128xf32>
    %61 = vector.extract_strided_slice %42 {offsets = [0, 256], sizes = [8, 128], strides = [1, 1]} : vector<8x384xf32> to vector<8x128xf32>
    %62 = vector.extract_strided_slice %44 {offsets = [0, 256], sizes = [8, 128], strides = [1, 1]} : vector<8x384xf32> to vector<8x128xf32>
    %c0_21 = arith.constant 0 : index
    %c0_22 = arith.constant 0 : index
    %63 = vector.load %arg6[%c0_21, %c0_22] : memref<1x128xf32, #tpu.memory_space<vmem>>, vector<1x128xf32>
    %64 = vector.broadcast %63 : vector<1x128xf32> to vector<8x128xf32>
    %65 = arith.addf %62, %64 : vector<8x128xf32>
    %66 = arith.mulf %52, %65 : vector<8x128xf32>
    %67 = arith.addf %61, %66 : vector<8x128xf32>
    %68 = math.tanh %67 : vector<8x128xf32>
    %cst_23 = arith.constant 1.000000e+00 : f32
    %69 = vector.broadcast %cst_23 : f32 to vector<8x128xf32>
    %70 = arith.subf %69, %60 : vector<8x128xf32>
    %71 = arith.mulf %70, %68 : vector<8x128xf32>
    %72 = arith.mulf %60, %4 : vector<8x128xf32>
    %73 = arith.addf %71, %72 : vector<8x128xf32>
    %c1_i32 = arith.constant 1 : i32
    %74 = arith.index_cast %c1_i32 : i32 to index
    %c0_24 = arith.constant 0 : index
    %c0_25 = arith.constant 0 : index
    %75 = vector.load %arg1[%74, %c0_24, %c0_25] : memref<8x8x384xf32, #tpu.memory_space<vmem>>, vector<1x8x384xf32>
    %76 = vector.shape_cast %75 : vector<1x8x384xf32> to vector<8x384xf32>
    %c0_26 = arith.constant 0 : index
    %c0_27 = arith.constant 0 : index
    %77 = vector.load %arg3[%c0_26, %c0_27] : memref<128x384xf32, #tpu.memory_space<vmem>>, vector<128x384xf32>
    %cst_28 = arith.constant dense<0.000000e+00> : vector<8x384xf32>
    %78 = tpu.matmul %38, %77, %cst_28 {dimension_numbers = #tpu.dot_dimension_numbers<[1], [0], [0], [1], [0, 0, 1, 1], [], []>} : vector<8x128xf32>, vector<128x384xf32>, vector<8x384xf32> -> vector<8x384xf32>
    %79 = vector.extract_strided_slice %76 {offsets = [0, 0], sizes = [8, 128], strides = [1, 1]} : vector<8x384xf32> to vector<8x128xf32>
    %80 = vector.extract_strided_slice %78 {offsets = [0, 0], sizes = [8, 128], strides = [1, 1]} : vector<8x384xf32> to vector<8x128xf32>
    %81 = arith.addf %79, %80 : vector<8x128xf32>
    %82 = arith.negf %81 : vector<8x128xf32>
    %83 = math.exp %82 : vector<8x128xf32>
    %cst_29 = arith.constant 1.000000e+00 : f32
    %84 = vector.broadcast %cst_29 : f32 to vector<8x128xf32>
    %85 = arith.addf %84, %83 : vector<8x128xf32>
    %86 = arith.divf %84, %85 : vector<8x128xf32>
    %87 = vector.extract_strided_slice %76 {offsets = [0, 128], sizes = [8, 128], strides = [1, 1]} : vector<8x384xf32> to vector<8x128xf32>
    %88 = vector.extract_strided_slice %78 {offsets = [0, 128], sizes = [8, 128], strides = [1, 1]} : vector<8x384xf32> to vector<8x128xf32>
    %89 = arith.addf %87, %88 : vector<8x128xf32>
    %90 = arith.negf %89 : vector<8x128xf32>
    %91 = math.exp %90 : vector<8x128xf32>
    %cst_30 = arith.constant 1.000000e+00 : f32
    %92 = vector.broadcast %cst_30 : f32 to vector<8x128xf32>
    %93 = arith.addf %92, %91 : vector<8x128xf32>
    %94 = arith.divf %92, %93 : vector<8x128xf32>
    %95 = vector.extract_strided_slice %76 {offsets = [0, 256], sizes = [8, 128], strides = [1, 1]} : vector<8x384xf32> to vector<8x128xf32>
    %96 = vector.extract_strided_slice %78 {offsets = [0, 256], sizes = [8, 128], strides = [1, 1]} : vector<8x384xf32> to vector<8x128xf32>
    %c0_31 = arith.constant 0 : index
    %c0_32 = arith.constant 0 : index
    %97 = vector.load %arg5[%c0_31, %c0_32] : memref<1x128xf32, #tpu.memory_space<vmem>>, vector<1x128xf32>
    %98 = vector.broadcast %97 : vector<1x128xf32> to vector<8x128xf32>
    %99 = arith.addf %96, %98 : vector<8x128xf32>
    %100 = arith.mulf %86, %99 : vector<8x128xf32>
    %101 = arith.addf %95, %100 : vector<8x128xf32>
    %102 = math.tanh %101 : vector<8x128xf32>
    %cst_33 = arith.constant 1.000000e+00 : f32
    %103 = vector.broadcast %cst_33 : f32 to vector<8x128xf32>
    %104 = arith.subf %103, %94 : vector<8x128xf32>
    %105 = arith.mulf %104, %102 : vector<8x128xf32>
    %106 = arith.mulf %94, %38 : vector<8x128xf32>
    %107 = arith.addf %105, %106 : vector<8x128xf32>
    %c7_i32_34 = arith.constant 7 : i32
    %108 = arith.subi %c7_i32_34, %c1_i32 : i32
    %109 = arith.index_cast %108 : i32 to index
    %c0_35 = arith.constant 0 : index
    %c0_36 = arith.constant 0 : index
    %110 = vector.load %arg2[%109, %c0_35, %c0_36] : memref<8x8x384xf32, #tpu.memory_space<vmem>>, vector<1x8x384xf32>
    %111 = vector.shape_cast %110 : vector<1x8x384xf32> to vector<8x384xf32>
    %c0_37 = arith.constant 0 : index
    %c0_38 = arith.constant 0 : index
    %112 = vector.load %arg4[%c0_37, %c0_38] : memref<128x384xf32, #tpu.memory_space<vmem>>, vector<128x384xf32>
    %cst_39 = arith.constant dense<0.000000e+00> : vector<8x384xf32>
    %113 = tpu.matmul %73, %112, %cst_39 {dimension_numbers = #tpu.dot_dimension_numbers<[1], [0], [0], [1], [0, 0, 1, 1], [], []>} : vector<8x128xf32>, vector<128x384xf32>, vector<8x384xf32> -> vector<8x384xf32>
    %114 = vector.extract_strided_slice %111 {offsets = [0, 0], sizes = [8, 128], strides = [1, 1]} : vector<8x384xf32> to vector<8x128xf32>
    %115 = vector.extract_strided_slice %113 {offsets = [0, 0], sizes = [8, 128], strides = [1, 1]} : vector<8x384xf32> to vector<8x128xf32>
    %116 = arith.addf %114, %115 : vector<8x128xf32>
    %117 = arith.negf %116 : vector<8x128xf32>
    %118 = math.exp %117 : vector<8x128xf32>
    %cst_40 = arith.constant 1.000000e+00 : f32
    %119 = vector.broadcast %cst_40 : f32 to vector<8x128xf32>
    %120 = arith.addf %119, %118 : vector<8x128xf32>
    %121 = arith.divf %119, %120 : vector<8x128xf32>
    %122 = vector.extract_strided_slice %111 {offsets = [0, 128], sizes = [8, 128], strides = [1, 1]} : vector<8x384xf32> to vector<8x128xf32>
    %123 = vector.extract_strided_slice %113 {offsets = [0, 128], sizes = [8, 128], strides = [1, 1]} : vector<8x384xf32> to vector<8x128xf32>
    %124 = arith.addf %122, %123 : vector<8x128xf32>
    %125 = arith.negf %124 : vector<8x128xf32>
    %126 = math.exp %125 : vector<8x128xf32>
    %cst_41 = arith.constant 1.000000e+00 : f32
    %127 = vector.broadcast %cst_41 : f32 to vector<8x128xf32>
    %128 = arith.addf %127, %126 : vector<8x128xf32>
    %129 = arith.divf %127, %128 : vector<8x128xf32>
    %130 = vector.extract_strided_slice %111 {offsets = [0, 256], sizes = [8, 128], strides = [1, 1]} : vector<8x384xf32> to vector<8x128xf32>
    %131 = vector.extract_strided_slice %113 {offsets = [0, 256], sizes = [8, 128], strides = [1, 1]} : vector<8x384xf32> to vector<8x128xf32>
    %c0_42 = arith.constant 0 : index
    %c0_43 = arith.constant 0 : index
    %132 = vector.load %arg6[%c0_42, %c0_43] : memref<1x128xf32, #tpu.memory_space<vmem>>, vector<1x128xf32>
    %133 = vector.broadcast %132 : vector<1x128xf32> to vector<8x128xf32>
    %134 = arith.addf %131, %133 : vector<8x128xf32>
    %135 = arith.mulf %121, %134 : vector<8x128xf32>
    %136 = arith.addf %130, %135 : vector<8x128xf32>
    %137 = math.tanh %136 : vector<8x128xf32>
    %cst_44 = arith.constant 1.000000e+00 : f32
    %138 = vector.broadcast %cst_44 : f32 to vector<8x128xf32>
    %139 = arith.subf %138, %129 : vector<8x128xf32>
    %140 = arith.mulf %139, %137 : vector<8x128xf32>
    %141 = arith.mulf %129, %73 : vector<8x128xf32>
    %142 = arith.addf %140, %141 : vector<8x128xf32>
    %c2_i32 = arith.constant 2 : i32
    %143 = arith.index_cast %c2_i32 : i32 to index
    %c0_45 = arith.constant 0 : index
    %c0_46 = arith.constant 0 : index
    %144 = vector.load %arg1[%143, %c0_45, %c0_46] : memref<8x8x384xf32, #tpu.memory_space<vmem>>, vector<1x8x384xf32>
    %145 = vector.shape_cast %144 : vector<1x8x384xf32> to vector<8x384xf32>
    %c0_47 = arith.constant 0 : index
    %c0_48 = arith.constant 0 : index
    %146 = vector.load %arg3[%c0_47, %c0_48] : memref<128x384xf32, #tpu.memory_space<vmem>>, vector<128x384xf32>
    %cst_49 = arith.constant dense<0.000000e+00> : vector<8x384xf32>
    %147 = tpu.matmul %107, %146, %cst_49 {dimension_numbers = #tpu.dot_dimension_numbers<[1], [0], [0], [1], [0, 0, 1, 1], [], []>} : vector<8x128xf32>, vector<128x384xf32>, vector<8x384xf32> -> vector<8x384xf32>
    %148 = vector.extract_strided_slice %145 {offsets = [0, 0], sizes = [8, 128], strides = [1, 1]} : vector<8x384xf32> to vector<8x128xf32>
    %149 = vector.extract_strided_slice %147 {offsets = [0, 0], sizes = [8, 128], strides = [1, 1]} : vector<8x384xf32> to vector<8x128xf32>
    %150 = arith.addf %148, %149 : vector<8x128xf32>
    %151 = arith.negf %150 : vector<8x128xf32>
    %152 = math.exp %151 : vector<8x128xf32>
    %cst_50 = arith.constant 1.000000e+00 : f32
    %153 = vector.broadcast %cst_50 : f32 to vector<8x128xf32>
    %154 = arith.addf %153, %152 : vector<8x128xf32>
    %155 = arith.divf %153, %154 : vector<8x128xf32>
    %156 = vector.extract_strided_slice %145 {offsets = [0, 128], sizes = [8, 128], strides = [1, 1]} : vector<8x384xf32> to vector<8x128xf32>
    %157 = vector.extract_strided_slice %147 {offsets = [0, 128], sizes = [8, 128], strides = [1, 1]} : vector<8x384xf32> to vector<8x128xf32>
    %158 = arith.addf %156, %157 : vector<8x128xf32>
    %159 = arith.negf %158 : vector<8x128xf32>
    %160 = math.exp %159 : vector<8x128xf32>
    %cst_51 = arith.constant 1.000000e+00 : f32
    %161 = vector.broadcast %cst_51 : f32 to vector<8x128xf32>
    %162 = arith.addf %161, %160 : vector<8x128xf32>
    %163 = arith.divf %161, %162 : vector<8x128xf32>
    %164 = vector.extract_strided_slice %145 {offsets = [0, 256], sizes = [8, 128], strides = [1, 1]} : vector<8x384xf32> to vector<8x128xf32>
    %165 = vector.extract_strided_slice %147 {offsets = [0, 256], sizes = [8, 128], strides = [1, 1]} : vector<8x384xf32> to vector<8x128xf32>
    %c0_52 = arith.constant 0 : index
    %c0_53 = arith.constant 0 : index
    %166 = vector.load %arg5[%c0_52, %c0_53] : memref<1x128xf32, #tpu.memory_space<vmem>>, vector<1x128xf32>
    %167 = vector.broadcast %166 : vector<1x128xf32> to vector<8x128xf32>
    %168 = arith.addf %165, %167 : vector<8x128xf32>
    %169 = arith.mulf %155, %168 : vector<8x128xf32>
    %170 = arith.addf %164, %169 : vector<8x128xf32>
    %171 = math.tanh %170 : vector<8x128xf32>
    %cst_54 = arith.constant 1.000000e+00 : f32
    %172 = vector.broadcast %cst_54 : f32 to vector<8x128xf32>
    %173 = arith.subf %172, %163 : vector<8x128xf32>
    %174 = arith.mulf %173, %171 : vector<8x128xf32>
    %175 = arith.mulf %163, %107 : vector<8x128xf32>
    %176 = arith.addf %174, %175 : vector<8x128xf32>
    %c7_i32_55 = arith.constant 7 : i32
    %177 = arith.subi %c7_i32_55, %c2_i32 : i32
    %178 = arith.index_cast %177 : i32 to index
    %c0_56 = arith.constant 0 : index
    %c0_57 = arith.constant 0 : index
    %179 = vector.load %arg2[%178, %c0_56, %c0_57] : memref<8x8x384xf32, #tpu.memory_space<vmem>>, vector<1x8x384xf32>
    %180 = vector.shape_cast %179 : vector<1x8x384xf32> to vector<8x384xf32>
    %c0_58 = arith.constant 0 : index
    %c0_59 = arith.constant 0 : index
    %181 = vector.load %arg4[%c0_58, %c0_59] : memref<128x384xf32, #tpu.memory_space<vmem>>, vector<128x384xf32>
    %cst_60 = arith.constant dense<0.000000e+00> : vector<8x384xf32>
    %182 = tpu.matmul %142, %181, %cst_60 {dimension_numbers = #tpu.dot_dimension_numbers<[1], [0], [0], [1], [0, 0, 1, 1], [], []>} : vector<8x128xf32>, vector<128x384xf32>, vector<8x384xf32> -> vector<8x384xf32>
    %183 = vector.extract_strided_slice %180 {offsets = [0, 0], sizes = [8, 128], strides = [1, 1]} : vector<8x384xf32> to vector<8x128xf32>
    %184 = vector.extract_strided_slice %182 {offsets = [0, 0], sizes = [8, 128], strides = [1, 1]} : vector<8x384xf32> to vector<8x128xf32>
    %185 = arith.addf %183, %184 : vector<8x128xf32>
    %186 = arith.negf %185 : vector<8x128xf32>
    %187 = math.exp %186 : vector<8x128xf32>
    %cst_61 = arith.constant 1.000000e+00 : f32
    %188 = vector.broadcast %cst_61 : f32 to vector<8x128xf32>
    %189 = arith.addf %188, %187 : vector<8x128xf32>
    %190 = arith.divf %188, %189 : vector<8x128xf32>
    %191 = vector.extract_strided_slice %180 {offsets = [0, 128], sizes = [8, 128], strides = [1, 1]} : vector<8x384xf32> to vector<8x128xf32>
    %192 = vector.extract_strided_slice %182 {offsets = [0, 128], sizes = [8, 128], strides = [1, 1]} : vector<8x384xf32> to vector<8x128xf32>
    %193 = arith.addf %191, %192 : vector<8x128xf32>
    %194 = arith.negf %193 : vector<8x128xf32>
    %195 = math.exp %194 : vector<8x128xf32>
    %cst_62 = arith.constant 1.000000e+00 : f32
    %196 = vector.broadcast %cst_62 : f32 to vector<8x128xf32>
    %197 = arith.addf %196, %195 : vector<8x128xf32>
    %198 = arith.divf %196, %197 : vector<8x128xf32>
    %199 = vector.extract_strided_slice %180 {offsets = [0, 256], sizes = [8, 128], strides = [1, 1]} : vector<8x384xf32> to vector<8x128xf32>
    %200 = vector.extract_strided_slice %182 {offsets = [0, 256], sizes = [8, 128], strides = [1, 1]} : vector<8x384xf32> to vector<8x128xf32>
    %c0_63 = arith.constant 0 : index
    %c0_64 = arith.constant 0 : index
    %201 = vector.load %arg6[%c0_63, %c0_64] : memref<1x128xf32, #tpu.memory_space<vmem>>, vector<1x128xf32>
    %202 = vector.broadcast %201 : vector<1x128xf32> to vector<8x128xf32>
    %203 = arith.addf %200, %202 : vector<8x128xf32>
    %204 = arith.mulf %190, %203 : vector<8x128xf32>
    %205 = arith.addf %199, %204 : vector<8x128xf32>
    %206 = math.tanh %205 : vector<8x128xf32>
    %cst_65 = arith.constant 1.000000e+00 : f32
    %207 = vector.broadcast %cst_65 : f32 to vector<8x128xf32>
    %208 = arith.subf %207, %198 : vector<8x128xf32>
    %209 = arith.mulf %208, %206 : vector<8x128xf32>
    %210 = arith.mulf %198, %142 : vector<8x128xf32>
    %211 = arith.addf %209, %210 : vector<8x128xf32>
    %c3_i32 = arith.constant 3 : i32
    %212 = arith.index_cast %c3_i32 : i32 to index
    %c0_66 = arith.constant 0 : index
    %c0_67 = arith.constant 0 : index
    %213 = vector.load %arg1[%212, %c0_66, %c0_67] : memref<8x8x384xf32, #tpu.memory_space<vmem>>, vector<1x8x384xf32>
    %214 = vector.shape_cast %213 : vector<1x8x384xf32> to vector<8x384xf32>
    %c0_68 = arith.constant 0 : index
    %c0_69 = arith.constant 0 : index
    %215 = vector.load %arg3[%c0_68, %c0_69] : memref<128x384xf32, #tpu.memory_space<vmem>>, vector<128x384xf32>
    %cst_70 = arith.constant dense<0.000000e+00> : vector<8x384xf32>
    %216 = tpu.matmul %176, %215, %cst_70 {dimension_numbers = #tpu.dot_dimension_numbers<[1], [0], [0], [1], [0, 0, 1, 1], [], []>} : vector<8x128xf32>, vector<128x384xf32>, vector<8x384xf32> -> vector<8x384xf32>
    %217 = vector.extract_strided_slice %214 {offsets = [0, 0], sizes = [8, 128], strides = [1, 1]} : vector<8x384xf32> to vector<8x128xf32>
    %218 = vector.extract_strided_slice %216 {offsets = [0, 0], sizes = [8, 128], strides = [1, 1]} : vector<8x384xf32> to vector<8x128xf32>
    %219 = arith.addf %217, %218 : vector<8x128xf32>
    %220 = arith.negf %219 : vector<8x128xf32>
    %221 = math.exp %220 : vector<8x128xf32>
    %cst_71 = arith.constant 1.000000e+00 : f32
    %222 = vector.broadcast %cst_71 : f32 to vector<8x128xf32>
    %223 = arith.addf %222, %221 : vector<8x128xf32>
    %224 = arith.divf %222, %223 : vector<8x128xf32>
    %225 = vector.extract_strided_slice %214 {offsets = [0, 128], sizes = [8, 128], strides = [1, 1]} : vector<8x384xf32> to vector<8x128xf32>
    %226 = vector.extract_strided_slice %216 {offsets = [0, 128], sizes = [8, 128], strides = [1, 1]} : vector<8x384xf32> to vector<8x128xf32>
    %227 = arith.addf %225, %226 : vector<8x128xf32>
    %228 = arith.negf %227 : vector<8x128xf32>
    %229 = math.exp %228 : vector<8x128xf32>
    %cst_72 = arith.constant 1.000000e+00 : f32
    %230 = vector.broadcast %cst_72 : f32 to vector<8x128xf32>
    %231 = arith.addf %230, %229 : vector<8x128xf32>
    %232 = arith.divf %230, %231 : vector<8x128xf32>
    %233 = vector.extract_strided_slice %214 {offsets = [0, 256], sizes = [8, 128], strides = [1, 1]} : vector<8x384xf32> to vector<8x128xf32>
    %234 = vector.extract_strided_slice %216 {offsets = [0, 256], sizes = [8, 128], strides = [1, 1]} : vector<8x384xf32> to vector<8x128xf32>
    %c0_73 = arith.constant 0 : index
    %c0_74 = arith.constant 0 : index
    %235 = vector.load %arg5[%c0_73, %c0_74] : memref<1x128xf32, #tpu.memory_space<vmem>>, vector<1x128xf32>
    %236 = vector.broadcast %235 : vector<1x128xf32> to vector<8x128xf32>
    %237 = arith.addf %234, %236 : vector<8x128xf32>
    %238 = arith.mulf %224, %237 : vector<8x128xf32>
    %239 = arith.addf %233, %238 : vector<8x128xf32>
    %240 = math.tanh %239 : vector<8x128xf32>
    %cst_75 = arith.constant 1.000000e+00 : f32
    %241 = vector.broadcast %cst_75 : f32 to vector<8x128xf32>
    %242 = arith.subf %241, %232 : vector<8x128xf32>
    %243 = arith.mulf %242, %240 : vector<8x128xf32>
    %244 = arith.mulf %232, %176 : vector<8x128xf32>
    %245 = arith.addf %243, %244 : vector<8x128xf32>
    %c7_i32_76 = arith.constant 7 : i32
    %246 = arith.subi %c7_i32_76, %c3_i32 : i32
    %247 = arith.index_cast %246 : i32 to index
    %c0_77 = arith.constant 0 : index
    %c0_78 = arith.constant 0 : index
    %248 = vector.load %arg2[%247, %c0_77, %c0_78] : memref<8x8x384xf32, #tpu.memory_space<vmem>>, vector<1x8x384xf32>
    %249 = vector.shape_cast %248 : vector<1x8x384xf32> to vector<8x384xf32>
    %c0_79 = arith.constant 0 : index
    %c0_80 = arith.constant 0 : index
    %250 = vector.load %arg4[%c0_79, %c0_80] : memref<128x384xf32, #tpu.memory_space<vmem>>, vector<128x384xf32>
    %cst_81 = arith.constant dense<0.000000e+00> : vector<8x384xf32>
    %251 = tpu.matmul %211, %250, %cst_81 {dimension_numbers = #tpu.dot_dimension_numbers<[1], [0], [0], [1], [0, 0, 1, 1], [], []>} : vector<8x128xf32>, vector<128x384xf32>, vector<8x384xf32> -> vector<8x384xf32>
    %252 = vector.extract_strided_slice %249 {offsets = [0, 0], sizes = [8, 128], strides = [1, 1]} : vector<8x384xf32> to vector<8x128xf32>
    %253 = vector.extract_strided_slice %251 {offsets = [0, 0], sizes = [8, 128], strides = [1, 1]} : vector<8x384xf32> to vector<8x128xf32>
    %254 = arith.addf %252, %253 : vector<8x128xf32>
    %255 = arith.negf %254 : vector<8x128xf32>
    %256 = math.exp %255 : vector<8x128xf32>
    %cst_82 = arith.constant 1.000000e+00 : f32
    %257 = vector.broadcast %cst_82 : f32 to vector<8x128xf32>
    %258 = arith.addf %257, %256 : vector<8x128xf32>
    %259 = arith.divf %257, %258 : vector<8x128xf32>
    %260 = vector.extract_strided_slice %249 {offsets = [0, 128], sizes = [8, 128], strides = [1, 1]} : vector<8x384xf32> to vector<8x128xf32>
    %261 = vector.extract_strided_slice %251 {offsets = [0, 128], sizes = [8, 128], strides = [1, 1]} : vector<8x384xf32> to vector<8x128xf32>
    %262 = arith.addf %260, %261 : vector<8x128xf32>
    %263 = arith.negf %262 : vector<8x128xf32>
    %264 = math.exp %263 : vector<8x128xf32>
    %cst_83 = arith.constant 1.000000e+00 : f32
    %265 = vector.broadcast %cst_83 : f32 to vector<8x128xf32>
    %266 = arith.addf %265, %264 : vector<8x128xf32>
    %267 = arith.divf %265, %266 : vector<8x128xf32>
    %268 = vector.extract_strided_slice %249 {offsets = [0, 256], sizes = [8, 128], strides = [1, 1]} : vector<8x384xf32> to vector<8x128xf32>
    %269 = vector.extract_strided_slice %251 {offsets = [0, 256], sizes = [8, 128], strides = [1, 1]} : vector<8x384xf32> to vector<8x128xf32>
    %c0_84 = arith.constant 0 : index
    %c0_85 = arith.constant 0 : index
    %270 = vector.load %arg6[%c0_84, %c0_85] : memref<1x128xf32, #tpu.memory_space<vmem>>, vector<1x128xf32>
    %271 = vector.broadcast %270 : vector<1x128xf32> to vector<8x128xf32>
    %272 = arith.addf %269, %271 : vector<8x128xf32>
    %273 = arith.mulf %259, %272 : vector<8x128xf32>
    %274 = arith.addf %268, %273 : vector<8x128xf32>
    %275 = math.tanh %274 : vector<8x128xf32>
    %cst_86 = arith.constant 1.000000e+00 : f32
    %276 = vector.broadcast %cst_86 : f32 to vector<8x128xf32>
    %277 = arith.subf %276, %267 : vector<8x128xf32>
    %278 = arith.mulf %277, %275 : vector<8x128xf32>
    %279 = arith.mulf %267, %211 : vector<8x128xf32>
    %280 = arith.addf %278, %279 : vector<8x128xf32>
    %c4_i32 = arith.constant 4 : i32
    %281 = arith.index_cast %c4_i32 : i32 to index
    %c0_87 = arith.constant 0 : index
    %c0_88 = arith.constant 0 : index
    %282 = vector.load %arg1[%281, %c0_87, %c0_88] : memref<8x8x384xf32, #tpu.memory_space<vmem>>, vector<1x8x384xf32>
    %283 = vector.shape_cast %282 : vector<1x8x384xf32> to vector<8x384xf32>
    %c0_89 = arith.constant 0 : index
    %c0_90 = arith.constant 0 : index
    %284 = vector.load %arg3[%c0_89, %c0_90] : memref<128x384xf32, #tpu.memory_space<vmem>>, vector<128x384xf32>
    %cst_91 = arith.constant dense<0.000000e+00> : vector<8x384xf32>
    %285 = tpu.matmul %245, %284, %cst_91 {dimension_numbers = #tpu.dot_dimension_numbers<[1], [0], [0], [1], [0, 0, 1, 1], [], []>} : vector<8x128xf32>, vector<128x384xf32>, vector<8x384xf32> -> vector<8x384xf32>
    %286 = vector.extract_strided_slice %283 {offsets = [0, 0], sizes = [8, 128], strides = [1, 1]} : vector<8x384xf32> to vector<8x128xf32>
    %287 = vector.extract_strided_slice %285 {offsets = [0, 0], sizes = [8, 128], strides = [1, 1]} : vector<8x384xf32> to vector<8x128xf32>
    %288 = arith.addf %286, %287 : vector<8x128xf32>
    %289 = arith.negf %288 : vector<8x128xf32>
    %290 = math.exp %289 : vector<8x128xf32>
    %cst_92 = arith.constant 1.000000e+00 : f32
    %291 = vector.broadcast %cst_92 : f32 to vector<8x128xf32>
    %292 = arith.addf %291, %290 : vector<8x128xf32>
    %293 = arith.divf %291, %292 : vector<8x128xf32>
    %294 = vector.extract_strided_slice %283 {offsets = [0, 128], sizes = [8, 128], strides = [1, 1]} : vector<8x384xf32> to vector<8x128xf32>
    %295 = vector.extract_strided_slice %285 {offsets = [0, 128], sizes = [8, 128], strides = [1, 1]} : vector<8x384xf32> to vector<8x128xf32>
    %296 = arith.addf %294, %295 : vector<8x128xf32>
    %297 = arith.negf %296 : vector<8x128xf32>
    %298 = math.exp %297 : vector<8x128xf32>
    %cst_93 = arith.constant 1.000000e+00 : f32
    %299 = vector.broadcast %cst_93 : f32 to vector<8x128xf32>
    %300 = arith.addf %299, %298 : vector<8x128xf32>
    %301 = arith.divf %299, %300 : vector<8x128xf32>
    %302 = vector.extract_strided_slice %283 {offsets = [0, 256], sizes = [8, 128], strides = [1, 1]} : vector<8x384xf32> to vector<8x128xf32>
    %303 = vector.extract_strided_slice %285 {offsets = [0, 256], sizes = [8, 128], strides = [1, 1]} : vector<8x384xf32> to vector<8x128xf32>
    %c0_94 = arith.constant 0 : index
    %c0_95 = arith.constant 0 : index
    %304 = vector.load %arg5[%c0_94, %c0_95] : memref<1x128xf32, #tpu.memory_space<vmem>>, vector<1x128xf32>
    %305 = vector.broadcast %304 : vector<1x128xf32> to vector<8x128xf32>
    %306 = arith.addf %303, %305 : vector<8x128xf32>
    %307 = arith.mulf %293, %306 : vector<8x128xf32>
    %308 = arith.addf %302, %307 : vector<8x128xf32>
    %309 = math.tanh %308 : vector<8x128xf32>
    %cst_96 = arith.constant 1.000000e+00 : f32
    %310 = vector.broadcast %cst_96 : f32 to vector<8x128xf32>
    %311 = arith.subf %310, %301 : vector<8x128xf32>
    %312 = arith.mulf %311, %309 : vector<8x128xf32>
    %313 = arith.mulf %301, %245 : vector<8x128xf32>
    %314 = arith.addf %312, %313 : vector<8x128xf32>
    %c7_i32_97 = arith.constant 7 : i32
    %315 = arith.subi %c7_i32_97, %c4_i32 : i32
    %316 = arith.index_cast %315 : i32 to index
    %c0_98 = arith.constant 0 : index
    %c0_99 = arith.constant 0 : index
    %317 = vector.load %arg2[%316, %c0_98, %c0_99] : memref<8x8x384xf32, #tpu.memory_space<vmem>>, vector<1x8x384xf32>
    %318 = vector.shape_cast %317 : vector<1x8x384xf32> to vector<8x384xf32>
    %c0_100 = arith.constant 0 : index
    %c0_101 = arith.constant 0 : index
    %319 = vector.load %arg4[%c0_100, %c0_101] : memref<128x384xf32, #tpu.memory_space<vmem>>, vector<128x384xf32>
    %cst_102 = arith.constant dense<0.000000e+00> : vector<8x384xf32>
    %320 = tpu.matmul %280, %319, %cst_102 {dimension_numbers = #tpu.dot_dimension_numbers<[1], [0], [0], [1], [0, 0, 1, 1], [], []>} : vector<8x128xf32>, vector<128x384xf32>, vector<8x384xf32> -> vector<8x384xf32>
    %321 = vector.extract_strided_slice %318 {offsets = [0, 0], sizes = [8, 128], strides = [1, 1]} : vector<8x384xf32> to vector<8x128xf32>
    %322 = vector.extract_strided_slice %320 {offsets = [0, 0], sizes = [8, 128], strides = [1, 1]} : vector<8x384xf32> to vector<8x128xf32>
    %323 = arith.addf %321, %322 : vector<8x128xf32>
    %324 = arith.negf %323 : vector<8x128xf32>
    %325 = math.exp %324 : vector<8x128xf32>
    %cst_103 = arith.constant 1.000000e+00 : f32
    %326 = vector.broadcast %cst_103 : f32 to vector<8x128xf32>
    %327 = arith.addf %326, %325 : vector<8x128xf32>
    %328 = arith.divf %326, %327 : vector<8x128xf32>
    %329 = vector.extract_strided_slice %318 {offsets = [0, 128], sizes = [8, 128], strides = [1, 1]} : vector<8x384xf32> to vector<8x128xf32>
    %330 = vector.extract_strided_slice %320 {offsets = [0, 128], sizes = [8, 128], strides = [1, 1]} : vector<8x384xf32> to vector<8x128xf32>
    %331 = arith.addf %329, %330 : vector<8x128xf32>
    %332 = arith.negf %331 : vector<8x128xf32>
    %333 = math.exp %332 : vector<8x128xf32>
    %cst_104 = arith.constant 1.000000e+00 : f32
    %334 = vector.broadcast %cst_104 : f32 to vector<8x128xf32>
    %335 = arith.addf %334, %333 : vector<8x128xf32>
    %336 = arith.divf %334, %335 : vector<8x128xf32>
    %337 = vector.extract_strided_slice %318 {offsets = [0, 256], sizes = [8, 128], strides = [1, 1]} : vector<8x384xf32> to vector<8x128xf32>
    %338 = vector.extract_strided_slice %320 {offsets = [0, 256], sizes = [8, 128], strides = [1, 1]} : vector<8x384xf32> to vector<8x128xf32>
    %c0_105 = arith.constant 0 : index
    %c0_106 = arith.constant 0 : index
    %339 = vector.load %arg6[%c0_105, %c0_106] : memref<1x128xf32, #tpu.memory_space<vmem>>, vector<1x128xf32>
    %340 = vector.broadcast %339 : vector<1x128xf32> to vector<8x128xf32>
    %341 = arith.addf %338, %340 : vector<8x128xf32>
    %342 = arith.mulf %328, %341 : vector<8x128xf32>
    %343 = arith.addf %337, %342 : vector<8x128xf32>
    %344 = math.tanh %343 : vector<8x128xf32>
    %cst_107 = arith.constant 1.000000e+00 : f32
    %345 = vector.broadcast %cst_107 : f32 to vector<8x128xf32>
    %346 = arith.subf %345, %336 : vector<8x128xf32>
    %347 = arith.mulf %346, %344 : vector<8x128xf32>
    %348 = arith.mulf %336, %280 : vector<8x128xf32>
    %349 = arith.addf %347, %348 : vector<8x128xf32>
    %c5_i32 = arith.constant 5 : i32
    %350 = arith.index_cast %c5_i32 : i32 to index
    %c0_108 = arith.constant 0 : index
    %c0_109 = arith.constant 0 : index
    %351 = vector.load %arg1[%350, %c0_108, %c0_109] : memref<8x8x384xf32, #tpu.memory_space<vmem>>, vector<1x8x384xf32>
    %352 = vector.shape_cast %351 : vector<1x8x384xf32> to vector<8x384xf32>
    %c0_110 = arith.constant 0 : index
    %c0_111 = arith.constant 0 : index
    %353 = vector.load %arg3[%c0_110, %c0_111] : memref<128x384xf32, #tpu.memory_space<vmem>>, vector<128x384xf32>
    %cst_112 = arith.constant dense<0.000000e+00> : vector<8x384xf32>
    %354 = tpu.matmul %314, %353, %cst_112 {dimension_numbers = #tpu.dot_dimension_numbers<[1], [0], [0], [1], [0, 0, 1, 1], [], []>} : vector<8x128xf32>, vector<128x384xf32>, vector<8x384xf32> -> vector<8x384xf32>
    %355 = vector.extract_strided_slice %352 {offsets = [0, 0], sizes = [8, 128], strides = [1, 1]} : vector<8x384xf32> to vector<8x128xf32>
    %356 = vector.extract_strided_slice %354 {offsets = [0, 0], sizes = [8, 128], strides = [1, 1]} : vector<8x384xf32> to vector<8x128xf32>
    %357 = arith.addf %355, %356 : vector<8x128xf32>
    %358 = arith.negf %357 : vector<8x128xf32>
    %359 = math.exp %358 : vector<8x128xf32>
    %cst_113 = arith.constant 1.000000e+00 : f32
    %360 = vector.broadcast %cst_113 : f32 to vector<8x128xf32>
    %361 = arith.addf %360, %359 : vector<8x128xf32>
    %362 = arith.divf %360, %361 : vector<8x128xf32>
    %363 = vector.extract_strided_slice %352 {offsets = [0, 128], sizes = [8, 128], strides = [1, 1]} : vector<8x384xf32> to vector<8x128xf32>
    %364 = vector.extract_strided_slice %354 {offsets = [0, 128], sizes = [8, 128], strides = [1, 1]} : vector<8x384xf32> to vector<8x128xf32>
    %365 = arith.addf %363, %364 : vector<8x128xf32>
    %366 = arith.negf %365 : vector<8x128xf32>
    %367 = math.exp %366 : vector<8x128xf32>
    %cst_114 = arith.constant 1.000000e+00 : f32
    %368 = vector.broadcast %cst_114 : f32 to vector<8x128xf32>
    %369 = arith.addf %368, %367 : vector<8x128xf32>
    %370 = arith.divf %368, %369 : vector<8x128xf32>
    %371 = vector.extract_strided_slice %352 {offsets = [0, 256], sizes = [8, 128], strides = [1, 1]} : vector<8x384xf32> to vector<8x128xf32>
    %372 = vector.extract_strided_slice %354 {offsets = [0, 256], sizes = [8, 128], strides = [1, 1]} : vector<8x384xf32> to vector<8x128xf32>
    %c0_115 = arith.constant 0 : index
    %c0_116 = arith.constant 0 : index
    %373 = vector.load %arg5[%c0_115, %c0_116] : memref<1x128xf32, #tpu.memory_space<vmem>>, vector<1x128xf32>
    %374 = vector.broadcast %373 : vector<1x128xf32> to vector<8x128xf32>
    %375 = arith.addf %372, %374 : vector<8x128xf32>
    %376 = arith.mulf %362, %375 : vector<8x128xf32>
    %377 = arith.addf %371, %376 : vector<8x128xf32>
    %378 = math.tanh %377 : vector<8x128xf32>
    %cst_117 = arith.constant 1.000000e+00 : f32
    %379 = vector.broadcast %cst_117 : f32 to vector<8x128xf32>
    %380 = arith.subf %379, %370 : vector<8x128xf32>
    %381 = arith.mulf %380, %378 : vector<8x128xf32>
    %382 = arith.mulf %370, %314 : vector<8x128xf32>
    %383 = arith.addf %381, %382 : vector<8x128xf32>
    %c7_i32_118 = arith.constant 7 : i32
    %384 = arith.subi %c7_i32_118, %c5_i32 : i32
    %385 = arith.index_cast %384 : i32 to index
    %c0_119 = arith.constant 0 : index
    %c0_120 = arith.constant 0 : index
    %386 = vector.load %arg2[%385, %c0_119, %c0_120] : memref<8x8x384xf32, #tpu.memory_space<vmem>>, vector<1x8x384xf32>
    %387 = vector.shape_cast %386 : vector<1x8x384xf32> to vector<8x384xf32>
    %c0_121 = arith.constant 0 : index
    %c0_122 = arith.constant 0 : index
    %388 = vector.load %arg4[%c0_121, %c0_122] : memref<128x384xf32, #tpu.memory_space<vmem>>, vector<128x384xf32>
    %cst_123 = arith.constant dense<0.000000e+00> : vector<8x384xf32>
    %389 = tpu.matmul %349, %388, %cst_123 {dimension_numbers = #tpu.dot_dimension_numbers<[1], [0], [0], [1], [0, 0, 1, 1], [], []>} : vector<8x128xf32>, vector<128x384xf32>, vector<8x384xf32> -> vector<8x384xf32>
    %390 = vector.extract_strided_slice %387 {offsets = [0, 0], sizes = [8, 128], strides = [1, 1]} : vector<8x384xf32> to vector<8x128xf32>
    %391 = vector.extract_strided_slice %389 {offsets = [0, 0], sizes = [8, 128], strides = [1, 1]} : vector<8x384xf32> to vector<8x128xf32>
    %392 = arith.addf %390, %391 : vector<8x128xf32>
    %393 = arith.negf %392 : vector<8x128xf32>
    %394 = math.exp %393 : vector<8x128xf32>
    %cst_124 = arith.constant 1.000000e+00 : f32
    %395 = vector.broadcast %cst_124 : f32 to vector<8x128xf32>
    %396 = arith.addf %395, %394 : vector<8x128xf32>
    %397 = arith.divf %395, %396 : vector<8x128xf32>
    %398 = vector.extract_strided_slice %387 {offsets = [0, 128], sizes = [8, 128], strides = [1, 1]} : vector<8x384xf32> to vector<8x128xf32>
    %399 = vector.extract_strided_slice %389 {offsets = [0, 128], sizes = [8, 128], strides = [1, 1]} : vector<8x384xf32> to vector<8x128xf32>
    %400 = arith.addf %398, %399 : vector<8x128xf32>
    %401 = arith.negf %400 : vector<8x128xf32>
    %402 = math.exp %401 : vector<8x128xf32>
    %cst_125 = arith.constant 1.000000e+00 : f32
    %403 = vector.broadcast %cst_125 : f32 to vector<8x128xf32>
    %404 = arith.addf %403, %402 : vector<8x128xf32>
    %405 = arith.divf %403, %404 : vector<8x128xf32>
    %406 = vector.extract_strided_slice %387 {offsets = [0, 256], sizes = [8, 128], strides = [1, 1]} : vector<8x384xf32> to vector<8x128xf32>
    %407 = vector.extract_strided_slice %389 {offsets = [0, 256], sizes = [8, 128], strides = [1, 1]} : vector<8x384xf32> to vector<8x128xf32>
    %c0_126 = arith.constant 0 : index
    %c0_127 = arith.constant 0 : index
    %408 = vector.load %arg6[%c0_126, %c0_127] : memref<1x128xf32, #tpu.memory_space<vmem>>, vector<1x128xf32>
    %409 = vector.broadcast %408 : vector<1x128xf32> to vector<8x128xf32>
    %410 = arith.addf %407, %409 : vector<8x128xf32>
    %411 = arith.mulf %397, %410 : vector<8x128xf32>
    %412 = arith.addf %406, %411 : vector<8x128xf32>
    %413 = math.tanh %412 : vector<8x128xf32>
    %cst_128 = arith.constant 1.000000e+00 : f32
    %414 = vector.broadcast %cst_128 : f32 to vector<8x128xf32>
    %415 = arith.subf %414, %405 : vector<8x128xf32>
    %416 = arith.mulf %415, %413 : vector<8x128xf32>
    %417 = arith.mulf %405, %349 : vector<8x128xf32>
    %418 = arith.addf %416, %417 : vector<8x128xf32>
    %c6_i32 = arith.constant 6 : i32
    %419 = arith.index_cast %c6_i32 : i32 to index
    %c0_129 = arith.constant 0 : index
    %c0_130 = arith.constant 0 : index
    %420 = vector.load %arg1[%419, %c0_129, %c0_130] : memref<8x8x384xf32, #tpu.memory_space<vmem>>, vector<1x8x384xf32>
    %421 = vector.shape_cast %420 : vector<1x8x384xf32> to vector<8x384xf32>
    %c0_131 = arith.constant 0 : index
    %c0_132 = arith.constant 0 : index
    %422 = vector.load %arg3[%c0_131, %c0_132] : memref<128x384xf32, #tpu.memory_space<vmem>>, vector<128x384xf32>
    %cst_133 = arith.constant dense<0.000000e+00> : vector<8x384xf32>
    %423 = tpu.matmul %383, %422, %cst_133 {dimension_numbers = #tpu.dot_dimension_numbers<[1], [0], [0], [1], [0, 0, 1, 1], [], []>} : vector<8x128xf32>, vector<128x384xf32>, vector<8x384xf32> -> vector<8x384xf32>
    %424 = vector.extract_strided_slice %421 {offsets = [0, 0], sizes = [8, 128], strides = [1, 1]} : vector<8x384xf32> to vector<8x128xf32>
    %425 = vector.extract_strided_slice %423 {offsets = [0, 0], sizes = [8, 128], strides = [1, 1]} : vector<8x384xf32> to vector<8x128xf32>
    %426 = arith.addf %424, %425 : vector<8x128xf32>
    %427 = arith.negf %426 : vector<8x128xf32>
    %428 = math.exp %427 : vector<8x128xf32>
    %cst_134 = arith.constant 1.000000e+00 : f32
    %429 = vector.broadcast %cst_134 : f32 to vector<8x128xf32>
    %430 = arith.addf %429, %428 : vector<8x128xf32>
    %431 = arith.divf %429, %430 : vector<8x128xf32>
    %432 = vector.extract_strided_slice %421 {offsets = [0, 128], sizes = [8, 128], strides = [1, 1]} : vector<8x384xf32> to vector<8x128xf32>
    %433 = vector.extract_strided_slice %423 {offsets = [0, 128], sizes = [8, 128], strides = [1, 1]} : vector<8x384xf32> to vector<8x128xf32>
    %434 = arith.addf %432, %433 : vector<8x128xf32>
    %435 = arith.negf %434 : vector<8x128xf32>
    %436 = math.exp %435 : vector<8x128xf32>
    %cst_135 = arith.constant 1.000000e+00 : f32
    %437 = vector.broadcast %cst_135 : f32 to vector<8x128xf32>
    %438 = arith.addf %437, %436 : vector<8x128xf32>
    %439 = arith.divf %437, %438 : vector<8x128xf32>
    %440 = vector.extract_strided_slice %421 {offsets = [0, 256], sizes = [8, 128], strides = [1, 1]} : vector<8x384xf32> to vector<8x128xf32>
    %441 = vector.extract_strided_slice %423 {offsets = [0, 256], sizes = [8, 128], strides = [1, 1]} : vector<8x384xf32> to vector<8x128xf32>
    %c0_136 = arith.constant 0 : index
    %c0_137 = arith.constant 0 : index
    %442 = vector.load %arg5[%c0_136, %c0_137] : memref<1x128xf32, #tpu.memory_space<vmem>>, vector<1x128xf32>
    %443 = vector.broadcast %442 : vector<1x128xf32> to vector<8x128xf32>
    %444 = arith.addf %441, %443 : vector<8x128xf32>
    %445 = arith.mulf %431, %444 : vector<8x128xf32>
    %446 = arith.addf %440, %445 : vector<8x128xf32>
    %447 = math.tanh %446 : vector<8x128xf32>
    %cst_138 = arith.constant 1.000000e+00 : f32
    %448 = vector.broadcast %cst_138 : f32 to vector<8x128xf32>
    %449 = arith.subf %448, %439 : vector<8x128xf32>
    %450 = arith.mulf %449, %447 : vector<8x128xf32>
    %451 = arith.mulf %439, %383 : vector<8x128xf32>
    %452 = arith.addf %450, %451 : vector<8x128xf32>
    %c7_i32_139 = arith.constant 7 : i32
    %453 = arith.subi %c7_i32_139, %c6_i32 : i32
    %454 = arith.index_cast %453 : i32 to index
    %c0_140 = arith.constant 0 : index
    %c0_141 = arith.constant 0 : index
    %455 = vector.load %arg2[%454, %c0_140, %c0_141] : memref<8x8x384xf32, #tpu.memory_space<vmem>>, vector<1x8x384xf32>
    %456 = vector.shape_cast %455 : vector<1x8x384xf32> to vector<8x384xf32>
    %c0_142 = arith.constant 0 : index
    %c0_143 = arith.constant 0 : index
    %457 = vector.load %arg4[%c0_142, %c0_143] : memref<128x384xf32, #tpu.memory_space<vmem>>, vector<128x384xf32>
    %cst_144 = arith.constant dense<0.000000e+00> : vector<8x384xf32>
    %458 = tpu.matmul %418, %457, %cst_144 {dimension_numbers = #tpu.dot_dimension_numbers<[1], [0], [0], [1], [0, 0, 1, 1], [], []>} : vector<8x128xf32>, vector<128x384xf32>, vector<8x384xf32> -> vector<8x384xf32>
    %459 = vector.extract_strided_slice %456 {offsets = [0, 0], sizes = [8, 128], strides = [1, 1]} : vector<8x384xf32> to vector<8x128xf32>
    %460 = vector.extract_strided_slice %458 {offsets = [0, 0], sizes = [8, 128], strides = [1, 1]} : vector<8x384xf32> to vector<8x128xf32>
    %461 = arith.addf %459, %460 : vector<8x128xf32>
    %462 = arith.negf %461 : vector<8x128xf32>
    %463 = math.exp %462 : vector<8x128xf32>
    %cst_145 = arith.constant 1.000000e+00 : f32
    %464 = vector.broadcast %cst_145 : f32 to vector<8x128xf32>
    %465 = arith.addf %464, %463 : vector<8x128xf32>
    %466 = arith.divf %464, %465 : vector<8x128xf32>
    %467 = vector.extract_strided_slice %456 {offsets = [0, 128], sizes = [8, 128], strides = [1, 1]} : vector<8x384xf32> to vector<8x128xf32>
    %468 = vector.extract_strided_slice %458 {offsets = [0, 128], sizes = [8, 128], strides = [1, 1]} : vector<8x384xf32> to vector<8x128xf32>
    %469 = arith.addf %467, %468 : vector<8x128xf32>
    %470 = arith.negf %469 : vector<8x128xf32>
    %471 = math.exp %470 : vector<8x128xf32>
    %cst_146 = arith.constant 1.000000e+00 : f32
    %472 = vector.broadcast %cst_146 : f32 to vector<8x128xf32>
    %473 = arith.addf %472, %471 : vector<8x128xf32>
    %474 = arith.divf %472, %473 : vector<8x128xf32>
    %475 = vector.extract_strided_slice %456 {offsets = [0, 256], sizes = [8, 128], strides = [1, 1]} : vector<8x384xf32> to vector<8x128xf32>
    %476 = vector.extract_strided_slice %458 {offsets = [0, 256], sizes = [8, 128], strides = [1, 1]} : vector<8x384xf32> to vector<8x128xf32>
    %c0_147 = arith.constant 0 : index
    %c0_148 = arith.constant 0 : index
    %477 = vector.load %arg6[%c0_147, %c0_148] : memref<1x128xf32, #tpu.memory_space<vmem>>, vector<1x128xf32>
    %478 = vector.broadcast %477 : vector<1x128xf32> to vector<8x128xf32>
    %479 = arith.addf %476, %478 : vector<8x128xf32>
    %480 = arith.mulf %466, %479 : vector<8x128xf32>
    %481 = arith.addf %475, %480 : vector<8x128xf32>
    %482 = math.tanh %481 : vector<8x128xf32>
    %cst_149 = arith.constant 1.000000e+00 : f32
    %483 = vector.broadcast %cst_149 : f32 to vector<8x128xf32>
    %484 = arith.subf %483, %474 : vector<8x128xf32>
    %485 = arith.mulf %484, %482 : vector<8x128xf32>
    %486 = arith.mulf %474, %418 : vector<8x128xf32>
    %487 = arith.addf %485, %486 : vector<8x128xf32>
    %c7_i32_150 = arith.constant 7 : i32
    %488 = arith.index_cast %c7_i32_150 : i32 to index
    %c0_151 = arith.constant 0 : index
    %c0_152 = arith.constant 0 : index
    %489 = vector.load %arg1[%488, %c0_151, %c0_152] : memref<8x8x384xf32, #tpu.memory_space<vmem>>, vector<1x8x384xf32>
    %490 = vector.shape_cast %489 : vector<1x8x384xf32> to vector<8x384xf32>
    %c0_153 = arith.constant 0 : index
    %c0_154 = arith.constant 0 : index
    %491 = vector.load %arg3[%c0_153, %c0_154] : memref<128x384xf32, #tpu.memory_space<vmem>>, vector<128x384xf32>
    %cst_155 = arith.constant dense<0.000000e+00> : vector<8x384xf32>
    %492 = tpu.matmul %452, %491, %cst_155 {dimension_numbers = #tpu.dot_dimension_numbers<[1], [0], [0], [1], [0, 0, 1, 1], [], []>} : vector<8x128xf32>, vector<128x384xf32>, vector<8x384xf32> -> vector<8x384xf32>
    %493 = vector.extract_strided_slice %490 {offsets = [0, 0], sizes = [8, 128], strides = [1, 1]} : vector<8x384xf32> to vector<8x128xf32>
    %494 = vector.extract_strided_slice %492 {offsets = [0, 0], sizes = [8, 128], strides = [1, 1]} : vector<8x384xf32> to vector<8x128xf32>
    %495 = arith.addf %493, %494 : vector<8x128xf32>
    %496 = arith.negf %495 : vector<8x128xf32>
    %497 = math.exp %496 : vector<8x128xf32>
    %cst_156 = arith.constant 1.000000e+00 : f32
    %498 = vector.broadcast %cst_156 : f32 to vector<8x128xf32>
    %499 = arith.addf %498, %497 : vector<8x128xf32>
    %500 = arith.divf %498, %499 : vector<8x128xf32>
    %501 = vector.extract_strided_slice %490 {offsets = [0, 128], sizes = [8, 128], strides = [1, 1]} : vector<8x384xf32> to vector<8x128xf32>
    %502 = vector.extract_strided_slice %492 {offsets = [0, 128], sizes = [8, 128], strides = [1, 1]} : vector<8x384xf32> to vector<8x128xf32>
    %503 = arith.addf %501, %502 : vector<8x128xf32>
    %504 = arith.negf %503 : vector<8x128xf32>
    %505 = math.exp %504 : vector<8x128xf32>
    %cst_157 = arith.constant 1.000000e+00 : f32
    %506 = vector.broadcast %cst_157 : f32 to vector<8x128xf32>
    %507 = arith.addf %506, %505 : vector<8x128xf32>
    %508 = arith.divf %506, %507 : vector<8x128xf32>
    %509 = vector.extract_strided_slice %490 {offsets = [0, 256], sizes = [8, 128], strides = [1, 1]} : vector<8x384xf32> to vector<8x128xf32>
    %510 = vector.extract_strided_slice %492 {offsets = [0, 256], sizes = [8, 128], strides = [1, 1]} : vector<8x384xf32> to vector<8x128xf32>
    %c0_158 = arith.constant 0 : index
    %c0_159 = arith.constant 0 : index
    %511 = vector.load %arg5[%c0_158, %c0_159] : memref<1x128xf32, #tpu.memory_space<vmem>>, vector<1x128xf32>
    %512 = vector.broadcast %511 : vector<1x128xf32> to vector<8x128xf32>
    %513 = arith.addf %510, %512 : vector<8x128xf32>
    %514 = arith.mulf %500, %513 : vector<8x128xf32>
    %515 = arith.addf %509, %514 : vector<8x128xf32>
    %516 = math.tanh %515 : vector<8x128xf32>
    %cst_160 = arith.constant 1.000000e+00 : f32
    %517 = vector.broadcast %cst_160 : f32 to vector<8x128xf32>
    %518 = arith.subf %517, %508 : vector<8x128xf32>
    %519 = arith.mulf %518, %516 : vector<8x128xf32>
    %520 = arith.mulf %508, %452 : vector<8x128xf32>
    %521 = arith.addf %519, %520 : vector<8x128xf32>
    %c7_i32_161 = arith.constant 7 : i32
    %522 = arith.subi %c7_i32_161, %c7_i32_150 : i32
    %523 = arith.index_cast %522 : i32 to index
    %c0_162 = arith.constant 0 : index
    %c0_163 = arith.constant 0 : index
    %524 = vector.load %arg2[%523, %c0_162, %c0_163] : memref<8x8x384xf32, #tpu.memory_space<vmem>>, vector<1x8x384xf32>
    %525 = vector.shape_cast %524 : vector<1x8x384xf32> to vector<8x384xf32>
    %c0_164 = arith.constant 0 : index
    %c0_165 = arith.constant 0 : index
    %526 = vector.load %arg4[%c0_164, %c0_165] : memref<128x384xf32, #tpu.memory_space<vmem>>, vector<128x384xf32>
    %cst_166 = arith.constant dense<0.000000e+00> : vector<8x384xf32>
    %527 = tpu.matmul %487, %526, %cst_166 {dimension_numbers = #tpu.dot_dimension_numbers<[1], [0], [0], [1], [0, 0, 1, 1], [], []>} : vector<8x128xf32>, vector<128x384xf32>, vector<8x384xf32> -> vector<8x384xf32>
    %528 = vector.extract_strided_slice %525 {offsets = [0, 0], sizes = [8, 128], strides = [1, 1]} : vector<8x384xf32> to vector<8x128xf32>
    %529 = vector.extract_strided_slice %527 {offsets = [0, 0], sizes = [8, 128], strides = [1, 1]} : vector<8x384xf32> to vector<8x128xf32>
    %530 = arith.addf %528, %529 : vector<8x128xf32>
    %531 = arith.negf %530 : vector<8x128xf32>
    %532 = math.exp %531 : vector<8x128xf32>
    %cst_167 = arith.constant 1.000000e+00 : f32
    %533 = vector.broadcast %cst_167 : f32 to vector<8x128xf32>
    %534 = arith.addf %533, %532 : vector<8x128xf32>
    %535 = arith.divf %533, %534 : vector<8x128xf32>
    %536 = vector.extract_strided_slice %525 {offsets = [0, 128], sizes = [8, 128], strides = [1, 1]} : vector<8x384xf32> to vector<8x128xf32>
    %537 = vector.extract_strided_slice %527 {offsets = [0, 128], sizes = [8, 128], strides = [1, 1]} : vector<8x384xf32> to vector<8x128xf32>
    %538 = arith.addf %536, %537 : vector<8x128xf32>
    %539 = arith.negf %538 : vector<8x128xf32>
    %540 = math.exp %539 : vector<8x128xf32>
    %cst_168 = arith.constant 1.000000e+00 : f32
    %541 = vector.broadcast %cst_168 : f32 to vector<8x128xf32>
    %542 = arith.addf %541, %540 : vector<8x128xf32>
    %543 = arith.divf %541, %542 : vector<8x128xf32>
    %544 = vector.extract_strided_slice %525 {offsets = [0, 256], sizes = [8, 128], strides = [1, 1]} : vector<8x384xf32> to vector<8x128xf32>
    %545 = vector.extract_strided_slice %527 {offsets = [0, 256], sizes = [8, 128], strides = [1, 1]} : vector<8x384xf32> to vector<8x128xf32>
    %c0_169 = arith.constant 0 : index
    %c0_170 = arith.constant 0 : index
    %546 = vector.load %arg6[%c0_169, %c0_170] : memref<1x128xf32, #tpu.memory_space<vmem>>, vector<1x128xf32>
    %547 = vector.broadcast %546 : vector<1x128xf32> to vector<8x128xf32>
    %548 = arith.addf %545, %547 : vector<8x128xf32>
    %549 = arith.mulf %535, %548 : vector<8x128xf32>
    %550 = arith.addf %544, %549 : vector<8x128xf32>
    %551 = math.tanh %550 : vector<8x128xf32>
    %cst_171 = arith.constant 1.000000e+00 : f32
    %552 = vector.broadcast %cst_171 : f32 to vector<8x128xf32>
    %553 = arith.subf %552, %543 : vector<8x128xf32>
    %554 = arith.mulf %553, %551 : vector<8x128xf32>
    %555 = arith.mulf %543, %487 : vector<8x128xf32>
    %556 = arith.addf %554, %555 : vector<8x128xf32>
    %c8_i32 = arith.constant 8 : i32
    %c0_172 = arith.constant 0 : index
    %c0_173 = arith.constant 0 : index
    %557 = vector.load %arg8[%c0_172, %c0_173] : memref<8x128xf32, #tpu.memory_space<vmem>>, vector<8x128xf32>
    tpu.vector_store %arg8[%c0_172, %c0_173], %521 {strides = array<i32>} : memref<8x128xf32, #tpu.memory_space<vmem>>, vector<8x128xf32>,
    %c0_174 = arith.constant 0 : index
    %c0_175 = arith.constant 0 : index
    %558 = vector.load %arg9[%c0_174, %c0_175] : memref<8x128xf32, #tpu.memory_space<vmem>>, vector<8x128xf32>
    tpu.vector_store %arg9[%c0_174, %c0_175], %556 {strides = array<i32>} : memref<8x128xf32, #tpu.memory_space<vmem>>, vector<8x128xf32>,
    %c0_i32_176 = arith.constant 0 : i32
    %559 = arith.cmpi eq, %arg0, %c0_i32_176 : i32
    %560 = arith.extui %559 : i1 to i32
    %c0_i32_177 = arith.constant 0 : i32
    %561 = arith.cmpi ne, %560, %c0_i32_177 : i32
    scf.if %561 {
      %c0_178 = arith.constant 0 : index
      %c0_179 = arith.constant 0 : index
      %562 = vector.load %arg8[%c0_178, %c0_179] : memref<8x128xf32, #tpu.memory_space<vmem>>, vector<8x128xf32>
      %c0_180 = arith.constant 0 : index
      %c0_181 = arith.constant 0 : index
      %563 = vector.load %arg7[%c0_180, %c0_181] : memref<8x256xf32, #tpu.memory_space<vmem>>, vector<8x128xf32>
      tpu.vector_store %arg7[%c0_180, %c0_181], %562 {strides = array<i32>} : memref<8x256xf32, #tpu.memory_space<vmem>>, vector<8x128xf32>,
      %c0_182 = arith.constant 0 : index
      %c0_183 = arith.constant 0 : index
      %564 = vector.load %arg9[%c0_182, %c0_183] : memref<8x128xf32, #tpu.memory_space<vmem>>, vector<8x128xf32>
      %c0_184 = arith.constant 0 : index
      %c128 = arith.constant 128 : index
      %565 = vector.load %arg7[%c0_184, %c128] : memref<8x256xf32, #tpu.memory_space<vmem>>, vector<8x128xf32>
      tpu.vector_store %arg7[%c0_184, %c128], %564 {strides = array<i32>} : memref<8x256xf32, #tpu.memory_space<vmem>>, vector<8x128xf32>,
    } else {
    }
    return
  }
  func.func @transform_0(%arg0: i32) -> (i32, i32, i32) {
    %c0_i32 = arith.constant 0 : i32
    %c0_i32_0 = arith.constant 0 : i32
    %c0_i32_1 = arith.constant 0 : i32
    return %arg0, %c0_i32, %c0_i32_0 : i32, i32, i32
  }
  func.func @transform_1(%arg0: i32) -> (i32, i32, i32) {
    %c0_i32 = arith.constant 0 : i32
    %0 = arith.subi %c0_i32, %arg0 : i32
    %c0_i32_0 = arith.constant 0 : i32
    %c0_i32_1 = arith.constant 0 : i32
    %c0_i32_2 = arith.constant 0 : i32
    return %0, %c0_i32_0, %c0_i32_1 : i32, i32, i32
  }
  func.func @transform_2(%arg0: i32) -> (i32, i32) {
    %c0_i32 = arith.constant 0 : i32
    %c0_i32_0 = arith.constant 0 : i32
    %c0_i32_1 = arith.constant 0 : i32
    return %c0_i32, %c0_i32_0 : i32, i32
  }
  func.func @transform_3(%arg0: i32) -> (i32, i32) {
    %c0_i32 = arith.constant 0 : i32
    %c0_i32_0 = arith.constant 0 : i32
    %c0_i32_1 = arith.constant 0 : i32
    return %c0_i32, %c0_i32_0 : i32, i32
  }
  func.func @transform_4(%arg0: i32) -> (i32, i32) {
    %c0_i32 = arith.constant 0 : i32
    %c0_i32_0 = arith.constant 0 : i32
    %c0_i32_1 = arith.constant 0 : i32
    return %c0_i32, %c0_i32_0 : i32, i32
  }
  func.func @transform_5(%arg0: i32) -> (i32, i32) {
    %c0_i32 = arith.constant 0 : i32
    %c0_i32_0 = arith.constant 0 : i32
    %c0_i32_1 = arith.constant 0 : i32
    return %c0_i32, %c0_i32_0 : i32, i32
  }
  func.func @transform_6(%arg0: i32) -> (i32, i32) {
    %c0_i32 = arith.constant 0 : i32
    %c0_i32_0 = arith.constant 0 : i32
    %c0_i32_1 = arith.constant 0 : i32
    return %c0_i32, %c0_i32_0 : i32, i32
  }
}

</mosaic_0001>

<bundles_post_ra>
// kernel: encoder_forward.1
= control target key start
LH: loop header
LB: loop body
LE: loop exit
PB: predicated region body
PF: predicated region fallthrough
CT: control target
= control target key end

     0   :  { %v6075_v3 = vmov 0.0|0.0   ;;  %v6073_v4 = vmov 0.0   ;;  %vm4826_vm0 = vmmov 0   ;;  %s6066_s2 = inlined_call_operand.vmem [shape: f32[128,384], index: 2, kind: input, shape index: {}]   ;;  %s6067_s3 = inlined_call_operand.vmem [shape: f32[128,384], index: 3, kind: input, shape index: {}]   ;;  %s6068_s0 = inlined_call_operand.vmem [shape: f32[8,8,384], index: 0, kind: input, shape index: {}]   ;;  %s6069_s4 = inlined_call_operand.vmem [shape: f32[1,128], index: 4, kind: input, shape index: {}]   ;;  %s6070_s1 = inlined_call_operand.vmem [shape: f32[8,8,384], index: 1, kind: input, shape index: {}]   ;;  %s6071_s5 = inlined_call_operand.vmem [shape: f32[1,128], index: 5, kind: input, shape index: {}]   ;;  %s6072_s6 = inlined_call_operand.vmem [shape: f32[8,256], index: 6, kind: output, shape index: {}]  }
   0x1   :  { %v60_v0 = vld [vmem:[%s6066_s2 + $0x8] sm:$0xff]  ;;  %v63_v1 = vld [vmem:[%s6066_s2 + $0x20] sm:$0xff]  ;;  %3795 = vmatprep.subr.bf16.mxu1 %v6075_v3  ;;  %171 = vmatprep.mubr.f32.mxu0 %v6073_v4  ;;  %v62_v6 = vld [vmem:[%s6066_s2 + $0x18] sm:$0xff] }
   0x2   :  { %v59_v2 = vld [vmem:[%s6066_s2] sm:$0xff]  ;;  %v4873_v5 = vpack.c.bf16 %v63_v1, %v60_v0  ;;  %v66_v7 = vld [vmem:[%s6066_s2 + $0x38] sm:$0xff]  ;;  %v69_v8 = vld [vmem:[%s6066_s2 + $0x50] sm:$0xff]  ;;  %3235 = vmatprep.mubr.msk.f32.mxu1 %vm4826_vm0, %v6073_v4 }
   0x3   :  { %v4886_v9 = vpack.c.bf16 %v62_v6, %v59_v2  ;;  %v4888_v10 = vpack.c.bf16 %v69_v8, %v66_v7  ;;  %v65_v11 = vld [vmem:[%s6066_s2 + $0x30] sm:$0xff]  ;;  %v68_v12 = vld [vmem:[%s6066_s2 + $0x48] sm:$0xff]  ;;  %v75_v14 = vld [vmem:[%s6066_s2 + $0x80] sm:$0xff] }
   0x4   :  { %v72_v13 = vld [vmem:[%s6066_s2 + $0x68] sm:$0xff]  ;;  %3764 = vmatprep.subr.bf16.mxu0 %v4873_v5  ;;  %v4904_v15 = vpack.c.bf16 %v68_v12, %v65_v11  ;;  %v71_v17 = vld [vmem:[%s6066_s2 + $0x60] sm:$0xff]  ;;  %v74_v18 = vld [vmem:[%s6066_s2 + $0x78] sm:$0xff] }
   0x5   :  { %3766 = vmatpush1.bf16.msra.mxu0 %v4886_v9  ;;  %v4907_v16 = vpack.c.bf16 %v75_v14, %v72_v13  ;;  %v78_v19 = vld [vmem:[%s6066_s2 + $0x98] sm:$0xff]  ;;  %v81_v20 = vld [vmem:[%s6066_s2 + $0xb0] sm:$0xff]  ;;  %v4922_v21 = vpack.c.bf16 %v74_v18, %v71_v17  ;;  %v80_v24 = vld [vmem:[%s6066_s2 + $0xa8] sm:$0xff] }
   0x6   :  { %3768 = vmatprep.subr.bf16.mxu0 %v4888_v10  ;;  %v77_v22 = vld [vmem:[%s6066_s2 + $0x90] sm:$0xff]  ;;  %v4928_v23 = vpack.c.bf16 %v81_v20, %v78_v19  ;;  %v64_v26 = vld [vmem:[%s6066_s2 + $0x28] sm:$0xff]  ;;  %v87_v28 = vld [vmem:[%s6066_s2 + $0xe0] sm:$0xff] }
   0x7   :  { %v61_v25 = vld [vmem:[%s6066_s2 + $0x10] sm:$0xff]  ;;  %v84_v27 = vld [vmem:[%s6066_s2 + $0xc8] sm:$0xff]  ;;  %v67_v30 = vld [vmem:[%s6066_s2 + $0x40] sm:$0xff]  ;;  %v4954_v32 = vpack.c.bf16 %v80_v24, %v77_v22 }
   0x8   :  { %v4945_v29 = vpack.c.bf16 %v64_v26, %v61_v25  ;;  %v70_v31 = vld [vmem:[%s6066_s2 + $0x58] sm:$0xff]  ;;  %v83_v33 = vld [vmem:[%s6066_s2 + $0xc0] sm:$0xff]  ;;  %v4963_v35 = vpack.c.bf16 %v87_v28, %v84_v27  ;;  %v73_v37 = vld [vmem:[%s6066_s2 + $0x70] sm:$0xff] }
   0x9   :  { %3770 = vmatpush1.bf16.msra.mxu0 %v4904_v15  ;;  %v4960_v34 = vpack.c.bf16 %v70_v31, %v67_v30  ;;  %v86_v36 = vld [vmem:[%s6066_s2 + $0xd8] sm:$0xff]  ;;  %v76_v38 = vld [vmem:[%s6066_s2 + $0x88] sm:$0xff]  ;;  %v93_v40 = vld [vmem:[%s6066_s2 + $0x110] sm:$0xff] }
   0xa   :  { %3772 = vmatprep.subr.bf16.mxu0 %v4907_v16  ;;  %3797 = vmatpush3.bf16.msra.mxu1 %v4945_v29  ;;  %v90_v39 = vld [vmem:[%s6066_s2 + $0xf8] sm:$0xff]  ;;  %v4982_v41 = vpack.c.bf16 %v86_v36, %v83_v33  ;;  %v89_v42 = vld [vmem:[%s6066_s2 + $0xf0] sm:$0xff]  ;;  %v4988_v43 = vpack.c.bf16 %v76_v38, %v73_v37  ;;  %v92_v45 = vld [vmem:[%s6066_s2 + $0x108] sm:$0xff] }
   0xb   :  { %3798 = vmatprep.subr.bf16.mxu1 %v6075_v3  ;;  %v4991_v44 = vpack.c.bf16 %v93_v40, %v90_v39  ;;  %v79_v46 = vld [vmem:[%s6066_s2 + $0xa0] sm:$0xff]  ;;  %v82_v47 = vld [vmem:[%s6066_s2 + $0xb8] sm:$0xff]  ;;  %v96_v48 = vld [vmem:[%s6066_s2 + $0x128] sm:$0xff]  ;;  %v5010_v50 = vpack.c.bf16 %v92_v45, %v89_v42 }
   0xc   :  { %v99_v49 = vld [vmem:[%s6066_s2 + $0x140] sm:$0xff]  ;;  %v5016_v52 = vpack.c.bf16 %v82_v47, %v79_v46  ;;  %v98_v54 = vld [vmem:[%s6066_s2 + $0x138] sm:$0xff]  ;;  %v85_v55 = vld [vmem:[%s6066_s2 + $0xd0] sm:$0xff] }
   0xd   :  { %3774 = vmatpush1.bf16.msra.mxu0 %v4922_v21  ;;  %v95_v51 = vld [vmem:[%s6066_s2 + $0x120] sm:$0xff]  ;;  %v5019_v53 = vpack.c.bf16 %v99_v49, %v96_v48  ;;  %v88_v56 = vld [vmem:[%s6066_s2 + $0xe8] sm:$0xff]  ;;  %v102_v57 = vld [vmem:[%s6066_s2 + $0x158] sm:$0xff] }
   0xe   :  { %3776 = vmatprep.subr.bf16.mxu0 %v4928_v23  ;;  %3800 = vmatpush3.bf16.msra.mxu1 %v4960_v34  ;;  %v105_v58 = vld [vmem:[%s6066_s2 + $0x170] sm:$0xff]  ;;  %v5038_v59 = vpack.c.bf16 %v98_v54, %v95_v51  ;;  %v5044_v61 = vpack.c.bf16 %v88_v56, %v85_v55  ;;  %v104_v63 = vld [vmem:[%s6066_s2 + $0x168] sm:$0xff]  ;;  %v91_v0 = vld [vmem:[%s6066_s2 + $0x100] sm:$0xff] }
   0xf   :  { %3801 = vmatprep.subr.bf16.mxu1 %v6075_v3  ;;  %v101_v60 = vld [vmem:[%s6066_s2 + $0x150] sm:$0xff]  ;;  %v5047_v62 = vpack.c.bf16 %v105_v58, %v102_v57  ;;  %v94_v1 = vld [vmem:[%s6066_s2 + $0x118] sm:$0xff]  ;;  %v282_v2 = vld [vmem:[%s6067_s3 + $0x8] sm:$0xff] }
  0x10   :  { %6094 = vst [vmem:[#allocation4_spill] sm:$0xff] %v5038_v59  ;;  %v285_v6 = vld [vmem:[%s6067_s3 + $0x20] sm:$0xff]  ;;  %v5066_v7 = vpack.c.bf16 %v104_v63, %v101_v60  ;;  %v5072_v11 = vpack.c.bf16 %v94_v1, %v91_v0  ;;  %v284_v13 = vld [vmem:[%s6067_s3 + $0x18] sm:$0xff]  ;;  %v97_v14 = vld [vmem:[%s6066_s2 + $0x130] sm:$0xff] }
  0x11   :  { %3778 = vmatpush1.bf16.msra.mxu0 %v4954_v32  ;;  %6095 = vst [vmem:[#allocation5_spill] sm:$0xff] %v5047_v62  ;;  %v281_v8 = vld [vmem:[%s6067_s3] sm:$0xff]  ;;  %v5075_v12 = vpack.c.bf16 %v285_v6, %v282_v2  ;;  %v100_v17 = vld [vmem:[%s6066_s2 + $0x148] sm:$0xff]  ;;  %v288_v18 = vld [vmem:[%s6067_s3 + $0x38] sm:$0xff] }
  0x12   :  { %3780 = vmatprep.subr.bf16.mxu0 %v4963_v35  ;;  %3803 = vmatpush3.bf16.msra.mxu1 %v4988_v43  ;;  %6096 = vst [vmem:[#allocation6_spill] sm:$0xff] %v5066_v7  ;;  %v291_v19 = vld [vmem:[%s6067_s3 + $0x50] sm:$0xff]  ;;  %v5094_v20 = vpack.c.bf16 %v284_v13, %v281_v8  ;;  %v5100_v24 = vpack.c.bf16 %v100_v17, %v97_v14  ;;  %v290_v26 = vld [vmem:[%s6067_s3 + $0x48] sm:$0xff]  ;;  %v103_v27 = vld [vmem:[%s6066_s2 + $0x160] sm:$0xff] }
  0x13   :  { %3804 = vmatprep.subr.bf16.mxu1 %v6075_v3  ;;  %6097 = vst [vmem:[#allocation7_spill] sm:$0xff] %v5075_v12  ;;  %v287_v22 = vld [vmem:[%s6067_s3 + $0x30] sm:$0xff]  ;;  %v5103_v25 = vpack.c.bf16 %v291_v19, %v288_v18  ;;  %v106_v28 = vld [vmem:[%s6066_s2 + $0x178] sm:$0xff]  ;;  %v294_v30 = vld [vmem:[%s6067_s3 + $0x68] sm:$0xff] }
  0x14   :  { %6098 = vst [vmem:[#allocation8_spill] sm:$0xff] %v5100_v24  ;;  %v297_v31 = vld [vmem:[%s6067_s3 + $0x80] sm:$0xff]  ;;  %v5123_v33 = vpack.c.bf16 %v290_v26, %v287_v22  ;;  %v5129_v37 = vpack.c.bf16 %v106_v28, %v103_v27  ;;  %v296_v39 = vld [vmem:[%s6067_s3 + $0x78] sm:$0xff]  ;;  %v283_v40 = vld [vmem:[%s6067_s3 + $0x10] sm:$0xff] }
  0x15   :  { %3782 = vmatpush1.bf16.msra.mxu0 %v4982_v41  ;;  %v293_v36 = vld [vmem:[%s6067_s3 + $0x60] sm:$0xff]  ;;  %v5132_v38 = vpack.c.bf16 %v297_v31, %v294_v30  ;;  %v286_v42 = vld [vmem:[%s6067_s3 + $0x28] sm:$0xff]  ;;  %v300_v45 = vld [vmem:[%s6067_s3 + $0x98] sm:$0xff] }
  0x16   :  { %3784 = vmatprep.subr.bf16.mxu0 %v4991_v44  ;;  %3806 = vmatpush3.bf16.msra.mxu1 %v5016_v52  ;;  %6099 = vst [vmem:[#allocation9_spill] sm:$0xff] %v5129_v37  ;;  %v303_v46 = vld [vmem:[%s6067_s3 + $0xb0] sm:$0xff]  ;;  %v5152_v47 = vpack.c.bf16 %v296_v39, %v293_v36  ;;  %v5158_v49 = vpack.c.bf16 %v286_v42, %v283_v40  ;;  %v302_v54 = vld [vmem:[%s6067_s3 + $0xa8] sm:$0xff]  ;;  %v289_v55 = vld [vmem:[%s6067_s3 + $0x40] sm:$0xff] }
  0x17   :  { %3807 = vmatprep.subr.bf16.mxu1 %v6075_v3  ;;  %v299_v48 = vld [vmem:[%s6067_s3 + $0x90] sm:$0xff]  ;;  %v5161_v51 = vpack.c.bf16 %v303_v46, %v300_v45  ;;  %v292_v56 = vld [vmem:[%s6067_s3 + $0x58] sm:$0xff]  ;;  %v306_v57 = vld [vmem:[%s6067_s3 + $0xc8] sm:$0xff] }
  0x18   :  { %v309_v58 = vld [vmem:[%s6067_s3 + $0xe0] sm:$0xff]  ;;  %v5181_v60 = vpack.c.bf16 %v302_v54, %v299_v48  ;;  %v5187_v0 = vpack.c.bf16 %v292_v56, %v289_v55  ;;  %v308_v2 = vld [vmem:[%s6067_s3 + $0xd8] sm:$0xff]  ;;  %v295_v6 = vld [vmem:[%s6067_s3 + $0x70] sm:$0xff] }
  0x19   :  { %3786 = vmatpush1.bf16.msra.mxu0 %v5010_v50  ;;  %v305_v63 = vld [vmem:[%s6067_s3 + $0xc0] sm:$0xff]  ;;  %v5190_v1 = vpack.c.bf16 %v309_v58, %v306_v57  ;;  %v298_v8 = vld [vmem:[%s6067_s3 + $0x88] sm:$0xff]  ;;  %v312_v13 = vld [vmem:[%s6067_s3 + $0xf8] sm:$0xff] }
  0x1a   :  { %3788 = vmatprep.subr.bf16.mxu0 %v5019_v53  ;;  %3809 = vmatpush3.bf16.msra.mxu1 %v5044_v61  ;;  %v315_v14 = vld [vmem:[%s6067_s3 + $0x110] sm:$0xff]  ;;  %v5211_v17 = vpack.c.bf16 %v308_v2, %v305_v63  ;;  %v5217_v19 = vpack.c.bf16 %v298_v8, %v295_v6  ;;  %v314_v26 = vld [vmem:[%s6067_s3 + $0x108] sm:$0xff]  ;;  %v301_v27 = vld [vmem:[%s6067_s3 + $0xa0] sm:$0xff] }
  0x1b   :  { %3810 = vmatprep.subr.bf16.mxu1 %v6075_v3  ;;  %v311_v18 = vld [vmem:[%s6067_s3 + $0xf0] sm:$0xff]  ;;  %v5220_v22 = vpack.c.bf16 %v315_v14, %v312_v13  ;;  %v304_v28 = vld [vmem:[%s6067_s3 + $0xb8] sm:$0xff]  ;;  %v318_v30 = vld [vmem:[%s6067_s3 + $0x128] sm:$0xff] }
  0x1c   :  { %v321_v31 = vld [vmem:[%s6067_s3 + $0x140] sm:$0xff]  ;;  %v5239_v36 = vpack.c.bf16 %v314_v26, %v311_v18  ;;  %v5245_v40 = vpack.c.bf16 %v304_v28, %v301_v27  ;;  %v320_v45 = vld [vmem:[%s6067_s3 + $0x138] sm:$0xff]  ;;  %v307_v46 = vld [vmem:[%s6067_s3 + $0xd0] sm:$0xff] }
  0x1d   :  { %3790 = vmatpush1.bf16.msra.mxu0 %v5038_v59  ;;  %v317_v39 = vld [vmem:[%s6067_s3 + $0x120] sm:$0xff]  ;;  %v5248_v42 = vpack.c.bf16 %v321_v31, %v318_v30  ;;  %v310_v48 = vld [vmem:[%s6067_s3 + $0xe8] sm:$0xff]  ;;  %v324_v54 = vld [vmem:[%s6067_s3 + $0x158] sm:$0xff] }
  0x1e   :  { %3792 = vmatprep.subr.bf16.mxu0 %v5047_v62  ;;  %3812 = vmatpush3.bf16.msra.mxu1 %v5072_v11  ;;  %v327_v55 = vld [vmem:[%s6067_s3 + $0x170] sm:$0xff]  ;;  %v5267_v56 = vpack.c.bf16 %v320_v45, %v317_v39  ;;  %v5273_v58 = vpack.c.bf16 %v310_v48, %v307_v46  ;;  %v326_v2 = vld [vmem:[%s6067_s3 + $0x168] sm:$0xff]  ;;  %v313_v6 = vld [vmem:[%s6067_s3 + $0x100] sm:$0xff] }
  0x1f   :  { %3813 = vmatprep.subr.bf16.mxu1 %v6075_v3  ;;  %v323_v57 = vld [vmem:[%s6067_s3 + $0x150] sm:$0xff]  ;;  %v5276_v63 = vpack.c.bf16 %v327_v55, %v324_v54  ;;  %v316_v8 = vld [vmem:[%s6067_s3 + $0x118] sm:$0xff]  ;;  %v322_v26 = vld [vmem:[%s6067_s3 + $0x148] sm:$0xff] }
  0x20   :  { %v5289_v13 = vpack.c.bf16 %v326_v2, %v323_v57  ;;  %v5292_v14 = vpack.c.bf16 %v316_v8, %v313_v6  ;;  %v319_v18 = vld [vmem:[%s6067_s3 + $0x130] sm:$0xff]  ;;  %v325_v28 = vld [vmem:[%s6067_s3 + $0x160] sm:$0xff]  ;;  %v328_v30 = vld [vmem:[%s6067_s3 + $0x178] sm:$0xff] }
  0x21   :  { %3794 = vmatpush1.bf16.msra.mxu0 %v5066_v7  ;;  %v5304_v27 = vpack.c.bf16 %v322_v26, %v319_v18  ;;  %v5316_v31 = vpack.c.bf16 %v328_v30, %v325_v28  ;;  %v56_v39 = vld [vmem:[%s6068_s0] sm:$0xff]  ;;  %v57_v48 = vld [vmem:[%s6068_s0 + $0x8] sm:$0xff] }
  0x22   :  { %3820 = vmatprep.subr.bf16.mxu0 %v5075_v12  ;;  %3815 = vmatpush3.bf16.msra.mxu1 %v5100_v24  ;;  %v5366_v30 = vld [vmem:[%s6069_s4] ss:$0 sm:$0xff] }
  0x23   :  { %3816 = vmatprep.subr.bf16.mxu1 %v6075_v3  ;;  %6100 = vst [vmem:[#allocation10_spill] sm:$0xff] %v5366_v30 }
  0x24   :  { %172 = vmatmul.mubr.f32.vlgmr.msra.gmra.mrb[0].mxu0 %v6073_v4 }
  0x25   :  { %3822 = vmatpush1.bf16.msra.mxu0 %v5094_v20  ;;  %393 = vmatprep.mubr.f32.mxu0 %v6073_v4 }
  0x26   :  { %3824 = vmatprep.subr.bf16.mxu0 %v5103_v25  ;;  %3818 = vmatpush3.bf16.msra.mxu1 %v5129_v37 }
  0x27   :  { %3851 = vmatprep.subr.bf16.mxu1 %v6075_v3 }
  0x29   :  { %3826 = vmatpush1.bf16.msra.mxu0 %v5123_v33  ;;  %3236 = vmatmul.mubr.f32.vlgmr.msra.gmra.mrb[0].mxu1 %v6073_v4 }
  0x2a   :  { %3828 = vmatprep.subr.bf16.mxu0 %v5132_v38  ;;  %3853 = vmatpush3.bf16.msra.mxu1 %v5158_v49 }
  0x2b   :  { %3854 = vmatprep.subr.bf16.mxu1 %v6075_v3  ;;  %3270 = vmatprep.mubr.msk.f32.mxu1 %vm4826_vm0, %v6073_v4 }
  0x2d   :  { %3830 = vmatpush1.bf16.msra.mxu0 %v5152_v47 }
  0x2e   :  { %3832 = vmatprep.subr.bf16.mxu0 %v5161_v51  ;;  %3856 = vmatpush3.bf16.msra.mxu1 %v5187_v0 }
  0x2f   :  { %3857 = vmatprep.subr.bf16.mxu1 %v6075_v3 }
  0x31   :  { %3834 = vmatpush1.bf16.msra.mxu0 %v5181_v60 }
  0x32   :  { %3836 = vmatprep.subr.bf16.mxu0 %v5190_v1  ;;  %3859 = vmatpush3.bf16.msra.mxu1 %v5217_v19 }
  0x33   :  { %3860 = vmatprep.subr.bf16.mxu1 %v6075_v3 }
  0x35   :  { %3838 = vmatpush1.bf16.msra.mxu0 %v5211_v17 }
  0x36   :  { %3840 = vmatprep.subr.bf16.mxu0 %v5220_v22  ;;  %3862 = vmatpush3.bf16.msra.mxu1 %v5245_v40 }
  0x37   :  { %3863 = vmatprep.subr.bf16.mxu1 %v6075_v3 }
  0x39   :  { %3842 = vmatpush1.bf16.msra.mxu0 %v5239_v36 }
  0x3a   :  { %3844 = vmatprep.subr.bf16.mxu0 %v5248_v42  ;;  %3865 = vmatpush3.bf16.msra.mxu1 %v5273_v58 }
  0x3b   :  { %3866 = vmatprep.subr.bf16.mxu1 %v6075_v3 }
  0x3d   :  { %3846 = vmatpush1.bf16.msra.mxu0 %v5267_v56 }
  0x3e   :  { %3848 = vmatprep.subr.bf16.mxu0 %v5276_v63  ;;  %3868 = vmatpush3.bf16.msra.mxu1 %v5292_v14 }
  0x3f   :  { %3869 = vmatprep.subr.bf16.mxu1 %v6075_v3 }
  0x41   :  { %3850 = vmatpush1.bf16.msra.mxu0 %v5289_v13 }
  0x42   :  { %3876 = vmatprep.subr.bf16.mxu0 %v4873_v5  ;;  %3871 = vmatpush3.bf16.msra.mxu1 %v5304_v27 }
  0x43   :  { %3872 = vmatprep.subr.bf16.mxu1 %v6075_v3 }
  0x44   :  { %394 = vmatmul.mubr.f32.vlgmr.msra.gmra.mrb[2].mxu0 %v6073_v4 }
  0x45   :  { %3878 = vmatpush1.bf16.msra.mxu0 %v4886_v9  ;;  %567 = vmatprep.mubr.f32.mxu0 %v6073_v4 }
  0x46   :  { %3880 = vmatprep.subr.bf16.mxu0 %v4888_v10  ;;  %3874 = vmatpush3.bf16.msra.mxu1 %v5316_v31 }
  0x47   :  { %3907 = vmatprep.subr.bf16.mxu1 %v6075_v3 }
  0x49   :  { %3882 = vmatpush1.bf16.msra.mxu0 %v4904_v15  ;;  %3271 = vmatmul.mubr.f32.vlgmr.msra.gmra.mrb[2].mxu1 %v6073_v4 }
  0x4a   :  { %3884 = vmatprep.subr.bf16.mxu0 %v4907_v16  ;;  %3909 = vmatpush3.bf16.msra.mxu1 %v4945_v29 }
  0x4b   :  { %3910 = vmatprep.subr.bf16.mxu1 %v6075_v3  ;;  %3305 = vmatprep.mubr.msk.f32.mxu1 %vm4826_vm0, %v6073_v4 }
  0x4d   :  { %3886 = vmatpush1.bf16.msra.mxu0 %v4922_v21 }
  0x4e   :  { %3888 = vmatprep.subr.bf16.mxu0 %v4928_v23  ;;  %3912 = vmatpush3.bf16.msra.mxu1 %v4960_v34 }
  0x4f   :  { %3913 = vmatprep.subr.bf16.mxu1 %v6075_v3 }
  0x51   :  { %3890 = vmatpush1.bf16.msra.mxu0 %v4954_v32 }
  0x52   :  { %3892 = vmatprep.subr.bf16.mxu0 %v4963_v35  ;;  %3915 = vmatpush3.bf16.msra.mxu1 %v4988_v43 }
  0x53   :  { %3916 = vmatprep.subr.bf16.mxu1 %v6075_v3 }
  0x55   :  { %3894 = vmatpush1.bf16.msra.mxu0 %v4982_v41 }
  0x56   :  { %3896 = vmatprep.subr.bf16.mxu0 %v4991_v44  ;;  %3918 = vmatpush3.bf16.msra.mxu1 %v5016_v52 }
  0x57   :  { %3919 = vmatprep.subr.bf16.mxu1 %v6075_v3 }
  0x59   :  { %3898 = vmatpush1.bf16.msra.mxu0 %v5010_v50 }
  0x5a   :  { %3900 = vmatprep.subr.bf16.mxu0 %v5019_v53  ;;  %3921 = vmatpush3.bf16.msra.mxu1 %v5044_v61 }
  0x5b   :  { %3922 = vmatprep.subr.bf16.mxu1 %v6075_v3 }
  0x5d   :  { %3902 = vmatpush1.bf16.msra.mxu0 %v5038_v59 }
  0x5e   :  { %3904 = vmatprep.subr.bf16.mxu0 %v5047_v62  ;;  %3924 = vmatpush3.bf16.msra.mxu1 %v5072_v11 }
  0x5f   :  { %3925 = vmatprep.subr.bf16.mxu1 %v6075_v3 }
  0x61   :  { %3906 = vmatpush1.bf16.msra.mxu0 %v5066_v7 }
  0x62   :  { %3932 = vmatprep.subr.bf16.mxu0 %v5075_v12  ;;  %3927 = vmatpush3.bf16.msra.mxu1 %v5100_v24 }
  0x63   :  { %3928 = vmatprep.subr.bf16.mxu1 %v6075_v3 }
  0x66   :  { %3930 = vmatpush3.bf16.msra.mxu1 %v5129_v37 }
  0x67   :  { %3963 = vmatprep.subr.bf16.mxu1 %v6075_v3 }
  0xf7   :  { %v173_v45 = vpop.f32.mrb[0].mxu0 }
  0xf8   :  { %v248_v46 = vadd.f32 %v173_v45, %v56_v39  ;;  %v175_v54 = vpop.f32.mrb[1].mxu0 }
  0xf9   :  { %v255_v57 = vadd.f32 %v175_v54, %v57_v48  ;;  %v2858_v54 = vld [vmem:[%s6070_s1 + $0xa8] sm:$0xff] }
  0xfa   :  { %v2855_v55 = vmul.f32 -1.442695, %v248_v46  ;;  %v58_v46 = vld [vmem:[%s6068_s0 + $0x10] sm:$0xff] }
  0xfb   :  { %v2856_v2 = vmul.f32 -1.442695, %v255_v57 }
  0xfc   :  { %4662 = vpow2.f32 %v2855_v55  ;;  %v244_v6 = vpop.f32.mrb[0].mxu1 }
  0xfd   :  { %v3237_v8 = vpop.f32.mrb[1].mxu1  ;;  %4664 = vpow2.f32 %v2856_v2  ;;  %v269_v45 = vadd.f32 %v5366_v30, %v244_v6 }
  0xfe   :  { %v2859_v8 = vld [vmem:[%s6070_s1 + $0xb0] sm:$0xff] }
 0x106   :  { %v4663_v18 = vpop.eup %4662 }
 0x107   :  { %v252_v26 = vadd.f32 1.0, %v4663_v18  ;;  %v4665_v28 = vpop.eup %4664 }
 0x108   :  { %v259_v39 = vadd.f32 1.0, %v4665_v28 }
 0x109   :  { %4666 = vrcp.f32 %v252_v26 }
 0x10a   :  { %4668 = vrcp.f32 %v259_v39 }
 0x113   :  { %v4667_v4 = vpop.eup %4666 }
 0x114   :  { %v270_v48 = vmul.f32 %v4667_v4, %v269_v45  ;;  %v4669_v28 = vpop.eup %4668 }
 0x115   :  { %v273_v45 = vsub.f32 1.0, %v4669_v28 }
 0x116   :  { %v271_v55 = vadd.f32 %v270_v48, %v58_v46  ;;  %v275_v46 = vmul.f32 0.0, %v4669_v28 }
 0x117   :  { %v395_v57 = vpop.f32.mrb[2].mxu0 }
 0x118   :  { %4670 = vtanh.f32 %v271_v55  ;;  %v470_v2 = vadd.f32 %v2858_v54, %v395_v57  ;;  %v397_v6 = vpop.f32.mrb[3].mxu0  ;;  %v6101_v57 = vmov 0.0|0.0  }
 0x119   :  { %v477_v26 = vadd.f32 %v2859_v8, %v397_v6 }
 0x11a   :  { %v2861_v18 = vmul.f32 -1.442695, %v470_v2 }
 0x11b   :  { %v2862_v3 = vmul.f32 -1.442695, %v477_v26 }
 0x11c   :  { %4672 = vpow2.f32 %v2861_v18  ;;  %v466_v39 = vpop.f32.mrb[2].mxu1  ;;  %v2860_v18 = vld [vmem:[%s6070_s1 + $0xb8] sm:$0xff] }
 0x11d   :  { %v3272_v4 = vpop.f32.mrb[3].mxu1  ;;  %4674 = vpow2.f32 %v2862_v3  ;;  %v6102_v3 = vmov 0.0  }
 0x122   :  { %v4671_v30 = vpop.eup %4670 }
 0x123   :  { %v274_v12 = vmul.f32 %v4671_v30, %v273_v45  ;;  %v5396_v30 = vld [vmem:[%s6071_s5] ss:$0 sm:$0xff] }
 0x124   :  { %v491_v8 = vadd.f32 %v5396_v30, %v466_v39 }
 0x125   :  { %v5378_v48 = vadd.f32 %v275_v46, %v274_v12 }
 0x126   :  { %v4673_v54 = vpop.eup %4672 }
 0x127   :  { %v474_v55 = vadd.f32 1.0, %v4673_v54  ;;  %568 = vmatmul.mubr.f32.vlgmr.msra.gmra.mrb[4].mxu0 %v5378_v48  ;;  %3306 = vmatmul.mubr.f32.vlgmr.msra.gmra.mrb[4].mxu1 %v5378_v48  ;;  %v4675_v12 = vpop.eup %4674 }
 0x128   :  { %3934 = vmatpush1.bf16.msra.mxu0 %v5094_v20  ;;  %3965 = vmatpush3.bf16.msra.mxu1 %v5158_v49  ;;  %v481_v2 = vadd.f32 1.0, %v4675_v12  ;;  %v6103_v12 = vld [vmem:[#allocation7_spill] sm:$0xff] }
 0x129   :  { %4676 = vrcp.f32 %v474_v55  ;;  %3936 = vmatprep.subr.bf16.mxu0 %v5103_v25  ;;  %3966 = vmatprep.subr.bf16.mxu1 %v6101_v57 }
 0x12a   :  { %734 = vmatprep.mubr.f32.mxu0 %v6102_v3  ;;  %3340 = vmatprep.mubr.msk.f32.mxu1 %vm4826_vm0, %v6102_v3  ;;  %4678 = vrcp.f32 %v481_v2  ;;  %v2864_v2 = vld [vmem:[%s6068_s0 + $0x18] sm:$0xff] }
 0x12c   :  { %3938 = vmatpush1.bf16.msra.mxu0 %v5123_v33  ;;  %3968 = vmatpush3.bf16.msra.mxu1 %v5187_v0 }
 0x12d   :  { %3940 = vmatprep.subr.bf16.mxu0 %v5132_v38  ;;  %3969 = vmatprep.subr.bf16.mxu1 %v6101_v57 }
 0x130   :  { %3942 = vmatpush1.bf16.msra.mxu0 %v5152_v47  ;;  %3971 = vmatpush3.bf16.msra.mxu1 %v5217_v19 }
 0x131   :  { %3944 = vmatprep.subr.bf16.mxu0 %v5161_v51  ;;  %3972 = vmatprep.subr.bf16.mxu1 %v6101_v57 }
 0x133   :  { %v4677_v6 = vpop.eup %4676 }
 0x134   :  { %v492_v26 = vmul.f32 %v4677_v6, %v491_v8  ;;  %3946 = vmatpush1.bf16.msra.mxu0 %v5181_v60  ;;  %3974 = vmatpush3.bf16.msra.mxu1 %v5245_v40  ;;  %v4679_v39 = vpop.eup %4678 }
 0x135   :  { %3948 = vmatprep.subr.bf16.mxu0 %v5190_v1  ;;  %3975 = vmatprep.subr.bf16.mxu1 %v6101_v57  ;;  %v495_v4 = vsub.f32 1.0, %v4679_v39  ;;  %v497_v54 = vmul.f32 0.0, %v4679_v39 }
 0x136   :  { %v493_v28 = vadd.f32 %v2860_v18, %v492_v26  ;;  %v2865_v26 = vld [vmem:[%s6068_s0 + $0x20] sm:$0xff] }
 0x138   :  { %4680 = vtanh.f32 %v493_v28  ;;  %3950 = vmatpush1.bf16.msra.mxu0 %v5211_v17  ;;  %3977 = vmatpush3.bf16.msra.mxu1 %v5273_v58 }
 0x139   :  { %3952 = vmatprep.subr.bf16.mxu0 %v5220_v22  ;;  %3978 = vmatprep.subr.bf16.mxu1 %v6101_v57 }
 0x13c   :  { %3954 = vmatpush1.bf16.msra.mxu0 %v5239_v36  ;;  %3980 = vmatpush3.bf16.msra.mxu1 %v5292_v14 }
 0x13d   :  { %3956 = vmatprep.subr.bf16.mxu0 %v5248_v42  ;;  %3981 = vmatprep.subr.bf16.mxu1 %v6101_v57 }
 0x140   :  { %3958 = vmatpush1.bf16.msra.mxu0 %v5267_v56  ;;  %3983 = vmatpush3.bf16.msra.mxu1 %v5304_v27 }
 0x141   :  { %3960 = vmatprep.subr.bf16.mxu0 %v5276_v63  ;;  %3984 = vmatprep.subr.bf16.mxu1 %v6101_v57 }
 0x142   :  { %v4681_v45 = vpop.eup %4680 }
 0x143   :  { %v496_v46 = vmul.f32 %v4681_v45, %v495_v4 }
 0x144   :  { %3962 = vmatpush1.bf16.msra.mxu0 %v5289_v13  ;;  %3986 = vmatpush3.bf16.msra.mxu1 %v5316_v31 }
 0x145   :  { %v5424_v55 = vadd.f32 %v497_v54, %v496_v46  ;;  %3988 = vmatprep.subr.bf16.mxu0 %v4873_v5  ;;  %4019 = vmatprep.subr.bf16.mxu1 %v6101_v57 }
 0x147   :  { %735 = vmatmul.mubr.f32.vlgmr.msra.gmra.mrb[6].mxu0 %v5424_v55  ;;  %3341 = vmatmul.mubr.f32.vlgmr.msra.gmra.mrb[6].mxu1 %v5424_v55 }
 0x148   :  { %3990 = vmatpush1.bf16.msra.mxu0 %v4886_v9  ;;  %4021 = vmatpush3.bf16.msra.mxu1 %v4945_v29 }
 0x149   :  { %3992 = vmatprep.subr.bf16.mxu0 %v4888_v10  ;;  %4022 = vmatprep.subr.bf16.mxu1 %v6101_v57 }
 0x14a   :  { %901 = vmatprep.mubr.f32.mxu0 %v6102_v3  ;;  %3375 = vmatprep.mubr.msk.f32.mxu1 %vm4826_vm0, %v6102_v3 }
 0x14c   :  { %3994 = vmatpush1.bf16.msra.mxu0 %v4904_v15  ;;  %4024 = vmatpush3.bf16.msra.mxu1 %v4960_v34 }
 0x14d   :  { %3996 = vmatprep.subr.bf16.mxu0 %v4907_v16  ;;  %4025 = vmatprep.subr.bf16.mxu1 %v6101_v57 }
 0x150   :  { %3998 = vmatpush1.bf16.msra.mxu0 %v4922_v21  ;;  %4027 = vmatpush3.bf16.msra.mxu1 %v4988_v43 }
 0x151   :  { %4000 = vmatprep.subr.bf16.mxu0 %v4928_v23  ;;  %4028 = vmatprep.subr.bf16.mxu1 %v6101_v57 }
 0x154   :  { %4002 = vmatpush1.bf16.msra.mxu0 %v4954_v32  ;;  %4030 = vmatpush3.bf16.msra.mxu1 %v5016_v52 }
 0x155   :  { %4004 = vmatprep.subr.bf16.mxu0 %v4963_v35  ;;  %4031 = vmatprep.subr.bf16.mxu1 %v6101_v57 }
 0x158   :  { %4006 = vmatpush1.bf16.msra.mxu0 %v4982_v41  ;;  %4033 = vmatpush3.bf16.msra.mxu1 %v5044_v61 }
 0x159   :  { %4008 = vmatprep.subr.bf16.mxu0 %v4991_v44  ;;  %4034 = vmatprep.subr.bf16.mxu1 %v6101_v57 }
 0x15c   :  { %4010 = vmatpush1.bf16.msra.mxu0 %v5010_v50  ;;  %4036 = vmatpush3.bf16.msra.mxu1 %v5072_v11 }
 0x15d   :  { %4012 = vmatprep.subr.bf16.mxu0 %v5019_v53  ;;  %4037 = vmatprep.subr.bf16.mxu1 %v6101_v57 }
 0x160   :  { %4014 = vmatpush1.bf16.msra.mxu0 %v5038_v59  ;;  %4039 = vmatpush3.bf16.msra.mxu1 %v5100_v24 }
 0x161   :  { %4016 = vmatprep.subr.bf16.mxu0 %v5047_v62  ;;  %4040 = vmatprep.subr.bf16.mxu1 %v6101_v57  ;;  %v6104_v62 = vld [vmem:[#allocation10_spill] sm:$0xff] }
 0x164   :  { %4018 = vmatpush1.bf16.msra.mxu0 %v5066_v7  ;;  %4042 = vmatpush3.bf16.msra.mxu1 %v5129_v37 }
 0x165   :  { %4044 = vmatprep.subr.bf16.mxu0 %v6103_v12  ;;  %4075 = vmatprep.subr.bf16.mxu1 %v6101_v57 }
 0x1fa   :  { %v569_v8 = vpop.f32.mrb[4].mxu0  ;;  %v640_v6 = vpop.f32.mrb[4].mxu1 }
 0x1fb   :  { %v644_v18 = vadd.f32 %v2864_v2, %v569_v8  ;;  %v571_v28 = vpop.f32.mrb[5].mxu0  ;;  %v3307_v39 = vpop.f32.mrb[5].mxu1  ;;  %v658_v24 = vadd.f32 %v6104_v62, %v640_v6  ;;  %v2866_v2 = vld [vmem:[%s6068_s0 + $0x28] sm:$0xff] }
 0x1fc   :  { %v651_v45 = vadd.f32 %v2865_v26, %v571_v28 }
 0x1fd   :  { %v2867_v4 = vmul.f32 -1.442695, %v644_v18  ;;  %v2869_v18 = vld [vmem:[%s6070_s1 + $0x90] sm:$0xff] }
 0x1fe   :  { %v2868_v46 = vmul.f32 -1.442695, %v651_v45 }
 0x1ff   :  { %4682 = vpow2.f32 %v2867_v4 }
 0x200   :  { %4684 = vpow2.f32 %v2868_v46 }
 0x209   :  { %v4683_v54 = vpop.eup %4682 }
 0x20a   :  { %v648_v12 = vadd.f32 1.0, %v4683_v54  ;;  %v4685_v37 = vpop.eup %4684 }
 0x20b   :  { %v655_v7 = vadd.f32 1.0, %v4685_v37  ;;  %v2870_v37 = vld [vmem:[%s6070_s1 + $0x98] sm:$0xff] }
 0x20c   :  { %4686 = vrcp.f32 %v648_v12 }
 0x20d   :  { %4688 = vrcp.f32 %v655_v7 }
 0x216   :  { %v4687_v59 = vpop.eup %4686 }
 0x217   :  { %v659_v8 = vmul.f32 %v4687_v59, %v658_v24  ;;  %v4689_v59 = vpop.eup %4688 }
 0x218   :  { %v662_v24 = vsub.f32 1.0, %v4689_v59 }
 0x219   :  { %v660_v26 = vadd.f32 %v2866_v2, %v659_v8  ;;  %v664_v2 = vmul.f32 %v4689_v59, %v5378_v48 }
 0x21a   :  { %v736_v28 = vpop.f32.mrb[6].mxu0  ;;  %v807_v39 = vpop.f32.mrb[6].mxu1 }
 0x21b   :  { %4690 = vtanh.f32 %v660_v26  ;;  %v811_v12 = vadd.f32 %v2869_v18, %v736_v28  ;;  %v738_v6 = vpop.f32.mrb[7].mxu0  ;;  %v3342_v4 = vpop.f32.mrb[7].mxu1  ;;  %v825_v28 = vadd.f32 %v5396_v30, %v807_v39 }
 0x21c   :  { %v818_v46 = vadd.f32 %v2870_v37, %v738_v6  ;;  %v2871_v37 = vld [vmem:[%s6070_s1 + $0xa0] sm:$0xff] }
 0x21d   :  { %v2872_v45 = vmul.f32 -1.442695, %v811_v12 }
 0x21e   :  { %v2873_v7 = vmul.f32 -1.442695, %v818_v46 }
 0x21f   :  { %4692 = vpow2.f32 %v2872_v45 }
 0x220   :  { %4694 = vpow2.f32 %v2873_v7 }
 0x225   :  { %v4691_v54 = vpop.eup %4690 }
 0x226   :  { %v663_v62 = vmul.f32 %v4691_v54, %v662_v24  ;;  %v6106_v54 = vld [vmem:[#allocation8_spill] sm:$0xff] }
 0x228   :  { %v5482_v8 = vadd.f32 %v664_v2, %v663_v62  ;;  %v6107_v2 = vld [vmem:[#allocation5_spill] sm:$0xff] }
 0x229   :  { %v4693_v18 = vpop.eup %4692 }
 0x22a   :  { %v815_v26 = vadd.f32 1.0, %v4693_v18  ;;  %902 = vmatmul.mubr.f32.vlgmr.msra.gmra.mrb[8].mxu0 %v5482_v8  ;;  %3376 = vmatmul.mubr.f32.vlgmr.msra.gmra.mrb[8].mxu1 %v5482_v8  ;;  %v4695_v62 = vpop.eup %4694  ;;  %v6108_v18 = vld [vmem:[#allocation6_spill] sm:$0xff] }
 0x22b   :  { %4046 = vmatpush1.bf16.msra.mxu0 %v5094_v20  ;;  %4077 = vmatpush3.bf16.msra.mxu1 %v5158_v49  ;;  %v822_v48 = vadd.f32 1.0, %v4695_v62  ;;  %v6110_v62 = vld [vmem:[#allocation7_spill] sm:$0xff] }
 0x22c   :  { %4696 = vrcp.f32 %v815_v26  ;;  %4048 = vmatprep.subr.bf16.mxu0 %v5103_v25  ;;  %4078 = vmatprep.subr.bf16.mxu1 %v6101_v57  ;;  %v6109_v26 = vld [vmem:[#allocation9_spill] sm:$0xff] }
 0x22d   :  { %1068 = vmatprep.mubr.f32.mxu0 %v6102_v3  ;;  %3410 = vmatprep.mubr.msk.f32.mxu1 %vm4826_vm0, %v6102_v3  ;;  %4698 = vrcp.f32 %v822_v48  ;;  %v2874_v48 = vld [vmem:[%s6068_s0 + $0x30] sm:$0xff] }
 0x22f   :  { %4050 = vmatpush1.bf16.msra.mxu0 %v5123_v33  ;;  %4080 = vmatpush3.bf16.msra.mxu1 %v5187_v0 }
 0x230   :  { %4052 = vmatprep.subr.bf16.mxu0 %v5132_v38  ;;  %4081 = vmatprep.subr.bf16.mxu1 %v6101_v57 }
 0x233   :  { %4054 = vmatpush1.bf16.msra.mxu0 %v5152_v47  ;;  %4083 = vmatpush3.bf16.msra.mxu1 %v5217_v19 }
 0x234   :  { %4056 = vmatprep.subr.bf16.mxu0 %v5161_v51  ;;  %4084 = vmatprep.subr.bf16.mxu1 %v6101_v57 }
 0x236   :  { %v4697_v12 = vpop.eup %4696 }
 0x237   :  { %v826_v6 = vmul.f32 %v4697_v12, %v825_v28  ;;  %4058 = vmatpush1.bf16.msra.mxu0 %v5181_v60  ;;  %4086 = vmatpush3.bf16.msra.mxu1 %v5245_v40  ;;  %v4699_v39 = vpop.eup %4698 }
 0x238   :  { %4060 = vmatprep.subr.bf16.mxu0 %v5190_v1  ;;  %4087 = vmatprep.subr.bf16.mxu1 %v6101_v57  ;;  %v829_v45 = vsub.f32 1.0, %v4699_v39  ;;  %v831_v7 = vmul.f32 %v4699_v39, %v5424_v55  ;;  %v6105_v55 = vld [vmem:[#allocation4_spill] sm:$0xff] }
 0x239   :  { %v827_v4 = vadd.f32 %v2871_v37, %v826_v6  ;;  %v2875_v6 = vld [vmem:[%s6068_s0 + $0x38] sm:$0xff] }
 0x23b   :  { %4700 = vtanh.f32 %v827_v4  ;;  %4062 = vmatpush1.bf16.msra.mxu0 %v5211_v17  ;;  %4089 = vmatpush3.bf16.msra.mxu1 %v5273_v58 }
 0x23c   :  { %4064 = vmatprep.subr.bf16.mxu0 %v5220_v22  ;;  %4090 = vmatprep.subr.bf16.mxu1 %v6101_v57 }
 0x23f   :  { %4066 = vmatpush1.bf16.msra.mxu0 %v5239_v36  ;;  %4092 = vmatpush3.bf16.msra.mxu1 %v5292_v14 }
 0x240   :  { %4068 = vmatprep.subr.bf16.mxu0 %v5248_v42  ;;  %4093 = vmatprep.subr.bf16.mxu1 %v6101_v57 }
 0x243   :  { %4070 = vmatpush1.bf16.msra.mxu0 %v5267_v56  ;;  %4095 = vmatpush3.bf16.msra.mxu1 %v5304_v27 }
 0x244   :  { %4072 = vmatprep.subr.bf16.mxu0 %v5276_v63  ;;  %4096 = vmatprep.subr.bf16.mxu1 %v6101_v57 }
 0x245   :  { %v4701_v46 = vpop.eup %4700 }
 0x246   :  { %v830_v59 = vmul.f32 %v4701_v46, %v829_v45 }
 0x247   :  { %4074 = vmatpush1.bf16.msra.mxu0 %v5289_v13  ;;  %4098 = vmatpush3.bf16.msra.mxu1 %v5316_v31 }
 0x248   :  { %v5524_v24 = vadd.f32 %v831_v7, %v830_v59  ;;  %4100 = vmatprep.subr.bf16.mxu0 %v4873_v5  ;;  %4131 = vmatprep.subr.bf16.mxu1 %v6101_v57 }
 0x24a   :  { %1069 = vmatmul.mubr.f32.vlgmr.msra.gmra.mrb[10].mxu0 %v5524_v24  ;;  %3411 = vmatmul.mubr.f32.vlgmr.msra.gmra.mrb[10].mxu1 %v5524_v24 }
 0x24b   :  { %4102 = vmatpush1.bf16.msra.mxu0 %v4886_v9  ;;  %4133 = vmatpush3.bf16.msra.mxu1 %v4945_v29 }
 0x24c   :  { %4104 = vmatprep.subr.bf16.mxu0 %v4888_v10  ;;  %4134 = vmatprep.subr.bf16.mxu1 %v6101_v57 }
 0x24d   :  { %1235 = vmatprep.mubr.f32.mxu0 %v6102_v3  ;;  %3445 = vmatprep.mubr.msk.f32.mxu1 %vm4826_vm0, %v6102_v3 }
 0x24f   :  { %4106 = vmatpush1.bf16.msra.mxu0 %v4904_v15  ;;  %4136 = vmatpush3.bf16.msra.mxu1 %v4960_v34 }
 0x250   :  { %4108 = vmatprep.subr.bf16.mxu0 %v4907_v16  ;;  %4137 = vmatprep.subr.bf16.mxu1 %v6101_v57 }
 0x253   :  { %4110 = vmatpush1.bf16.msra.mxu0 %v4922_v21  ;;  %4139 = vmatpush3.bf16.msra.mxu1 %v4988_v43 }
 0x254   :  { %4112 = vmatprep.subr.bf16.mxu0 %v4928_v23  ;;  %4140 = vmatprep.subr.bf16.mxu1 %v6101_v57 }
 0x257   :  { %4114 = vmatpush1.bf16.msra.mxu0 %v4954_v32  ;;  %4142 = vmatpush3.bf16.msra.mxu1 %v5016_v52 }
 0x258   :  { %4116 = vmatprep.subr.bf16.mxu0 %v4963_v35  ;;  %4143 = vmatprep.subr.bf16.mxu1 %v6101_v57 }
 0x25b   :  { %4118 = vmatpush1.bf16.msra.mxu0 %v4982_v41  ;;  %4145 = vmatpush3.bf16.msra.mxu1 %v5044_v61 }
 0x25c   :  { %4120 = vmatprep.subr.bf16.mxu0 %v4991_v44  ;;  %4146 = vmatprep.subr.bf16.mxu1 %v6101_v57 }
 0x25f   :  { %4122 = vmatpush1.bf16.msra.mxu0 %v5010_v50  ;;  %4148 = vmatpush3.bf16.msra.mxu1 %v5072_v11 }
 0x260   :  { %4124 = vmatprep.subr.bf16.mxu0 %v5019_v53  ;;  %4149 = vmatprep.subr.bf16.mxu1 %v6101_v57 }
 0x263   :  { %4126 = vmatpush1.bf16.msra.mxu0 %v6105_v55  ;;  %4151 = vmatpush3.bf16.msra.mxu1 %v6106_v54 }
 0x264   :  { %4128 = vmatprep.subr.bf16.mxu0 %v6107_v2  ;;  %4152 = vmatprep.subr.bf16.mxu1 %v6101_v57  ;;  %v6111_v2 = vld [vmem:[#allocation10_spill] sm:$0xff] }
 0x267   :  { %4130 = vmatpush1.bf16.msra.mxu0 %v6108_v18  ;;  %4154 = vmatpush3.bf16.msra.mxu1 %v6109_v26 }
 0x268   :  { %4156 = vmatprep.subr.bf16.mxu0 %v6110_v62  ;;  %4187 = vmatprep.subr.bf16.mxu1 %v6101_v57 }
 0x2fd   :  { %v903_v28 = vpop.f32.mrb[8].mxu0  ;;  %v974_v12 = vpop.f32.mrb[8].mxu1 }
 0x2fe   :  { %v978_v37 = vadd.f32 %v2874_v48, %v903_v28  ;;  %v905_v4 = vpop.f32.mrb[9].mxu0  ;;  %v3377_v39 = vpop.f32.mrb[9].mxu1  ;;  %v992_v54 = vadd.f32 %v6111_v2, %v974_v12  ;;  %v2876_v48 = vld [vmem:[%s6068_s0 + $0x40] sm:$0xff] }
 0x2ff   :  { %v985_v46 = vadd.f32 %v2875_v6, %v905_v4 }
 0x300   :  { %v2877_v45 = vmul.f32 -1.442695, %v978_v37  ;;  %v2879_v37 = vld [vmem:[%s6070_s1 + $0x78] sm:$0xff] }
 0x301   :  { %v2878_v59 = vmul.f32 -1.442695, %v985_v46 }
 0x302   :  { %4702 = vpow2.f32 %v2877_v45 }
 0x303   :  { %4704 = vpow2.f32 %v2878_v59 }
 0x30c   :  { %v4703_v7 = vpop.eup %4702 }
 0x30d   :  { %v982_v62 = vadd.f32 1.0, %v4703_v7  ;;  %v4705_v26 = vpop.eup %4704 }
 0x30e   :  { %v989_v18 = vadd.f32 1.0, %v4705_v26  ;;  %v2880_v26 = vld [vmem:[%s6070_s1 + $0x80] sm:$0xff] }
 0x30f   :  { %4706 = vrcp.f32 %v982_v62 }
 0x310   :  { %4708 = vrcp.f32 %v989_v18 }
 0x319   :  { %v4707_v55 = vpop.eup %4706 }
 0x31a   :  { %v993_v28 = vmul.f32 %v4707_v55, %v992_v54  ;;  %v4709_v55 = vpop.eup %4708 }
 0x31b   :  { %v996_v18 = vsub.f32 1.0, %v4709_v55 }
 0x31c   :  { %v994_v6 = vadd.f32 %v2876_v48, %v993_v28  ;;  %v998_v48 = vmul.f32 %v4709_v55, %v5482_v8 }
 0x31d   :  { %v1070_v4 = vpop.f32.mrb[10].mxu0  ;;  %v1141_v39 = vpop.f32.mrb[10].mxu1 }
 0x31e   :  { %4710 = vtanh.f32 %v994_v6  ;;  %v1145_v62 = vadd.f32 %v2879_v37, %v1070_v4  ;;  %v1072_v12 = vpop.f32.mrb[11].mxu0  ;;  %v3412_v45 = vpop.f32.mrb[11].mxu1  ;;  %v1159_v4 = vadd.f32 %v5396_v30, %v1141_v39 }
 0x31f   :  { %v1152_v59 = vadd.f32 %v2880_v26, %v1072_v12  ;;  %v2881_v26 = vld [vmem:[%s6070_s1 + $0x88] sm:$0xff] }
 0x320   :  { %v2882_v46 = vmul.f32 -1.442695, %v1145_v62 }
 0x321   :  { %v2883_v54 = vmul.f32 -1.442695, %v1152_v59 }
 0x322   :  { %4712 = vpow2.f32 %v2882_v46 }
 0x323   :  { %4714 = vpow2.f32 %v2883_v54 }
 0x328   :  { %v4711_v7 = vpop.eup %4710 }
 0x329   :  { %v997_v2 = vmul.f32 %v4711_v7, %v996_v18  ;;  %v6113_v7 = vld [vmem:[#allocation8_spill] sm:$0xff] }
 0x32b   :  { %v5582_v28 = vadd.f32 %v998_v48, %v997_v2  ;;  %v6114_v48 = vld [vmem:[#allocation5_spill] sm:$0xff] }
 0x32c   :  { %v4713_v37 = vpop.eup %4712 }
 0x32d   :  { %v1149_v6 = vadd.f32 1.0, %v4713_v37  ;;  %1236 = vmatmul.mubr.f32.vlgmr.msra.gmra.mrb[12].mxu0 %v5582_v28  ;;  %3446 = vmatmul.mubr.f32.vlgmr.msra.gmra.mrb[12].mxu1 %v5582_v28  ;;  %v4715_v8 = vpop.eup %4714  ;;  %v6115_v37 = vld [vmem:[#allocation6_spill] sm:$0xff] }
 0x32e   :  { %4158 = vmatpush1.bf16.msra.mxu0 %v5094_v20  ;;  %4189 = vmatpush3.bf16.msra.mxu1 %v5158_v49  ;;  %v1156_v2 = vadd.f32 1.0, %v4715_v8  ;;  %v6117_v8 = vld [vmem:[#allocation7_spill] sm:$0xff] }
 0x32f   :  { %4716 = vrcp.f32 %v1149_v6  ;;  %4160 = vmatprep.subr.bf16.mxu0 %v5103_v25  ;;  %4190 = vmatprep.subr.bf16.mxu1 %v6101_v57  ;;  %v6116_v6 = vld [vmem:[#allocation9_spill] sm:$0xff] }
 0x330   :  { %1402 = vmatprep.mubr.f32.mxu0 %v6102_v3  ;;  %3480 = vmatprep.mubr.msk.f32.mxu1 %vm4826_vm0, %v6102_v3  ;;  %4718 = vrcp.f32 %v1156_v2  ;;  %v2884_v2 = vld [vmem:[%s6068_s0 + $0x48] sm:$0xff] }
 0x332   :  { %4162 = vmatpush1.bf16.msra.mxu0 %v5123_v33  ;;  %4192 = vmatpush3.bf16.msra.mxu1 %v5187_v0 }
 0x333   :  { %4164 = vmatprep.subr.bf16.mxu0 %v5132_v38  ;;  %4193 = vmatprep.subr.bf16.mxu1 %v6101_v57 }
 0x336   :  { %4166 = vmatpush1.bf16.msra.mxu0 %v5152_v47  ;;  %4195 = vmatpush3.bf16.msra.mxu1 %v5217_v19 }
 0x337   :  { %4168 = vmatprep.subr.bf16.mxu0 %v5161_v51  ;;  %4196 = vmatprep.subr.bf16.mxu1 %v6101_v57 }
 0x339   :  { %v4717_v62 = vpop.eup %4716 }
 0x33a   :  { %v1160_v12 = vmul.f32 %v4717_v62, %v1159_v4  ;;  %4170 = vmatpush1.bf16.msra.mxu0 %v5181_v60  ;;  %4198 = vmatpush3.bf16.msra.mxu1 %v5245_v40  ;;  %v4719_v39 = vpop.eup %4718 }
 0x33b   :  { %4172 = vmatprep.subr.bf16.mxu0 %v5190_v1  ;;  %4199 = vmatprep.subr.bf16.mxu1 %v6101_v57  ;;  %v1163_v46 = vsub.f32 1.0, %v4719_v39  ;;  %v1165_v54 = vmul.f32 %v4719_v39, %v5524_v24  ;;  %v6112_v24 = vld [vmem:[#allocation4_spill] sm:$0xff] }
 0x33c   :  { %v1161_v45 = vadd.f32 %v2881_v26, %v1160_v12  ;;  %v2885_v12 = vld [vmem:[%s6068_s0 + $0x50] sm:$0xff] }
 0x33e   :  { %4720 = vtanh.f32 %v1161_v45  ;;  %4174 = vmatpush1.bf16.msra.mxu0 %v5211_v17  ;;  %4201 = vmatpush3.bf16.msra.mxu1 %v5273_v58 }
 0x33f   :  { %4176 = vmatprep.subr.bf16.mxu0 %v5220_v22  ;;  %4202 = vmatprep.subr.bf16.mxu1 %v6101_v57 }
 0x342   :  { %4178 = vmatpush1.bf16.msra.mxu0 %v5239_v36  ;;  %4204 = vmatpush3.bf16.msra.mxu1 %v5292_v14 }
 0x343   :  { %4180 = vmatprep.subr.bf16.mxu0 %v5248_v42  ;;  %4205 = vmatprep.subr.bf16.mxu1 %v6101_v57 }
 0x346   :  { %4182 = vmatpush1.bf16.msra.mxu0 %v5267_v56  ;;  %4207 = vmatpush3.bf16.msra.mxu1 %v5304_v27 }
 0x347   :  { %4184 = vmatprep.subr.bf16.mxu0 %v5276_v63  ;;  %4208 = vmatprep.subr.bf16.mxu1 %v6101_v57 }
 0x348   :  { %v4721_v59 = vpop.eup %4720 }
 0x349   :  { %v1164_v55 = vmul.f32 %v4721_v59, %v1163_v46 }
 0x34a   :  { %4186 = vmatpush1.bf16.msra.mxu0 %v5289_v13  ;;  %4210 = vmatpush3.bf16.msra.mxu1 %v5316_v31 }
 0x34b   :  { %v5624_v18 = vadd.f32 %v1165_v54, %v1164_v55  ;;  %4212 = vmatprep.subr.bf16.mxu0 %v4873_v5  ;;  %4243 = vmatprep.subr.bf16.mxu1 %v6101_v57 }
 0x34d   :  { %1403 = vmatmul.mubr.f32.vlgmr.msra.gmra.mrb[14].mxu0 %v5624_v18  ;;  %3481 = vmatmul.mubr.f32.vlgmr.msra.gmra.mrb[14].mxu1 %v5624_v18 }
 0x34e   :  { %4214 = vmatpush1.bf16.msra.mxu0 %v4886_v9  ;;  %4245 = vmatpush3.bf16.msra.mxu1 %v4945_v29 }
 0x34f   :  { %4216 = vmatprep.subr.bf16.mxu0 %v4888_v10  ;;  %4246 = vmatprep.subr.bf16.mxu1 %v6101_v57 }
 0x350   :  { %1569 = vmatprep.mubr.f32.mxu0 %v6102_v3  ;;  %3515 = vmatprep.mubr.msk.f32.mxu1 %vm4826_vm0, %v6102_v3 }
 0x352   :  { %4218 = vmatpush1.bf16.msra.mxu0 %v4904_v15  ;;  %4248 = vmatpush3.bf16.msra.mxu1 %v4960_v34 }
 0x353   :  { %4220 = vmatprep.subr.bf16.mxu0 %v4907_v16  ;;  %4249 = vmatprep.subr.bf16.mxu1 %v6101_v57 }
 0x356   :  { %4222 = vmatpush1.bf16.msra.mxu0 %v4922_v21  ;;  %4251 = vmatpush3.bf16.msra.mxu1 %v4988_v43 }
 0x357   :  { %4224 = vmatprep.subr.bf16.mxu0 %v4928_v23  ;;  %4252 = vmatprep.subr.bf16.mxu1 %v6101_v57 }
 0x35a   :  { %4226 = vmatpush1.bf16.msra.mxu0 %v4954_v32  ;;  %4254 = vmatpush3.bf16.msra.mxu1 %v5016_v52 }
 0x35b   :  { %4228 = vmatprep.subr.bf16.mxu0 %v4963_v35  ;;  %4255 = vmatprep.subr.bf16.mxu1 %v6101_v57 }
 0x35e   :  { %4230 = vmatpush1.bf16.msra.mxu0 %v4982_v41  ;;  %4257 = vmatpush3.bf16.msra.mxu1 %v5044_v61 }
 0x35f   :  { %4232 = vmatprep.subr.bf16.mxu0 %v4991_v44  ;;  %4258 = vmatprep.subr.bf16.mxu1 %v6101_v57 }
 0x362   :  { %4234 = vmatpush1.bf16.msra.mxu0 %v5010_v50  ;;  %4260 = vmatpush3.bf16.msra.mxu1 %v5072_v11 }
 0x363   :  { %4236 = vmatprep.subr.bf16.mxu0 %v5019_v53  ;;  %4261 = vmatprep.subr.bf16.mxu1 %v6101_v57 }
 0x366   :  { %4238 = vmatpush1.bf16.msra.mxu0 %v6112_v24  ;;  %4263 = vmatpush3.bf16.msra.mxu1 %v6113_v7 }
 0x367   :  { %4240 = vmatprep.subr.bf16.mxu0 %v6114_v48  ;;  %4264 = vmatprep.subr.bf16.mxu1 %v6101_v57  ;;  %v6118_v48 = vld [vmem:[#allocation10_spill] sm:$0xff] }
 0x36a   :  { %4242 = vmatpush1.bf16.msra.mxu0 %v6115_v37  ;;  %4266 = vmatpush3.bf16.msra.mxu1 %v6116_v6 }
 0x36b   :  { %4268 = vmatprep.subr.bf16.mxu0 %v6117_v8  ;;  %4299 = vmatprep.subr.bf16.mxu1 %v6101_v57 }
 0x400   :  { %v1237_v4 = vpop.f32.mrb[12].mxu0  ;;  %v1308_v62 = vpop.f32.mrb[12].mxu1 }
 0x401   :  { %v1312_v26 = vadd.f32 %v2884_v2, %v1237_v4  ;;  %v1239_v45 = vpop.f32.mrb[13].mxu0  ;;  %v3447_v39 = vpop.f32.mrb[13].mxu1  ;;  %v1326_v7 = vadd.f32 %v6118_v48, %v1308_v62  ;;  %v2886_v2 = vld [vmem:[%s6068_s0 + $0x58] sm:$0xff]  ;;  %v2890_v48 = vld [vmem:[%s6070_s1 + $0x68] sm:$0xff] }
 0x402   :  { %v1319_v59 = vadd.f32 %v2885_v12, %v1239_v45 }
 0x403   :  { %v2887_v46 = vmul.f32 -1.442695, %v1312_v26  ;;  %v2889_v26 = vld [vmem:[%s6070_s1 + $0x60] sm:$0xff] }
 0x404   :  { %v2888_v55 = vmul.f32 -1.442695, %v1319_v59 }
 0x405   :  { %4722 = vpow2.f32 %v2887_v46 }
 0x406   :  { %4724 = vpow2.f32 %v2888_v55 }
 0x40f   :  { %v4723_v54 = vpop.eup %4722 }
 0x410   :  { %v1316_v8 = vadd.f32 1.0, %v4723_v54  ;;  %v4725_v6 = vpop.eup %4724 }
 0x411   :  { %v1323_v37 = vadd.f32 1.0, %v4725_v6 }
 0x412   :  { %4726 = vrcp.f32 %v1316_v8 }
 0x413   :  { %4728 = vrcp.f32 %v1323_v37 }
 0x41c   :  { %v4727_v24 = vpop.eup %4726 }
 0x41d   :  { %v1327_v4 = vmul.f32 %v4727_v24, %v1326_v7  ;;  %v4729_v24 = vpop.eup %4728 }
 0x41e   :  { %v1330_v37 = vsub.f32 1.0, %v4729_v24 }
 0x41f   :  { %v1328_v12 = vadd.f32 %v2886_v2, %v1327_v4  ;;  %v1332_v2 = vmul.f32 %v4729_v24, %v5582_v28 }
 0x420   :  { %v1404_v45 = vpop.f32.mrb[14].mxu0  ;;  %v1475_v39 = vpop.f32.mrb[14].mxu1 }
 0x421   :  { %4730 = vtanh.f32 %v1328_v12  ;;  %v1479_v8 = vadd.f32 %v2889_v26, %v1404_v45  ;;  %v1406_v6 = vpop.f32.mrb[15].mxu0  ;;  %v3482_v62 = vpop.f32.mrb[15].mxu1 }
 0x422   :  { %v1486_v59 = vadd.f32 %v2890_v48, %v1406_v6  ;;  %v2891_v6 = vld [vmem:[%s6070_s1 + $0x70] sm:$0xff] }
 0x423   :  { %v2892_v46 = vmul.f32 -1.442695, %v1479_v8  ;;  %v1493_v8 = vadd.f32 %v5396_v30, %v1475_v39 }
 0x424   :  { %v2893_v7 = vmul.f32 -1.442695, %v1486_v59 }
 0x425   :  { %4732 = vpow2.f32 %v2892_v46 }
 0x426   :  { %4734 = vpow2.f32 %v2893_v7 }
 0x42b   :  { %v4731_v55 = vpop.eup %4730 }
 0x42c   :  { %v1331_v54 = vmul.f32 %v4731_v55, %v1330_v37  ;;  %v6120_v55 = vld [vmem:[#allocation8_spill] sm:$0xff] }
 0x42e   :  { %v5682_v4 = vadd.f32 %v1332_v2, %v1331_v54  ;;  %v6121_v54 = vld [vmem:[#allocation5_spill] sm:$0xff]  ;;  %v6122_v2 = vld [vmem:[#allocation6_spill] sm:$0xff] }
 0x42f   :  { %v4733_v26 = vpop.eup %4732 }
 0x430   :  { %v1483_v12 = vadd.f32 1.0, %v4733_v26  ;;  %1570 = vmatmul.mubr.f32.vlgmr.msra.gmra.mrb[16].mxu0 %v5682_v4  ;;  %3516 = vmatmul.mubr.f32.vlgmr.msra.gmra.mrb[16].mxu1 %v5682_v4  ;;  %v4735_v28 = vpop.eup %4734  ;;  %v6123_v26 = vld [vmem:[#allocation9_spill] sm:$0xff] }
 0x431   :  { %4270 = vmatpush1.bf16.msra.mxu0 %v5094_v20  ;;  %4301 = vmatpush3.bf16.msra.mxu1 %v5158_v49  ;;  %v1490_v45 = vadd.f32 1.0, %v4735_v28  ;;  %v2894_v28 = vld [vmem:[%s6068_s0 + $0x60] sm:$0xff] }
 0x432   :  { %4736 = vrcp.f32 %v1483_v12  ;;  %4272 = vmatprep.subr.bf16.mxu0 %v5103_v25  ;;  %4302 = vmatprep.subr.bf16.mxu1 %v6101_v57  ;;  %v6124_v12 = vld [vmem:[#allocation7_spill] sm:$0xff] }
 0x433   :  { %1736 = vmatprep.mubr.f32.mxu0 %v6102_v3  ;;  %3550 = vmatprep.mubr.msk.f32.mxu1 %vm4826_vm0, %v6102_v3  ;;  %4738 = vrcp.f32 %v1490_v45 }
 0x435   :  { %4274 = vmatpush1.bf16.msra.mxu0 %v5123_v33  ;;  %4304 = vmatpush3.bf16.msra.mxu1 %v5187_v0 }
 0x436   :  { %4276 = vmatprep.subr.bf16.mxu0 %v5132_v38  ;;  %4305 = vmatprep.subr.bf16.mxu1 %v6101_v57 }
 0x439   :  { %4278 = vmatpush1.bf16.msra.mxu0 %v5152_v47  ;;  %4307 = vmatpush3.bf16.msra.mxu1 %v5217_v19 }
 0x43a   :  { %4280 = vmatprep.subr.bf16.mxu0 %v5161_v51  ;;  %4308 = vmatprep.subr.bf16.mxu1 %v6101_v57 }
 0x43c   :  { %v4737_v48 = vpop.eup %4736 }
 0x43d   :  { %v1494_v62 = vmul.f32 %v4737_v48, %v1493_v8  ;;  %4282 = vmatpush1.bf16.msra.mxu0 %v5181_v60  ;;  %4310 = vmatpush3.bf16.msra.mxu1 %v5245_v40  ;;  %v4739_v30 = vpop.eup %4738 }
 0x43e   :  { %4284 = vmatprep.subr.bf16.mxu0 %v5190_v1  ;;  %4311 = vmatprep.subr.bf16.mxu1 %v6101_v57  ;;  %v1497_v39 = vsub.f32 1.0, %v4739_v30  ;;  %v1499_v7 = vmul.f32 %v4739_v30, %v5624_v18  ;;  %v6119_v18 = vld [vmem:[#allocation4_spill] sm:$0xff] }
 0x43f   :  { %v1495_v46 = vadd.f32 %v2891_v6, %v1494_v62  ;;  %v2895_v6 = vld [vmem:[%s6068_s0 + $0x68] sm:$0xff] }
 0x441   :  { %4740 = vtanh.f32 %v1495_v46  ;;  %4286 = vmatpush1.bf16.msra.mxu0 %v5211_v17  ;;  %4313 = vmatpush3.bf16.msra.mxu1 %v5273_v58 }
 0x442   :  { %4288 = vmatprep.subr.bf16.mxu0 %v5220_v22  ;;  %4314 = vmatprep.subr.bf16.mxu1 %v6101_v57 }
 0x445   :  { %4290 = vmatpush1.bf16.msra.mxu0 %v5239_v36  ;;  %4316 = vmatpush3.bf16.msra.mxu1 %v5292_v14 }
 0x446   :  { %4292 = vmatprep.subr.bf16.mxu0 %v5248_v42  ;;  %4317 = vmatprep.subr.bf16.mxu1 %v6101_v57 }
 0x449   :  { %4294 = vmatpush1.bf16.msra.mxu0 %v5267_v56  ;;  %4319 = vmatpush3.bf16.msra.mxu1 %v5304_v27 }
 0x44a   :  { %4296 = vmatprep.subr.bf16.mxu0 %v5276_v63  ;;  %4320 = vmatprep.subr.bf16.mxu1 %v6101_v57 }
 0x44b   :  { %v4741_v59 = vpop.eup %4740 }
 0x44c   :  { %v1498_v24 = vmul.f32 %v4741_v59, %v1497_v39 }
 0x44d   :  { %4298 = vmatpush1.bf16.msra.mxu0 %v5289_v13  ;;  %4322 = vmatpush3.bf16.msra.mxu1 %v5316_v31 }
 0x44e   :  { %v5724_v37 = vadd.f32 %v1499_v7, %v1498_v24  ;;  %4324 = vmatprep.subr.bf16.mxu0 %v4873_v5  ;;  %4355 = vmatprep.subr.bf16.mxu1 %v6101_v57 }
 0x450   :  { %1737 = vmatmul.mubr.f32.vlgmr.msra.gmra.mrb[18].mxu0 %v5724_v37  ;;  %3551 = vmatmul.mubr.f32.vlgmr.msra.gmra.mrb[18].mxu1 %v5724_v37 }
 0x451   :  { %4326 = vmatpush1.bf16.msra.mxu0 %v4886_v9  ;;  %4357 = vmatpush3.bf16.msra.mxu1 %v4945_v29 }
 0x452   :  { %4328 = vmatprep.subr.bf16.mxu0 %v4888_v10  ;;  %4358 = vmatprep.subr.bf16.mxu1 %v6101_v57 }
 0x453   :  { %1903 = vmatprep.mubr.f32.mxu0 %v6102_v3  ;;  %3585 = vmatprep.mubr.msk.f32.mxu1 %vm4826_vm0, %v6102_v3 }
 0x455   :  { %4330 = vmatpush1.bf16.msra.mxu0 %v4904_v15  ;;  %4360 = vmatpush3.bf16.msra.mxu1 %v4960_v34 }
 0x456   :  { %4332 = vmatprep.subr.bf16.mxu0 %v4907_v16  ;;  %4361 = vmatprep.subr.bf16.mxu1 %v6101_v57 }
 0x459   :  { %4334 = vmatpush1.bf16.msra.mxu0 %v4922_v21  ;;  %4363 = vmatpush3.bf16.msra.mxu1 %v4988_v43 }
 0x45a   :  { %4336 = vmatprep.subr.bf16.mxu0 %v4928_v23  ;;  %4364 = vmatprep.subr.bf16.mxu1 %v6101_v57 }
 0x45d   :  { %4338 = vmatpush1.bf16.msra.mxu0 %v4954_v32  ;;  %4366 = vmatpush3.bf16.msra.mxu1 %v5016_v52 }
 0x45e   :  { %4340 = vmatprep.subr.bf16.mxu0 %v4963_v35  ;;  %4367 = vmatprep.subr.bf16.mxu1 %v6101_v57 }
 0x461   :  { %4342 = vmatpush1.bf16.msra.mxu0 %v4982_v41  ;;  %4369 = vmatpush3.bf16.msra.mxu1 %v5044_v61 }
 0x462   :  { %4344 = vmatprep.subr.bf16.mxu0 %v4991_v44  ;;  %4370 = vmatprep.subr.bf16.mxu1 %v6101_v57 }
 0x465   :  { %4346 = vmatpush1.bf16.msra.mxu0 %v5010_v50  ;;  %4372 = vmatpush3.bf16.msra.mxu1 %v5072_v11 }
 0x466   :  { %4348 = vmatprep.subr.bf16.mxu0 %v5019_v53  ;;  %4373 = vmatprep.subr.bf16.mxu1 %v6101_v57 }
 0x469   :  { %4350 = vmatpush1.bf16.msra.mxu0 %v6119_v18  ;;  %4375 = vmatpush3.bf16.msra.mxu1 %v6120_v55 }
 0x46a   :  { %4352 = vmatprep.subr.bf16.mxu0 %v6121_v54  ;;  %4376 = vmatprep.subr.bf16.mxu1 %v6101_v57 }
 0x46d   :  { %4354 = vmatpush1.bf16.msra.mxu0 %v6122_v2  ;;  %4378 = vmatpush3.bf16.msra.mxu1 %v6123_v26 }
 0x46e   :  { %4380 = vmatprep.subr.bf16.mxu0 %v6124_v12  ;;  %4411 = vmatprep.subr.bf16.mxu1 %v6101_v57 }
 0x503   :  { %v1571_v45 = vpop.f32.mrb[16].mxu0  ;;  %v1642_v8 = vpop.f32.mrb[16].mxu1 }
 0x504   :  { %v1646_v48 = vadd.f32 %v2894_v28, %v1571_v45  ;;  %v1573_v62 = vpop.f32.mrb[17].mxu0  ;;  %v3517_v46 = vpop.f32.mrb[17].mxu1  ;;  %v5774_v28 = vld [vmem:[%s6069_s4] ss:$0 sm:$0xff] }
 0x505   :  { %v1653_v39 = vadd.f32 %v2895_v6, %v1573_v62  ;;  %6125 = vst [vmem:[#allocation10_spill] sm:$0xff] %v5774_v28  ;;  %v1660_v45 = vadd.f32 %v5774_v28, %v1642_v8  ;;  %v2899_v62 = vld [vmem:[%s6070_s1 + $0x48] sm:$0xff]  ;;  %v2900_v8 = vld [vmem:[%s6070_s1 + $0x50] sm:$0xff] }
 0x506   :  { %v2897_v30 = vmul.f32 -1.442695, %v1646_v48  ;;  %v2896_v48 = vld [vmem:[%s6068_s0 + $0x70] sm:$0xff] }
 0x507   :  { %v2898_v59 = vmul.f32 -1.442695, %v1653_v39 }
 0x508   :  { %4742 = vpow2.f32 %v2897_v30 }
 0x509   :  { %4744 = vpow2.f32 %v2898_v59 }
 0x512   :  { %v4743_v24 = vpop.eup %4742 }
 0x513   :  { %v1650_v7 = vadd.f32 1.0, %v4743_v24  ;;  %v4745_v12 = vpop.eup %4744 }
 0x514   :  { %v1657_v26 = vadd.f32 1.0, %v4745_v12 }
 0x515   :  { %4746 = vrcp.f32 %v1650_v7 }
 0x516   :  { %4748 = vrcp.f32 %v1657_v26 }
 0x51f   :  { %v4747_v2 = vpop.eup %4746 }
 0x520   :  { %v1661_v6 = vmul.f32 %v4747_v2, %v1660_v45  ;;  %v4749_v2 = vpop.eup %4748 }
 0x521   :  { %v1664_v45 = vsub.f32 1.0, %v4749_v2 }
 0x522   :  { %v1662_v46 = vadd.f32 %v2896_v48, %v1661_v6  ;;  %v1666_v48 = vmul.f32 %v4749_v2, %v5682_v4 }
 0x523   :  { %v1738_v12 = vpop.f32.mrb[18].mxu0  ;;  %v1809_v30 = vpop.f32.mrb[18].mxu1 }
 0x524   :  { %4750 = vtanh.f32 %v1662_v46  ;;  %v1813_v39 = vadd.f32 %v2899_v62, %v1738_v12  ;;  %v1740_v59 = vpop.f32.mrb[19].mxu0  ;;  %v3552_v24 = vpop.f32.mrb[19].mxu1 }
 0x525   :  { %v1820_v28 = vadd.f32 %v2900_v8, %v1740_v59 }
 0x526   :  { %v2902_v7 = vmul.f32 -1.442695, %v1813_v39  ;;  %v2901_v39 = vld [vmem:[%s6070_s1 + $0x58] sm:$0xff] }
 0x527   :  { %v2903_v26 = vmul.f32 -1.442695, %v1820_v28 }
 0x528   :  { %4752 = vpow2.f32 %v2902_v7 }
 0x529   :  { %4754 = vpow2.f32 %v2903_v26 }
 0x52e   :  { %v4751_v54 = vpop.eup %4750 }
 0x52f   :  { %v1665_v55 = vmul.f32 %v4751_v54, %v1664_v45  ;;  %v5809_v54 = vld [vmem:[%s6071_s5] ss:$0 sm:$0xff] }
 0x530   :  { %v1827_v28 = vadd.f32 %v5809_v54, %v1809_v30 }
 0x531   :  { %v5787_v6 = vadd.f32 %v1666_v48, %v1665_v55  ;;  %v6127_v48 = vld [vmem:[#allocation5_spill] sm:$0xff] }
 0x532   :  { %v4753_v62 = vpop.eup %4752 }
 0x533   :  { %v1817_v46 = vadd.f32 1.0, %v4753_v62  ;;  %1904 = vmatmul.mubr.f32.vlgmr.msra.gmra.mrb[20].mxu0 %v5787_v6  ;;  %3586 = vmatmul.mubr.f32.vlgmr.msra.gmra.mrb[20].mxu1 %v5787_v6  ;;  %v4755_v4 = vpop.eup %4754  ;;  %v6128_v62 = vld [vmem:[#allocation6_spill] sm:$0xff] }
 0x534   :  { %4382 = vmatpush1.bf16.msra.mxu0 %v5094_v20  ;;  %4413 = vmatpush3.bf16.msra.mxu1 %v5158_v49  ;;  %v1824_v55 = vadd.f32 1.0, %v4755_v4  ;;  %v6130_v4 = vld [vmem:[#allocation7_spill] sm:$0xff] }
 0x535   :  { %4756 = vrcp.f32 %v1817_v46  ;;  %4384 = vmatprep.subr.bf16.mxu0 %v5103_v25  ;;  %4414 = vmatprep.subr.bf16.mxu1 %v6101_v57  ;;  %v6129_v46 = vld [vmem:[#allocation9_spill] sm:$0xff] }
 0x536   :  { %2070 = vmatprep.mubr.f32.mxu0 %v6102_v3  ;;  %3620 = vmatprep.mubr.msk.f32.mxu1 %vm4826_vm0, %v6102_v3  ;;  %4758 = vrcp.f32 %v1824_v55  ;;  %v2904_v55 = vld [vmem:[%s6068_s0 + $0x78] sm:$0xff] }
 0x538   :  { %4386 = vmatpush1.bf16.msra.mxu0 %v5123_v33  ;;  %4416 = vmatpush3.bf16.msra.mxu1 %v5187_v0 }
 0x539   :  { %4388 = vmatprep.subr.bf16.mxu0 %v5132_v38  ;;  %4417 = vmatprep.subr.bf16.mxu1 %v6101_v57 }
 0x53c   :  { %4390 = vmatpush1.bf16.msra.mxu0 %v5152_v47  ;;  %4419 = vmatpush3.bf16.msra.mxu1 %v5217_v19 }
 0x53d   :  { %4392 = vmatprep.subr.bf16.mxu0 %v5161_v51  ;;  %4420 = vmatprep.subr.bf16.mxu1 %v6101_v57 }
 0x53f   :  { %v4757_v12 = vpop.eup %4756 }
 0x540   :  { %v1828_v8 = vmul.f32 %v4757_v12, %v1827_v28  ;;  %4394 = vmatpush1.bf16.msra.mxu0 %v5181_v60  ;;  %4422 = vmatpush3.bf16.msra.mxu1 %v5245_v40  ;;  %v4759_v30 = vpop.eup %4758 }
 0x541   :  { %4396 = vmatprep.subr.bf16.mxu0 %v5190_v1  ;;  %4423 = vmatprep.subr.bf16.mxu1 %v6101_v57  ;;  %v1831_v24 = vsub.f32 1.0, %v4759_v30  ;;  %v1833_v26 = vmul.f32 %v4759_v30, %v5724_v37  ;;  %v6126_v37 = vld [vmem:[#allocation8_spill] sm:$0xff] }
 0x542   :  { %v1829_v59 = vadd.f32 %v2901_v39, %v1828_v8  ;;  %v2905_v8 = vld [vmem:[%s6068_s0 + $0x80] sm:$0xff] }
 0x544   :  { %4760 = vtanh.f32 %v1829_v59  ;;  %4398 = vmatpush1.bf16.msra.mxu0 %v5211_v17  ;;  %4425 = vmatpush3.bf16.msra.mxu1 %v5273_v58 }
 0x545   :  { %4400 = vmatprep.subr.bf16.mxu0 %v5220_v22  ;;  %4426 = vmatprep.subr.bf16.mxu1 %v6101_v57 }
 0x548   :  { %4402 = vmatpush1.bf16.msra.mxu0 %v5239_v36  ;;  %4428 = vmatpush3.bf16.msra.mxu1 %v5292_v14 }
 0x549   :  { %4404 = vmatprep.subr.bf16.mxu0 %v5248_v42  ;;  %4429 = vmatprep.subr.bf16.mxu1 %v6101_v57 }
 0x54c   :  { %4406 = vmatpush1.bf16.msra.mxu0 %v5267_v56  ;;  %4431 = vmatpush3.bf16.msra.mxu1 %v5304_v27 }
 0x54d   :  { %4408 = vmatprep.subr.bf16.mxu0 %v5276_v63  ;;  %4432 = vmatprep.subr.bf16.mxu1 %v6101_v57 }
 0x54e   :  { %v4761_v7 = vpop.eup %4760 }
 0x54f   :  { %v1832_v2 = vmul.f32 %v4761_v7, %v1831_v24 }
 0x550   :  { %4410 = vmatpush1.bf16.msra.mxu0 %v5289_v13  ;;  %4434 = vmatpush3.bf16.msra.mxu1 %v5316_v31 }
 0x551   :  { %v5834_v45 = vadd.f32 %v1833_v26, %v1832_v2  ;;  %4436 = vmatprep.subr.bf16.mxu0 %v4873_v5  ;;  %4467 = vmatprep.subr.bf16.mxu1 %v6101_v57 }
 0x553   :  { %2071 = vmatmul.mubr.f32.vlgmr.msra.gmra.mrb[22].mxu0 %v5834_v45  ;;  %3621 = vmatmul.mubr.f32.vlgmr.msra.gmra.mrb[22].mxu1 %v5834_v45 }
 0x554   :  { %4438 = vmatpush1.bf16.msra.mxu0 %v4886_v9  ;;  %4469 = vmatpush3.bf16.msra.mxu1 %v4945_v29 }
 0x555   :  { %4440 = vmatprep.subr.bf16.mxu0 %v4888_v10  ;;  %4470 = vmatprep.subr.bf16.mxu1 %v6101_v57 }
 0x556   :  { %2237 = vmatprep.mubr.f32.mxu0 %v6102_v3  ;;  %3655 = vmatprep.mubr.msk.f32.mxu1 %vm4826_vm0, %v6102_v3 }
 0x558   :  { %4442 = vmatpush1.bf16.msra.mxu0 %v4904_v15  ;;  %4472 = vmatpush3.bf16.msra.mxu1 %v4960_v34 }
 0x559   :  { %4444 = vmatprep.subr.bf16.mxu0 %v4907_v16  ;;  %4473 = vmatprep.subr.bf16.mxu1 %v6101_v57 }
 0x55c   :  { %4446 = vmatpush1.bf16.msra.mxu0 %v4922_v21  ;;  %4475 = vmatpush3.bf16.msra.mxu1 %v4988_v43 }
 0x55d   :  { %4448 = vmatprep.subr.bf16.mxu0 %v4928_v23  ;;  %4476 = vmatprep.subr.bf16.mxu1 %v6101_v57 }
 0x560   :  { %4450 = vmatpush1.bf16.msra.mxu0 %v4954_v32  ;;  %4478 = vmatpush3.bf16.msra.mxu1 %v5016_v52 }
 0x561   :  { %4452 = vmatprep.subr.bf16.mxu0 %v4963_v35  ;;  %4479 = vmatprep.subr.bf16.mxu1 %v6101_v57 }
 0x564   :  { %4454 = vmatpush1.bf16.msra.mxu0 %v4982_v41  ;;  %4481 = vmatpush3.bf16.msra.mxu1 %v5044_v61 }
 0x565   :  { %4456 = vmatprep.subr.bf16.mxu0 %v4991_v44  ;;  %4482 = vmatprep.subr.bf16.mxu1 %v6101_v57 }
 0x568   :  { %4458 = vmatpush1.bf16.msra.mxu0 %v5010_v50  ;;  %4484 = vmatpush3.bf16.msra.mxu1 %v5072_v11 }
 0x569   :  { %4460 = vmatprep.subr.bf16.mxu0 %v5019_v53  ;;  %4485 = vmatprep.subr.bf16.mxu1 %v6101_v57 }
 0x56c   :  { %4462 = vmatpush1.bf16.msra.mxu0 %v6119_v18  ;;  %4487 = vmatpush3.bf16.msra.mxu1 %v6126_v37 }
 0x56d   :  { %4464 = vmatprep.subr.bf16.mxu0 %v6127_v48  ;;  %4488 = vmatprep.subr.bf16.mxu1 %v6101_v57  ;;  %v6131_v48 = vld [vmem:[#allocation10_spill] sm:$0xff] }
 0x570   :  { %4466 = vmatpush1.bf16.msra.mxu0 %v6128_v62  ;;  %4490 = vmatpush3.bf16.msra.mxu1 %v6129_v46 }
 0x571   :  { %4492 = vmatprep.subr.bf16.mxu0 %v6130_v4  ;;  %4523 = vmatprep.subr.bf16.mxu1 %v6101_v57 }
 0x606   :  { %v1905_v28 = vpop.f32.mrb[20].mxu0  ;;  %v1976_v12 = vpop.f32.mrb[20].mxu1 }
 0x607   :  { %v1980_v39 = vadd.f32 %v2904_v55, %v1905_v28  ;;  %v1907_v59 = vpop.f32.mrb[21].mxu0  ;;  %v3587_v30 = vpop.f32.mrb[21].mxu1  ;;  %v1994_v37 = vadd.f32 %v6131_v48, %v1976_v12  ;;  %v2906_v55 = vld [vmem:[%s6068_s0 + $0x88] sm:$0xff] }
 0x608   :  { %v1987_v7 = vadd.f32 %v2905_v8, %v1907_v59 }
 0x609   :  { %v2907_v24 = vmul.f32 -1.442695, %v1980_v39  ;;  %v2909_v39 = vld [vmem:[%s6070_s1 + $0x30] sm:$0xff] }
 0x60a   :  { %v2908_v2 = vmul.f32 -1.442695, %v1987_v7 }
 0x60b   :  { %4762 = vpow2.f32 %v2907_v24 }
 0x60c   :  { %4764 = vpow2.f32 %v2908_v2 }
 0x615   :  { %v4763_v26 = vpop.eup %4762 }
 0x616   :  { %v1984_v4 = vadd.f32 1.0, %v4763_v26  ;;  %v4765_v46 = vpop.eup %4764 }
 0x617   :  { %v1991_v62 = vadd.f32 1.0, %v4765_v46  ;;  %v2910_v46 = vld [vmem:[%s6070_s1 + $0x38] sm:$0xff] }
 0x618   :  { %4766 = vrcp.f32 %v1984_v4 }
 0x619   :  { %4768 = vrcp.f32 %v1991_v62 }
 0x622   :  { %v4767_v18 = vpop.eup %4766 }
 0x623   :  { %v1995_v28 = vmul.f32 %v4767_v18, %v1994_v37  ;;  %v4769_v18 = vpop.eup %4768 }
 0x624   :  { %v1998_v62 = vsub.f32 1.0, %v4769_v18 }
 0x625   :  { %v1996_v8 = vadd.f32 %v2906_v55, %v1995_v28  ;;  %v2000_v55 = vmul.f32 %v4769_v18, %v5787_v6 }
 0x626   :  { %v2072_v59 = vpop.f32.mrb[22].mxu0  ;;  %v2143_v30 = vpop.f32.mrb[22].mxu1 }
 0x627   :  { %4770 = vtanh.f32 %v1996_v8  ;;  %v2147_v4 = vadd.f32 %v2909_v39, %v2072_v59  ;;  %v2074_v12 = vpop.f32.mrb[23].mxu0  ;;  %v3622_v24 = vpop.f32.mrb[23].mxu1  ;;  %v2161_v59 = vadd.f32 %v5809_v54, %v2143_v30 }
 0x628   :  { %v2154_v2 = vadd.f32 %v2910_v46, %v2074_v12  ;;  %v2911_v46 = vld [vmem:[%s6070_s1 + $0x40] sm:$0xff] }
 0x629   :  { %v2912_v7 = vmul.f32 -1.442695, %v2147_v4 }
 0x62a   :  { %v2913_v37 = vmul.f32 -1.442695, %v2154_v2 }
 0x62b   :  { %4772 = vpow2.f32 %v2912_v7 }
 0x62c   :  { %4774 = vpow2.f32 %v2913_v37 }
 0x631   :  { %v4771_v26 = vpop.eup %4770 }
 0x632   :  { %v1999_v48 = vmul.f32 %v4771_v26, %v1998_v62  ;;  %v6138_v26 = vld [vmem:[#allocation10_spill] sm:$0xff] }
 0x634   :  { %v5892_v28 = vadd.f32 %v2000_v55, %v1999_v48 }
 0x635   :  { %v4773_v39 = vpop.eup %4772 }
 0x636   :  { %v2151_v8 = vadd.f32 1.0, %v4773_v39  ;;  %2238 = vmatmul.mubr.f32.vlgmr.msra.gmra.mrb[24].mxu0 %v5892_v28  ;;  %3656 = vmatmul.mubr.f32.vlgmr.msra.gmra.mrb[24].mxu1 %v5892_v28  ;;  %v4775_v6 = vpop.eup %4774 }
 0x637   :  { %4494 = vmatpush1.bf16.msra.mxu0 %v5094_v20  ;;  %4525 = vmatpush3.bf16.msra.mxu1 %v5158_v49  ;;  %v2158_v48 = vadd.f32 1.0, %v4775_v6 }
 0x638   :  { %4776 = vrcp.f32 %v2151_v8  ;;  %4496 = vmatprep.subr.bf16.mxu0 %v5103_v25  ;;  %4526 = vmatprep.subr.bf16.mxu1 %v6101_v57  ;;  %v2916_v8 = vld [vmem:[%s6068_s0 + $0xa0] sm:$0xff] }
 0x639   :  { %2404 = vmatprep.mubr.f32.mxu0 %v6102_v3  ;;  %3690 = vmatprep.mubr.msk.f32.mxu1 %vm4826_vm0, %v6102_v3  ;;  %4778 = vrcp.f32 %v2158_v48  ;;  %v2919_v48 = vld [vmem:[%s6070_s1 + $0x18] sm:$0xff] }
 0x63b   :  { %4498 = vmatpush1.bf16.msra.mxu0 %v5123_v33  ;;  %4528 = vmatpush3.bf16.msra.mxu1 %v5187_v0 }
 0x63c   :  { %4500 = vmatprep.subr.bf16.mxu0 %v5132_v38  ;;  %4529 = vmatprep.subr.bf16.mxu1 %v6101_v57 }
 0x63f   :  { %4502 = vmatpush1.bf16.msra.mxu0 %v5152_v47  ;;  %4531 = vmatpush3.bf16.msra.mxu1 %v5217_v19 }
 0x640   :  { %4504 = vmatprep.subr.bf16.mxu0 %v5161_v51  ;;  %4532 = vmatprep.subr.bf16.mxu1 %v6101_v57 }
 0x642   :  { %v4777_v4 = vpop.eup %4776 }
 0x643   :  { %v2162_v12 = vmul.f32 %v4777_v4, %v2161_v59  ;;  %4506 = vmatpush1.bf16.msra.mxu0 %v5181_v60  ;;  %4534 = vmatpush3.bf16.msra.mxu1 %v5245_v40  ;;  %v4779_v30 = vpop.eup %4778 }
 0x644   :  { %4508 = vmatprep.subr.bf16.mxu0 %v5190_v1  ;;  %4535 = vmatprep.subr.bf16.mxu1 %v6101_v57  ;;  %v2165_v7 = vsub.f32 1.0, %v4779_v30  ;;  %v2167_v37 = vmul.f32 %v4779_v30, %v5834_v45 }
 0x645   :  { %v2163_v24 = vadd.f32 %v2911_v46, %v2162_v12 }
 0x647   :  { %4780 = vtanh.f32 %v2163_v24  ;;  %4510 = vmatpush1.bf16.msra.mxu0 %v5211_v17  ;;  %4537 = vmatpush3.bf16.msra.mxu1 %v5273_v58  ;;  %v2920_v24 = vld [vmem:[%s6070_s1 + $0x20] sm:$0xff] }
 0x648   :  { %4512 = vmatprep.subr.bf16.mxu0 %v5220_v22  ;;  %4538 = vmatprep.subr.bf16.mxu1 %v6101_v57 }
 0x64b   :  { %4514 = vmatpush1.bf16.msra.mxu0 %v5239_v36  ;;  %4540 = vmatpush3.bf16.msra.mxu1 %v5292_v14 }
 0x64c   :  { %4516 = vmatprep.subr.bf16.mxu0 %v5248_v42  ;;  %4541 = vmatprep.subr.bf16.mxu1 %v6101_v57 }
 0x64f   :  { %4518 = vmatpush1.bf16.msra.mxu0 %v5267_v56  ;;  %4543 = vmatpush3.bf16.msra.mxu1 %v5304_v27 }
 0x650   :  { %4520 = vmatprep.subr.bf16.mxu0 %v5276_v63  ;;  %4544 = vmatprep.subr.bf16.mxu1 %v6101_v57 }
 0x651   :  { %v4781_v2 = vpop.eup %4780 }
 0x652   :  { %v2166_v18 = vmul.f32 %v4781_v2, %v2165_v7 }
 0x653   :  { %4522 = vmatpush1.bf16.msra.mxu0 %v5289_v13  ;;  %4546 = vmatpush3.bf16.msra.mxu1 %v5316_v31 }
 0x654   :  { %v5934_v62 = vadd.f32 %v2167_v37, %v2166_v18  ;;  %4548 = vmatprep.subr.bf16.mxu0 %v4873_v5  ;;  %4579 = vmatprep.subr.bf16.mxu1 %v6101_v57  ;;  %v6132_v5 = vld [vmem:[#allocation4_spill] sm:$0xff] }
 0x656   :  { %2405 = vmatmul.mubr.f32.vlgmr.msra.gmra.mrb[26].mxu0 %v5934_v62  ;;  %3691 = vmatmul.mubr.f32.vlgmr.msra.gmra.mrb[26].mxu1 %v5934_v62 }
 0x657   :  { %4550 = vmatpush1.bf16.msra.mxu0 %v4886_v9  ;;  %4581 = vmatpush3.bf16.msra.mxu1 %v4945_v29  ;;  %v6133_v9 = vld [vmem:[#allocation8_spill] sm:$0xff] }
 0x658   :  { %4552 = vmatprep.subr.bf16.mxu0 %v4888_v10  ;;  %4582 = vmatprep.subr.bf16.mxu1 %v6101_v57  ;;  %v6134_v10 = vld [vmem:[#allocation5_spill] sm:$0xff] }
 0x659   :  { %2571 = vmatprep.mubr.f32.mxu0 %v6102_v3  ;;  %3725 = vmatprep.mubr.msk.f32.mxu1 %vm4826_vm0, %v6102_v3 }
 0x65b   :  { %4554 = vmatpush1.bf16.msra.mxu0 %v4904_v15  ;;  %4584 = vmatpush3.bf16.msra.mxu1 %v4960_v34  ;;  %v6135_v15 = vld [vmem:[#allocation6_spill] sm:$0xff] }
 0x65c   :  { %4556 = vmatprep.subr.bf16.mxu0 %v4907_v16  ;;  %4585 = vmatprep.subr.bf16.mxu1 %v6101_v57  ;;  %v6136_v16 = vld [vmem:[#allocation9_spill] sm:$0xff] }
 0x65f   :  { %4558 = vmatpush1.bf16.msra.mxu0 %v4922_v21  ;;  %4587 = vmatpush3.bf16.msra.mxu1 %v4988_v43  ;;  %v6137_v21 = vld [vmem:[#allocation7_spill] sm:$0xff] }
 0x660   :  { %4560 = vmatprep.subr.bf16.mxu0 %v4928_v23  ;;  %4588 = vmatprep.subr.bf16.mxu1 %v6101_v57  ;;  %v2914_v23 = vld [vmem:[%s6068_s0 + $0x90] sm:$0xff] }
 0x663   :  { %4562 = vmatpush1.bf16.msra.mxu0 %v4954_v32  ;;  %4590 = vmatpush3.bf16.msra.mxu1 %v5016_v52 }
 0x664   :  { %4564 = vmatprep.subr.bf16.mxu0 %v4963_v35  ;;  %4591 = vmatprep.subr.bf16.mxu1 %v6101_v57  ;;  %v2915_v35 = vld [vmem:[%s6068_s0 + $0x98] sm:$0xff] }
 0x667   :  { %4566 = vmatpush1.bf16.msra.mxu0 %v4982_v41  ;;  %4593 = vmatpush3.bf16.msra.mxu1 %v5044_v61 }
 0x668   :  { %4568 = vmatprep.subr.bf16.mxu0 %v4991_v44  ;;  %4594 = vmatprep.subr.bf16.mxu1 %v6101_v57 }
 0x66b   :  { %4570 = vmatpush1.bf16.msra.mxu0 %v5010_v50  ;;  %4596 = vmatpush3.bf16.msra.mxu1 %v5072_v11 }
 0x66c   :  { %4572 = vmatprep.subr.bf16.mxu0 %v5019_v53  ;;  %4597 = vmatprep.subr.bf16.mxu1 %v6101_v57 }
 0x66f   :  { %4574 = vmatpush1.bf16.msra.mxu0 %v6132_v5  ;;  %4599 = vmatpush3.bf16.msra.mxu1 %v6133_v9 }
 0x670   :  { %4576 = vmatprep.subr.bf16.mxu0 %v6134_v10  ;;  %4600 = vmatprep.subr.bf16.mxu1 %v6101_v57 }
 0x673   :  { %4578 = vmatpush1.bf16.msra.mxu0 %v6135_v15  ;;  %4602 = vmatpush3.bf16.msra.mxu1 %v6136_v16 }
 0x674   :  { %4604 = vmatprep.subr.bf16.mxu0 %v6137_v21  ;;  %4635 = vmatprep.subr.bf16.mxu1 %v6101_v57 }
 0x709   :  { %v2239_v29 = vpop.f32.mrb[24].mxu0  ;;  %v2310_v32 = vpop.f32.mrb[24].mxu1 }
 0x70a   :  { %v2314_v34 = vadd.f32 %v2914_v23, %v2239_v29  ;;  %v2241_v41 = vpop.f32.mrb[25].mxu0  ;;  %v3657_v43 = vpop.f32.mrb[25].mxu1  ;;  %v2328_v55 = vadd.f32 %v6138_v26, %v2310_v32 }
 0x70b   :  { %v2321_v50 = vadd.f32 %v2915_v35, %v2241_v41  ;;  %v2926_v35 = vld [vmem:[%s6068_s0 + $0xb8] sm:$0xff]  ;;  %v2670_v43 = vld [vmem:[%s6070_s1] sm:$0xff] }
 0x70c   :  { %v2917_v44 = vmul.f32 -1.442695, %v2314_v34 }
 0x70d   :  { %v2918_v52 = vmul.f32 -1.442695, %v2321_v50 }
 0x70e   :  { %4782 = vpow2.f32 %v2917_v44 }
 0x70f   :  { %4784 = vpow2.f32 %v2918_v52 }
 0x718   :  { %v4783_v53 = vpop.eup %4782 }
 0x719   :  { %v2318_v61 = vadd.f32 1.0, %v4783_v53  ;;  %v4785_v11 = vpop.eup %4784 }
 0x71a   :  { %v2325_v45 = vadd.f32 1.0, %v4785_v11 }
 0x71b   :  { %4786 = vrcp.f32 %v2318_v61  ;;  %v2671_v61 = vld [vmem:[%s6070_s1 + $0x8] sm:$0xff] }
 0x71c   :  { %4788 = vrcp.f32 %v2325_v45 }
 0x725   :  { %v4787_v39 = vpop.eup %4786 }
 0x726   :  { %v2329_v6 = vmul.f32 %v4787_v39, %v2328_v55  ;;  %v4789_v37 = vpop.eup %4788 }
 0x727   :  { %v2332_v9 = vsub.f32 1.0, %v4789_v37  ;;  %v2334_v16 = vmul.f32 %v4789_v37, %v5892_v28  ;;  %v2672_v37 = vld [vmem:[%s6070_s1 + $0x10] sm:$0xff] }
 0x728   :  { %v2330_v59 = vadd.f32 %v2916_v8, %v2329_v6 }
 0x729   :  { %v2406_v4 = vpop.f32.mrb[26].mxu0  ;;  %v2477_v46 = vpop.f32.mrb[26].mxu1 }
 0x72a   :  { %4790 = vtanh.f32 %v2330_v59  ;;  %v2481_v12 = vadd.f32 %v2919_v48, %v2406_v4  ;;  %v2408_v30 = vpop.f32.mrb[27].mxu0  ;;  %v3692_v7 = vpop.f32.mrb[27].mxu1 }
 0x72b   :  { %v2488_v18 = vadd.f32 %v2920_v24, %v2408_v30 }
 0x72c   :  { %v2922_v2 = vmul.f32 -1.442695, %v2481_v12 }
 0x72d   :  { %v2923_v5 = vmul.f32 -1.442695, %v2488_v18 }
 0x72e   :  { %4792 = vpow2.f32 %v2922_v2 }
 0x72f   :  { %4794 = vpow2.f32 %v2923_v5 }
 0x734   :  { %v4791_v10 = vpop.eup %4790 }
 0x735   :  { %v2333_v15 = vmul.f32 %v4791_v10, %v2332_v9 }
 0x737   :  { %v5992_v21 = vadd.f32 %v2334_v16, %v2333_v15 }
 0x738   :  { %v4793_v23 = vpop.eup %4792 }
 0x739   :  { %v2485_v29 = vadd.f32 1.0, %v4793_v23  ;;  %2572 = vmatmul.mubr.f32.vlgmr.msra.gmra.mrb[28].mxu0 %v5992_v21  ;;  %3726 = vmatmul.mubr.f32.vlgmr.msra.gmra.mrb[28].mxu1 %v5992_v21  ;;  %v4795_v28 = vpop.eup %4794 }
 0x73a   :  { %4606 = vmatpush1.bf16.msra.mxu0 %v5094_v20  ;;  %4637 = vmatpush3.bf16.msra.mxu1 %v5158_v49  ;;  %v2492_v20 = vadd.f32 1.0, %v4795_v28 }
 0x73b   :  { %4796 = vrcp.f32 %v2485_v29  ;;  %4608 = vmatprep.subr.bf16.mxu0 %v5103_v25  ;;  %4638 = vmatprep.subr.bf16.mxu1 %v6101_v57  ;;  %v2495_v25 = vadd.f32 %v5809_v54, %v2477_v46 }
 0x73c   :  { %2737 = vmatprep.mubr.f32.mxu0 %v6102_v3  ;;  %3760 = vmatprep.mubr.msk.f32.mxu1 %vm4826_vm0, %v6102_v3  ;;  %4798 = vrcp.f32 %v2492_v20 }
 0x73e   :  { %4610 = vmatpush1.bf16.msra.mxu0 %v5123_v33  ;;  %4640 = vmatpush3.bf16.msra.mxu1 %v5187_v0  ;;  %v2921_v33 = vld [vmem:[%s6070_s1 + $0x28] sm:$0xff] }
 0x73f   :  { %4612 = vmatprep.subr.bf16.mxu0 %v5132_v38  ;;  %4641 = vmatprep.subr.bf16.mxu1 %v6101_v57 }
 0x742   :  { %4614 = vmatpush1.bf16.msra.mxu0 %v5152_v47  ;;  %4643 = vmatpush3.bf16.msra.mxu1 %v5217_v19 }
 0x743   :  { %4616 = vmatprep.subr.bf16.mxu0 %v5161_v51  ;;  %4644 = vmatprep.subr.bf16.mxu1 %v6101_v57 }
 0x745   :  { %v4797_v49 = vpop.eup %4796 }
 0x746   :  { %v2496_v0 = vmul.f32 %v4797_v49, %v2495_v25  ;;  %4618 = vmatpush1.bf16.msra.mxu0 %v5181_v60  ;;  %4646 = vmatpush3.bf16.msra.mxu1 %v5245_v40  ;;  %v4799_v47 = vpop.eup %4798 }
 0x747   :  { %4620 = vmatprep.subr.bf16.mxu0 %v5190_v1  ;;  %4647 = vmatprep.subr.bf16.mxu1 %v6101_v57  ;;  %v2499_v51 = vsub.f32 1.0, %v4799_v47 }
 0x748   :  { %v2497_v38 = vadd.f32 %v2921_v33, %v2496_v0 }
 0x74a   :  { %4800 = vtanh.f32 %v2497_v38  ;;  %4622 = vmatpush1.bf16.msra.mxu0 %v5211_v17  ;;  %4649 = vmatpush3.bf16.msra.mxu1 %v5273_v58  ;;  %v2501_v17 = vmul.f32 %v4799_v47, %v5934_v62 }
 0x74b   :  { %4624 = vmatprep.subr.bf16.mxu0 %v5220_v22  ;;  %4650 = vmatprep.subr.bf16.mxu1 %v6101_v57  ;;  %v2924_v22 = vld [vmem:[%s6068_s0 + $0xa8] sm:$0xff] }
 0x74e   :  { %4626 = vmatpush1.bf16.msra.mxu0 %v5239_v36  ;;  %4652 = vmatpush3.bf16.msra.mxu1 %v5292_v14 }
 0x74f   :  { %4628 = vmatprep.subr.bf16.mxu0 %v5248_v42  ;;  %4653 = vmatprep.subr.bf16.mxu1 %v6101_v57 }
 0x752   :  { %4630 = vmatpush1.bf16.msra.mxu0 %v5267_v56  ;;  %4655 = vmatpush3.bf16.msra.mxu1 %v5304_v27  ;;  %v2925_v56 = vld [vmem:[%s6068_s0 + $0xb0] sm:$0xff] }
 0x753   :  { %4632 = vmatprep.subr.bf16.mxu0 %v5276_v63  ;;  %4656 = vmatprep.subr.bf16.mxu1 %v6101_v57 }
 0x754   :  { %v4801_v60 = vpop.eup %4800 }
 0x755   :  { %v2500_v1 = vmul.f32 %v4801_v60, %v2499_v51 }
 0x756   :  { %4634 = vmatpush1.bf16.msra.mxu0 %v5289_v13  ;;  %4658 = vmatpush3.bf16.msra.mxu1 %v5316_v31 }
 0x757   :  { %v6034_v19 = vadd.f32 %v2501_v17, %v2500_v1 }
 0x759   :  { %2738 = vmatmul.mubr.f32.vlgmr.msra.gmra.mrb[30].mxu0 %v6034_v19  ;;  %3761 = vmatmul.mubr.f32.vlgmr.msra.gmra.mrb[30].mxu1 %v6034_v19 }
 0x80c   :  { %v2573_v36 = vpop.f32.mrb[28].mxu0  ;;  %v2644_v40 = vpop.f32.mrb[28].mxu1 }
 0x80d   :  { %v2648_v42 = vadd.f32 %v2924_v22, %v2573_v36  ;;  %v2575_v58 = vpop.f32.mrb[29].mxu0  ;;  %v3727_v63 = vpop.f32.mrb[29].mxu1  ;;  %v2662_v32 = vadd.f32 %v6138_v26, %v2644_v40 }
 0x80e   :  { %v2655_v14 = vadd.f32 %v2925_v56, %v2575_v58 }
 0x80f   :  { %v2927_v13 = vmul.f32 -1.442695, %v2648_v42 }
 0x810   :  { %v2928_v27 = vmul.f32 -1.442695, %v2655_v14 }
 0x811   :  { %4802 = vpow2.f32 %v2927_v13 }
 0x812   :  { %4804 = vpow2.f32 %v2928_v27 }
 0x81b   :  { %v4803_v31 = vpop.eup %4802 }
 0x81c   :  { %v2652_v57 = vadd.f32 1.0, %v4803_v31  ;;  %v4805_v3 = vpop.eup %4804 }
 0x81d   :  { %v2659_v62 = vadd.f32 1.0, %v4805_v3 }
 0x81e   :  { %4806 = vrcp.f32 %v2652_v57 }
 0x81f   :  { %4808 = vrcp.f32 %v2659_v62 }
 0x828   :  { %v4807_v34 = vpop.eup %4806 }
 0x829   :  { %v2663_v41 = vmul.f32 %v4807_v34, %v2662_v32  ;;  %v4809_v39 = vpop.eup %4808 }
 0x82a   :  { %v2666_v6 = vsub.f32 1.0, %v4809_v39  ;;  %v2668_v4 = vmul.f32 %v4809_v39, %v5992_v21 }
 0x82b   :  { %v2664_v44 = vadd.f32 %v2926_v35, %v2663_v41 }
 0x82c   :  { %v2739_v50 = vpop.f32.mrb[30].mxu0  ;;  %v2810_v52 = vpop.f32.mrb[30].mxu1 }
 0x82d   :  { %4810 = vtanh.f32 %v2664_v44  ;;  %v2814_v53 = vadd.f32 %v2739_v50, %v2670_v43  ;;  %v2741_v11 = vpop.f32.mrb[31].mxu0  ;;  %v3762_v45 = vpop.f32.mrb[31].mxu1  ;;  %v2828_v2 = vadd.f32 %v5809_v54, %v2810_v52 }
 0x82e   :  { %v2821_v55 = vadd.f32 %v2741_v11, %v2671_v61 }
 0x82f   :  { %v2929_v26 = vmul.f32 -1.442695, %v2814_v53 }
 0x830   :  { %v2930_v8 = vmul.f32 -1.442695, %v2821_v55 }
 0x831   :  { %4812 = vpow2.f32 %v2929_v26 }
 0x832   :  { %4814 = vpow2.f32 %v2930_v8 }
 0x837   :  { %v4811_v48 = vpop.eup %4810 }
 0x838   :  { %v2667_v59 = vmul.f32 %v4811_v48, %v2666_v6 }
 0x83a   :  { %v2669_v46 = vadd.f32 %v2668_v4, %v2667_v59 }
 0x83b   :  { %v4813_v12 = vpop.eup %4812 }
 0x83c   :  { %2842 = vst [vmem:[%s6072_s6] sm:$0xff] %v2669_v46  ;;  %v2818_v24 = vadd.f32 1.0, %v4813_v12  ;;  %v4815_v30 = vpop.eup %4814 }
 0x83d   :  { %v2825_v7 = vadd.f32 1.0, %v4815_v30 }
 0x83e   :  { %4816 = vrcp.f32 %v2818_v24 }
 0x83f   :  { %4818 = vrcp.f32 %v2825_v7 }
 0x848   :  { %v4817_v18 = vpop.eup %4816 }
 0x849   :  { %v2829_v5 = vmul.f32 %v4817_v18, %v2828_v2  ;;  %v4819_v10 = vpop.eup %4818 }
 0x84a   :  { %v2832_v15 = vsub.f32 1.0, %v4819_v10  ;;  %v2834_v23 = vmul.f32 %v4819_v10, %v6034_v19 }
 0x84b   :  { %v2830_v9 = vadd.f32 %v2829_v5, %v2672_v37 }
 0x84d   :  { %4820 = vtanh.f32 %v2830_v9 }
 0x857   :  { %v4821_v16 = vpop.eup %4820 }
 0x858   :  { %v2833_v21 = vmul.f32 %v4821_v16, %v2832_v15 }
 0x85a   :  { %v2835_v29 = vadd.f32 %v2834_v23, %v2833_v21 }
 0x85c   :  { %2844 = vst [vmem:[%s6072_s6 + $0x8] sm:$0xff] %v2835_v29 }

</bundles_post_ra>
